<compile_context>
chip_gen: v7x
topology: tpu7x:2x2x1
jax: 0.10.0
libtpu: 0.0.40
codegen_flags: <defaults>
</compile_context>

<pallas_src>
import functools
import math

import jax
import jax.numpy as jnp
from jax import lax
from jax.experimental import pallas as pl
from jax.experimental.pallas import tpu as pltpu

VMEM_LIMIT_BYTES = 48 * 1024 * 1024   # headroom for v7x's 64 MiB physical VMEM
LN_EPS = 1e-5                         # torch TransformerDecoderLayer default


# ----------------------------------------------------------------------------
# in-kernel helpers (f32)
# ----------------------------------------------------------------------------
def _gelu_exact(x):
    """Exact (erf) GELU via Abramowitz-Stegun 7.1.26 polynomial (|err| < 1.5e-7).

    Implemented with exp/where only so it lowers cleanly in Mosaic.
    """
    z = x * 0.7071067811865476
    az = jnp.abs(z)
    t = 1.0 / (1.0 + 0.3275911 * az)
    poly = t * (0.254829592 + t * (-0.284496736 + t * (1.421413741
               + t * (-1.453152027 + t * 1.061405429))))
    erf_abs = 1.0 - poly * jnp.exp(-az * az)
    erf = jnp.where(z >= 0.0, erf_abs, -erf_abs)
    return 0.5 * x * (1.0 + erf)


def _layernorm(x, gamma, beta, eps):
    mu = jnp.mean(x, axis=-1, keepdims=True)
    var = jnp.mean((x - mu) ** 2, axis=-1, keepdims=True)
    return (x - mu) * lax.rsqrt(var + eps) * gamma + beta


def _softmax_rows(s):
    m = jnp.max(s, axis=-1, keepdims=True)
    e = jnp.exp(s - m)
    return e * pl.reciprocal(jnp.sum(e, axis=-1, keepdims=True), approx=True)


def _heads_attention(q, k, v, nhead, scale):
    """q:(Lq,D) f32, k/v:(Lkv,D) f32. Returns (out (Lq,D) f32, avg_probs (Lq,Lkv) f32)."""
    lq, d = q.shape
    lk = k.shape[0]
    dh = d // nhead
    outs = []
    p_sum = jnp.zeros((lq, lk), jnp.float32)
    for h in range(nhead):                      # static unroll (small head count)
        qh = q[:, h * dh:(h + 1) * dh].astype(jnp.bfloat16)
        kh = k[:, h * dh:(h + 1) * dh].astype(jnp.bfloat16)
        vh = v[:, h * dh:(h + 1) * dh].astype(jnp.bfloat16)
        s = lax.dot_general(qh, kh, (((1,), (1,)), ((), ())),
                            preferred_element_type=jnp.float32) * scale
        p = _softmax_rows(s)
        p_sum = p_sum + p
        outs.append(jnp.dot(p.astype(jnp.bfloat16), vh,
                            preferred_element_type=jnp.float32))
    out = jnp.concatenate(outs, axis=-1)        # lane-dense (Lq, D)
    return out, p_sum * (1.0 / nhead)


# ----------------------------------------------------------------------------
# Pallas kernel bodies
# ----------------------------------------------------------------------------
def _self_attn_block_kernel(x_ref, wqkv_ref, bqkv_ref, wo_ref, bo_ref,
                            g_ref, beta_ref, y_ref, *, nhead, scale, eps):
    x = x_ref[0].astype(jnp.float32)                         # (Q, D)
    d = x.shape[-1]
    xb = x.astype(jnp.bfloat16)
    qkv = jnp.dot(xb, wqkv_ref[...],
                  preferred_element_type=jnp.float32) + bqkv_ref[...]   # (Q, 3D)
    q, k, v = qkv[:, :d], qkv[:, d:2 * d], qkv[:, 2 * d:]
    attn, _ = _heads_attention(q, k, v, nhead, scale)
    proj = jnp.dot(attn.astype(jnp.bfloat16), wo_ref[...],
                   preferred_element_type=jnp.float32) + bo_ref[...]
    y_ref[0] = _layernorm(x + proj, g_ref[...], beta_ref[...], eps)


def _cross_attn_block_kernel(x_ref, m_ref, wq_ref, bq_ref, wkv_ref, bkv_ref,
                             wo_ref, bo_ref, g_ref, beta_ref,
                             y_ref, aw_ref, *, nhead, scale, eps):
    x = x_ref[0].astype(jnp.float32)                         # (Q, D)
    mem = m_ref[0]                                           # (L, D) bf16
    d = x.shape[-1]
    q = jnp.dot(x.astype(jnp.bfloat16), wq_ref[...],
                preferred_element_type=jnp.float32) + bq_ref[...]        # (Q, D)
    kv = jnp.dot(mem, wkv_ref[...],
                 preferred_element_type=jnp.float32) + bkv_ref[...]      # (L, 2D)
    k, v = kv[:, :d], kv[:, d:]
    attn, probs = _heads_attention(q, k, v, nhead, scale)
    proj = jnp.dot(attn.astype(jnp.bfloat16), wo_ref[...],
                   preferred_element_type=jnp.float32) + bo_ref[...]
    y_ref[0] = _layernorm(x + proj, g_ref[...], beta_ref[...], eps)
    aw_ref[0] = probs                                        # head-averaged (Q, L)


def _ffn_block_kernel(x_ref, w1_ref, b1_ref, w2_ref, b2_ref,
                      g_ref, beta_ref, y_ref, *, eps):
    x = x_ref[0].astype(jnp.float32)                         # (Q, D)
    h = jnp.dot(x.astype(jnp.bfloat16), w1_ref[...],
                preferred_element_type=jnp.float32) + b1_ref[...]
    h = _gelu_exact(h)
    out = jnp.dot(h.astype(jnp.bfloat16), w2_ref[...],
                  preferred_element_type=jnp.float32) + b2_ref[...]
    y_ref[0] = _layernorm(x + out, g_ref[...], beta_ref[...], eps)


# ----------------------------------------------------------------------------
# pallas_call wrappers (grid over batch, "parallel" for megacore)
# ----------------------------------------------------------------------------
def _cparams():
    return pltpu.CompilerParams(dimension_semantics=("parallel",),
                                vmem_limit_bytes=VMEM_LIMIT_BYTES)


def _full2d(arr_shape):
    # weights / biases: whole array, resident across the batch grid
    return pl.BlockSpec(arr_shape, lambda b: (0, 0))


def self_attn_block(x, p, nhead):
    B, Q, D = x.shape
    scale = 1.0 / math.sqrt(D // nhead)
    kern = functools.partial(_self_attn_block_kernel, nhead=nhead, scale=scale, eps=LN_EPS)
    return pl.pallas_call(
        kern,
        out_shape=jax.ShapeDtypeStruct((B, Q, D), jnp.float32),
        grid=(B,),
        in_specs=[pl.BlockSpec((1, Q, D), lambda b: (b, 0, 0)),
                  _full2d((D, 3 * D)), _full2d((1, 3 * D)),
                  _full2d((D, D)), _full2d((1, D)),
                  _full2d((1, D)), _full2d((1, D))],
        out_specs=pl.BlockSpec((1, Q, D), lambda b: (b, 0, 0)),
        compiler_params=_cparams(),
    )(x, p["wqkv"], p["bqkv"], p["wo_sa"], p["bo_sa"], p["ln1_g"], p["ln1_b"])


def cross_attn_block(x, memory, p, nhead):
    B, Q, D = x.shape
    L = memory.shape[1]
    scale = 1.0 / math.sqrt(D // nhead)
    kern = functools.partial(_cross_attn_block_kernel, nhead=nhead, scale=scale, eps=LN_EPS)
    y, aw = pl.pallas_call(
        kern,
        out_shape=(jax.ShapeDtypeStruct((B, Q, D), jnp.float32),
                   jax.ShapeDtypeStruct((B, Q, L), jnp.float32)),
        grid=(B,),
        in_specs=[pl.BlockSpec((1, Q, D), lambda b: (b, 0, 0)),
                  pl.BlockSpec((1, L, D), lambda b: (b, 0, 0)),
                  _full2d((D, D)), _full2d((1, D)),
                  _full2d((D, 2 * D)), _full2d((1, 2 * D)),
                  _full2d((D, D)), _full2d((1, D)),
                  _full2d((1, D)), _full2d((1, D))],
        out_specs=[pl.BlockSpec((1, Q, D), lambda b: (b, 0, 0)),
                   pl.BlockSpec((1, Q, L), lambda b: (b, 0, 0))],
        compiler_params=_cparams(),
    )(x, memory, p["wq"], p["bq"], p["wkv"], p["bkv"],
      p["wo_ca"], p["bo_ca"], p["ln2_g"], p["ln2_b"])
    return y, aw


def ffn_block(x, p):
    B, Q, D = x.shape
    F = p["w1"].shape[1]
    kern = functools.partial(_ffn_block_kernel, eps=LN_EPS)
    return pl.pallas_call(
        kern,
        out_shape=jax.ShapeDtypeStruct((B, Q, D), jnp.float32),
        grid=(B,),
        in_specs=[pl.BlockSpec((1, Q, D), lambda b: (b, 0, 0)),
                  _full2d((D, F)), _full2d((1, F)),
                  _full2d((F, D)), _full2d((1, D)),
                  _full2d((1, D)), _full2d((1, D))],
        out_specs=pl.BlockSpec((1, Q, D), lambda b: (b, 0, 0)),
        compiler_params=_cparams(),
    )(x, p["w1"], p["b1"], p["w2"], p["b2"], p["ln3_g"], p["ln3_b"])


# ----------------------------------------------------------------------------
# MLCDecoder.forward
# ----------------------------------------------------------------------------
def mlc_decoder_forward(params, encoder_hidden_states, cfg):
    """tgt = tiled learned queries; post-norm (norm_first=False) transformer decoder.

    Per layer (dropout=0 / eval):
      x = LN1(x + SelfAttn(x))
      x = LN2(x + CrossAttn(x, memory))   (cross-attn weights averaged over heads)
      x = LN3(x + Linear2(gelu(Linear1(x))))
    """
    B = encoder_hidden_states.shape[0]
    nhead = cfg["nhead"]
    x = jnp.tile(params["mlc_emb"][None], (B, 1, 1)).astype(jnp.float32)  # (B, Q, D)
    memory = encoder_hidden_states.astype(jnp.bfloat16)                   # K/V source

    attn_weights = None
    for layer in params["layers"]:
        x = self_attn_block(x, layer, nhead)
        x, attn_weights = cross_attn_block(x, memory, layer, nhead)
        x = ffn_block(x, layer)

    # TODO(synk): the custom TransformerDecoder's exact attn_weights aggregation
    # (per-layer list vs. last layer) is not shown in the spec; we return the
    # last layer's head-averaged cross-attention weights (B, num_queries, L).
    return x, attn_weights


# ----------------------------------------------------------------------------
# Deterministic parameter initialization (weights pre-transposed to (Din, Dout),
# matmul weights stored in bf16; biases / LN params in f32)
# ----------------------------------------------------------------------------
INIT_STD = 0.02


class KeyGen:
    def __init__(self, seed):
        self.key = jax.random.PRNGKey(seed)

    def __call__(self):
        self.key, k = jax.random.split(self.key)
        return k


def _w(kg, shape, std=INIT_STD):
    return (std * jax.random.normal(kg(), shape, jnp.float32)).astype(jnp.bfloat16)


def _zeros(shape):
    return jnp.zeros(shape, jnp.float32)


def _ones(shape):
    return jnp.ones(shape, jnp.float32)


def make_layer_params(kg, D, F):
    return dict(
        # self-attention: fused QKV (Din, 3*Dout)
        wqkv=_w(kg, (D, 3 * D)), bqkv=_zeros((1, 3 * D)),
        wo_sa=_w(kg, (D, D)), bo_sa=_zeros((1, D)),
        ln1_g=_ones((1, D)), ln1_b=_zeros((1, D)),
        # cross-attention: Q proj + fused KV (Din, 2*Dout)
        wq=_w(kg, (D, D)), bq=_zeros((1, D)),
        wkv=_w(kg, (D, 2 * D)), bkv=_zeros((1, 2 * D)),
        wo_ca=_w(kg, (D, D)), bo_ca=_zeros((1, D)),
        ln2_g=_ones((1, D)), ln2_b=_zeros((1, D)),
        # FFN
        w1=_w(kg, (D, F)), b1=_zeros((1, F)),
        w2=_w(kg, (F, D)), b2=_zeros((1, D)),
        ln3_g=_ones((1, D)), ln3_b=_zeros((1, D)),
    )


def init_params(seed, cfg):
    kg = KeyGen(seed)
    D = cfg["hidden_size"]
    assert D % cfg["nhead"] == 0
    return dict(
        mlc_emb=jax.random.normal(kg(), (cfg["num_queries"], D), jnp.float32) * INIT_STD,
        layers=[make_layer_params(kg, D, cfg["ffn_dim"])
                for _ in range(cfg["num_layers"])],
    )


# ----------------------------------------------------------------------------
# Main
# ----------------------------------------------------------------------------
if __name__ == "__main__":
    CFG = dict(num_queries=8, hidden_size=128, nhead=4, ffn_dim=256,
               num_layers=2, dropout=0.0)   # dropout=0 (eval-mode forward)
    B, L_MEM = 2, 32

    params = init_params(0, CFG)

    key = jax.random.PRNGKey(0)
    encoder_hidden_states = jax.random.normal(
        key, (B, L_MEM, CFG["hidden_size"]), jnp.float32)

    fwd = jax.jit(lambda p, m: mlc_decoder_forward(p, m, CFG))
    mlc_queries, attn_weights = fwd(params, encoder_hidden_states)
    jax.block_until_ready((mlc_queries, attn_weights))

    assert mlc_queries.shape == (B, CFG["num_queries"], CFG["hidden_size"])
    assert attn_weights.shape == (B, CFG["num_queries"], L_MEM)
    assert bool(jnp.all(jnp.isfinite(mlc_queries)))
    assert bool(jnp.all(jnp.isfinite(attn_weights)))
    print("KERNEL_OK")
</pallas_src>

<mosaic_0001>
module attributes {stable_mosaic.version = 11 : i64} {
  func.func @_cross_attn_block_kernel(%arg0: i32, %arg1: memref<1x8x128xf32, #tpu.memory_space<vmem>>, %arg2: memref<1x32x128xbf16, #tpu.memory_space<vmem>>, %arg3: memref<128x128xbf16, #tpu.memory_space<vmem>>, %arg4: memref<1x128xf32, #tpu.memory_space<vmem>>, %arg5: memref<128x256xbf16, #tpu.memory_space<vmem>>, %arg6: memref<1x256xf32, #tpu.memory_space<vmem>>, %arg7: memref<128x128xbf16, #tpu.memory_space<vmem>>, %arg8: memref<1x128xf32, #tpu.memory_space<vmem>>, %arg9: memref<1x128xf32, #tpu.memory_space<vmem>>, %arg10: memref<1x128xf32, #tpu.memory_space<vmem>>, %arg11: memref<1x8x128xf32, #tpu.memory_space<vmem>>, %arg12: memref<1x8x32xf32, #tpu.memory_space<vmem>>) attributes {dimension_semantics = [#tpu.dimension_semantics<parallel>], iteration_bounds = array<i64: 2>, scalar_prefetch = 0 : i64, scratch_operands = 0 : i64, tpu.core_type = #tpu.core_type<tc>, window_params = [{transform_indices = @transform_0, window_bounds = array<i64: 1, 8, 128>}, {transform_indices = @transform_1, window_bounds = array<i64: 1, 32, 128>}, {pipeline_mode = #tpu.pipeline_mode<synchronous>, transform_indices = @transform_2, window_bounds = array<i64: 128, 128>}, {pipeline_mode = #tpu.pipeline_mode<synchronous>, transform_indices = @transform_3, window_bounds = array<i64: 1, 128>}, {pipeline_mode = #tpu.pipeline_mode<synchronous>, transform_indices = @transform_4, window_bounds = array<i64: 128, 256>}, {pipeline_mode = #tpu.pipeline_mode<synchronous>, transform_indices = @transform_5, window_bounds = array<i64: 1, 256>}, {pipeline_mode = #tpu.pipeline_mode<synchronous>, transform_indices = @transform_6, window_bounds = array<i64: 128, 128>}, {pipeline_mode = #tpu.pipeline_mode<synchronous>, transform_indices = @transform_7, window_bounds = array<i64: 1, 128>}, {pipeline_mode = #tpu.pipeline_mode<synchronous>, transform_indices = @transform_8, window_bounds = array<i64: 1, 128>}, {pipeline_mode = #tpu.pipeline_mode<synchronous>, transform_indices = @transform_9, window_bounds = array<i64: 1, 128>}, {transform_indices = @transform_10, window_bounds = array<i64: 1, 8, 128>}, {transform_indices = @transform_11, window_bounds = array<i64: 1, 8, 32>}]} {
    %c0 = arith.constant 0 : index
    %c0_0 = arith.constant 0 : index
    %c0_1 = arith.constant 0 : index
    %0 = vector.load %arg1[%c0, %c0_0, %c0_1] : memref<1x8x128xf32, #tpu.memory_space<vmem>>, vector<1x8x128xf32>
    %1 = vector.shape_cast %0 : vector<1x8x128xf32> to vector<8x128xf32>
    %c0_2 = arith.constant 0 : index
    %c0_3 = arith.constant 0 : index
    %c0_4 = arith.constant 0 : index
    %2 = vector.load %arg2[%c0_2, %c0_3, %c0_4] : memref<1x32x128xbf16, #tpu.memory_space<vmem>>, vector<1x32x128xbf16>
    %3 = vector.shape_cast %2 : vector<1x32x128xbf16> to vector<32x128xbf16>
    %4 = arith.truncf %1 : vector<8x128xf32> to vector<8x128xbf16>
    %c0_5 = arith.constant 0 : index
    %c0_6 = arith.constant 0 : index
    %5 = vector.load %arg3[%c0_5, %c0_6] : memref<128x128xbf16, #tpu.memory_space<vmem>>, vector<128x128xbf16>
    %cst = arith.constant dense<0.000000e+00> : vector<8x128xf32>
    %6 = tpu.matmul %4, %5, %cst {dimension_numbers = #tpu.dot_dimension_numbers<[1], [0], [0], [1], [0, 0, 1, 1], [], []>} : vector<8x128xbf16>, vector<128x128xbf16>, vector<8x128xf32> -> vector<8x128xf32>
    %c0_7 = arith.constant 0 : index
    %c0_8 = arith.constant 0 : index
    %7 = vector.load %arg4[%c0_7, %c0_8] : memref<1x128xf32, #tpu.memory_space<vmem>>, vector<1x128xf32>
    %8 = vector.broadcast %7 : vector<1x128xf32> to vector<8x128xf32>
    %9 = arith.addf %6, %8 : vector<8x128xf32>
    %c0_9 = arith.constant 0 : index
    %c0_10 = arith.constant 0 : index
    %10 = vector.load %arg5[%c0_9, %c0_10] : memref<128x256xbf16, #tpu.memory_space<vmem>>, vector<128x256xbf16>
    %cst_11 = arith.constant dense<0.000000e+00> : vector<32x256xf32>
    %11 = tpu.matmul %3, %10, %cst_11 {dimension_numbers = #tpu.dot_dimension_numbers<[1], [0], [0], [1], [0, 0, 1, 1], [], []>} : vector<32x128xbf16>, vector<128x256xbf16>, vector<32x256xf32> -> vector<32x256xf32>
    %c0_12 = arith.constant 0 : index
    %c0_13 = arith.constant 0 : index
    %12 = vector.load %arg6[%c0_12, %c0_13] : memref<1x256xf32, #tpu.memory_space<vmem>>, vector<1x256xf32>
    %13 = vector.broadcast %12 : vector<1x256xf32> to vector<32x256xf32>
    %14 = arith.addf %11, %13 : vector<32x256xf32>
    %15 = vector.extract_strided_slice %14 {offsets = [0, 0], sizes = [32, 128], strides = [1, 1]} : vector<32x256xf32> to vector<32x128xf32>
    %16 = vector.extract_strided_slice %14 {offsets = [0, 128], sizes = [32, 128], strides = [1, 1]} : vector<32x256xf32> to vector<32x128xf32>
    %cst_14 = arith.constant 0.000000e+00 : f32
    %17 = vector.broadcast %cst_14 : f32 to vector<8x32xf32>
    %18 = vector.extract_strided_slice %9 {offsets = [0, 0], sizes = [8, 32], strides = [1, 1]} : vector<8x128xf32> to vector<8x32xf32>
    %19 = arith.truncf %18 : vector<8x32xf32> to vector<8x32xbf16>
    %20 = vector.extract_strided_slice %15 {offsets = [0, 0], sizes = [32, 32], strides = [1, 1]} : vector<32x128xf32> to vector<32x32xf32>
    %21 = arith.truncf %20 : vector<32x32xf32> to vector<32x32xbf16>
    %22 = vector.extract_strided_slice %16 {offsets = [0, 0], sizes = [32, 32], strides = [1, 1]} : vector<32x128xf32> to vector<32x32xf32>
    %23 = arith.truncf %22 : vector<32x32xf32> to vector<32x32xbf16>
    %cst_15 = arith.constant dense<0.000000e+00> : vector<8x32xf32>
    %24 = tpu.matmul %19, %21, %cst_15 {dimension_numbers = #tpu.dot_dimension_numbers<[1], [1], [0], [0], [0, 0, 1, 0], [], []>} : vector<8x32xbf16>, vector<32x32xbf16>, vector<8x32xf32> -> vector<8x32xf32>
    %cst_16 = arith.constant 0.176776692 : f32
    %25 = vector.broadcast %cst_16 : f32 to vector<8x32xf32>
    %26 = arith.mulf %24, %25 : vector<8x32xf32>
    %cst_17 = arith.constant dense<0xFF800000> : vector<8xf32>
    %27 = vector.multi_reduction <maximumf>, %26, %cst_17 [1] : vector<8x32xf32> to vector<8xf32>
    %28 = vector.shape_cast %27 : vector<8xf32> to vector<8x1xf32>
    %29 = vector.broadcast %28 : vector<8x1xf32> to vector<8x32xf32>
    %30 = arith.subf %26, %29 : vector<8x32xf32>
    %31 = math.exp %30 : vector<8x32xf32>
    %cst_18 = arith.constant dense<0.000000e+00> : vector<8xf32>
    %32 = vector.multi_reduction <add>, %31, %cst_18 [1] : vector<8x32xf32> to vector<8xf32>
    %33 = vector.shape_cast %32 : vector<8xf32> to vector<8x1xf32>
    %34 = tpu.reciprocal %33 {approx = true} : vector<8x1xf32> -> vector<8x1xf32>
    %35 = vector.broadcast %34 : vector<8x1xf32> to vector<8x32xf32>
    %36 = arith.mulf %31, %35 : vector<8x32xf32>
    %37 = arith.addf %17, %36 : vector<8x32xf32>
    %38 = arith.truncf %36 : vector<8x32xf32> to vector<8x32xbf16>
    %cst_19 = arith.constant dense<0.000000e+00> : vector<8x32xf32>
    %39 = tpu.matmul %38, %23, %cst_19 {dimension_numbers = #tpu.dot_dimension_numbers<[1], [0], [0], [1], [0, 0, 1, 1], [], []>} : vector<8x32xbf16>, vector<32x32xbf16>, vector<8x32xf32> -> vector<8x32xf32>
    %40 = vector.extract_strided_slice %9 {offsets = [0, 32], sizes = [8, 32], strides = [1, 1]} : vector<8x128xf32> to vector<8x32xf32>
    %41 = arith.truncf %40 : vector<8x32xf32> to vector<8x32xbf16>
    %42 = vector.extract_strided_slice %15 {offsets = [0, 32], sizes = [32, 32], strides = [1, 1]} : vector<32x128xf32> to vector<32x32xf32>
    %43 = arith.truncf %42 : vector<32x32xf32> to vector<32x32xbf16>
    %44 = vector.extract_strided_slice %16 {offsets = [0, 32], sizes = [32, 32], strides = [1, 1]} : vector<32x128xf32> to vector<32x32xf32>
    %45 = arith.truncf %44 : vector<32x32xf32> to vector<32x32xbf16>
    %cst_20 = arith.constant dense<0.000000e+00> : vector<8x32xf32>
    %46 = tpu.matmul %41, %43, %cst_20 {dimension_numbers = #tpu.dot_dimension_numbers<[1], [1], [0], [0], [0, 0, 1, 0], [], []>} : vector<8x32xbf16>, vector<32x32xbf16>, vector<8x32xf32> -> vector<8x32xf32>
    %cst_21 = arith.constant 0.176776692 : f32
    %47 = vector.broadcast %cst_21 : f32 to vector<8x32xf32>
    %48 = arith.mulf %46, %47 : vector<8x32xf32>
    %cst_22 = arith.constant dense<0xFF800000> : vector<8xf32>
    %49 = vector.multi_reduction <maximumf>, %48, %cst_22 [1] : vector<8x32xf32> to vector<8xf32>
    %50 = vector.shape_cast %49 : vector<8xf32> to vector<8x1xf32>
    %51 = vector.broadcast %50 : vector<8x1xf32> to vector<8x32xf32>
    %52 = arith.subf %48, %51 : vector<8x32xf32>
    %53 = math.exp %52 : vector<8x32xf32>
    %cst_23 = arith.constant dense<0.000000e+00> : vector<8xf32>
    %54 = vector.multi_reduction <add>, %53, %cst_23 [1] : vector<8x32xf32> to vector<8xf32>
    %55 = vector.shape_cast %54 : vector<8xf32> to vector<8x1xf32>
    %56 = tpu.reciprocal %55 {approx = true} : vector<8x1xf32> -> vector<8x1xf32>
    %57 = vector.broadcast %56 : vector<8x1xf32> to vector<8x32xf32>
    %58 = arith.mulf %53, %57 : vector<8x32xf32>
    %59 = arith.addf %37, %58 : vector<8x32xf32>
    %60 = arith.truncf %58 : vector<8x32xf32> to vector<8x32xbf16>
    %cst_24 = arith.constant dense<0.000000e+00> : vector<8x32xf32>
    %61 = tpu.matmul %60, %45, %cst_24 {dimension_numbers = #tpu.dot_dimension_numbers<[1], [0], [0], [1], [0, 0, 1, 1], [], []>} : vector<8x32xbf16>, vector<32x32xbf16>, vector<8x32xf32> -> vector<8x32xf32>
    %62 = vector.extract_strided_slice %9 {offsets = [0, 64], sizes = [8, 32], strides = [1, 1]} : vector<8x128xf32> to vector<8x32xf32>
    %63 = arith.truncf %62 : vector<8x32xf32> to vector<8x32xbf16>
    %64 = vector.extract_strided_slice %15 {offsets = [0, 64], sizes = [32, 32], strides = [1, 1]} : vector<32x128xf32> to vector<32x32xf32>
    %65 = arith.truncf %64 : vector<32x32xf32> to vector<32x32xbf16>
    %66 = vector.extract_strided_slice %16 {offsets = [0, 64], sizes = [32, 32], strides = [1, 1]} : vector<32x128xf32> to vector<32x32xf32>
    %67 = arith.truncf %66 : vector<32x32xf32> to vector<32x32xbf16>
    %cst_25 = arith.constant dense<0.000000e+00> : vector<8x32xf32>
    %68 = tpu.matmul %63, %65, %cst_25 {dimension_numbers = #tpu.dot_dimension_numbers<[1], [1], [0], [0], [0, 0, 1, 0], [], []>} : vector<8x32xbf16>, vector<32x32xbf16>, vector<8x32xf32> -> vector<8x32xf32>
    %cst_26 = arith.constant 0.176776692 : f32
    %69 = vector.broadcast %cst_26 : f32 to vector<8x32xf32>
    %70 = arith.mulf %68, %69 : vector<8x32xf32>
    %cst_27 = arith.constant dense<0xFF800000> : vector<8xf32>
    %71 = vector.multi_reduction <maximumf>, %70, %cst_27 [1] : vector<8x32xf32> to vector<8xf32>
    %72 = vector.shape_cast %71 : vector<8xf32> to vector<8x1xf32>
    %73 = vector.broadcast %72 : vector<8x1xf32> to vector<8x32xf32>
    %74 = arith.subf %70, %73 : vector<8x32xf32>
    %75 = math.exp %74 : vector<8x32xf32>
    %cst_28 = arith.constant dense<0.000000e+00> : vector<8xf32>
    %76 = vector.multi_reduction <add>, %75, %cst_28 [1] : vector<8x32xf32> to vector<8xf32>
    %77 = vector.shape_cast %76 : vector<8xf32> to vector<8x1xf32>
    %78 = tpu.reciprocal %77 {approx = true} : vector<8x1xf32> -> vector<8x1xf32>
    %79 = vector.broadcast %78 : vector<8x1xf32> to vector<8x32xf32>
    %80 = arith.mulf %75, %79 : vector<8x32xf32>
    %81 = arith.addf %59, %80 : vector<8x32xf32>
    %82 = arith.truncf %80 : vector<8x32xf32> to vector<8x32xbf16>
    %cst_29 = arith.constant dense<0.000000e+00> : vector<8x32xf32>
    %83 = tpu.matmul %82, %67, %cst_29 {dimension_numbers = #tpu.dot_dimension_numbers<[1], [0], [0], [1], [0, 0, 1, 1], [], []>} : vector<8x32xbf16>, vector<32x32xbf16>, vector<8x32xf32> -> vector<8x32xf32>
    %84 = vector.extract_strided_slice %9 {offsets = [0, 96], sizes = [8, 32], strides = [1, 1]} : vector<8x128xf32> to vector<8x32xf32>
    %85 = arith.truncf %84 : vector<8x32xf32> to vector<8x32xbf16>
    %86 = vector.extract_strided_slice %15 {offsets = [0, 96], sizes = [32, 32], strides = [1, 1]} : vector<32x128xf32> to vector<32x32xf32>
    %87 = arith.truncf %86 : vector<32x32xf32> to vector<32x32xbf16>
    %88 = vector.extract_strided_slice %16 {offsets = [0, 96], sizes = [32, 32], strides = [1, 1]} : vector<32x128xf32> to vector<32x32xf32>
    %89 = arith.truncf %88 : vector<32x32xf32> to vector<32x32xbf16>
    %cst_30 = arith.constant dense<0.000000e+00> : vector<8x32xf32>
    %90 = tpu.matmul %85, %87, %cst_30 {dimension_numbers = #tpu.dot_dimension_numbers<[1], [1], [0], [0], [0, 0, 1, 0], [], []>} : vector<8x32xbf16>, vector<32x32xbf16>, vector<8x32xf32> -> vector<8x32xf32>
    %cst_31 = arith.constant 0.176776692 : f32
    %91 = vector.broadcast %cst_31 : f32 to vector<8x32xf32>
    %92 = arith.mulf %90, %91 : vector<8x32xf32>
    %cst_32 = arith.constant dense<0xFF800000> : vector<8xf32>
    %93 = vector.multi_reduction <maximumf>, %92, %cst_32 [1] : vector<8x32xf32> to vector<8xf32>
    %94 = vector.shape_cast %93 : vector<8xf32> to vector<8x1xf32>
    %95 = vector.broadcast %94 : vector<8x1xf32> to vector<8x32xf32>
    %96 = arith.subf %92, %95 : vector<8x32xf32>
    %97 = math.exp %96 : vector<8x32xf32>
    %cst_33 = arith.constant dense<0.000000e+00> : vector<8xf32>
    %98 = vector.multi_reduction <add>, %97, %cst_33 [1] : vector<8x32xf32> to vector<8xf32>
    %99 = vector.shape_cast %98 : vector<8xf32> to vector<8x1xf32>
    %100 = tpu.reciprocal %99 {approx = true} : vector<8x1xf32> -> vector<8x1xf32>
    %101 = vector.broadcast %100 : vector<8x1xf32> to vector<8x32xf32>
    %102 = arith.mulf %97, %101 : vector<8x32xf32>
    %103 = arith.addf %81, %102 : vector<8x32xf32>
    %104 = arith.truncf %102 : vector<8x32xf32> to vector<8x32xbf16>
    %cst_34 = arith.constant dense<0.000000e+00> : vector<8x32xf32>
    %105 = tpu.matmul %104, %89, %cst_34 {dimension_numbers = #tpu.dot_dimension_numbers<[1], [0], [0], [1], [0, 0, 1, 1], [], []>} : vector<8x32xbf16>, vector<32x32xbf16>, vector<8x32xf32> -> vector<8x32xf32>
    %106 = tpu.concatenate %39, %61, %83, %105 in 1 : vector<8x32xf32>, vector<8x32xf32>, vector<8x32xf32>, vector<8x32xf32> -> vector<8x128xf32>
    %cst_35 = arith.constant 2.500000e-01 : f32
    %107 = vector.broadcast %cst_35 : f32 to vector<8x32xf32>
    %108 = arith.mulf %103, %107 : vector<8x32xf32>
    %109 = arith.truncf %106 : vector<8x128xf32> to vector<8x128xbf16>
    %c0_36 = arith.constant 0 : index
    %c0_37 = arith.constant 0 : index
    %110 = vector.load %arg7[%c0_36, %c0_37] : memref<128x128xbf16, #tpu.memory_space<vmem>>, vector<128x128xbf16>
    %cst_38 = arith.constant dense<0.000000e+00> : vector<8x128xf32>
    %111 = tpu.matmul %109, %110, %cst_38 {dimension_numbers = #tpu.dot_dimension_numbers<[1], [0], [0], [1], [0, 0, 1, 1], [], []>} : vector<8x128xbf16>, vector<128x128xbf16>, vector<8x128xf32> -> vector<8x128xf32>
    %c0_39 = arith.constant 0 : index
    %c0_40 = arith.constant 0 : index
    %112 = vector.load %arg8[%c0_39, %c0_40] : memref<1x128xf32, #tpu.memory_space<vmem>>, vector<1x128xf32>
    %113 = vector.broadcast %112 : vector<1x128xf32> to vector<8x128xf32>
    %114 = arith.addf %111, %113 : vector<8x128xf32>
    %115 = arith.addf %1, %114 : vector<8x128xf32>
    %c0_41 = arith.constant 0 : index
    %c0_42 = arith.constant 0 : index
    %116 = vector.load %arg9[%c0_41, %c0_42] : memref<1x128xf32, #tpu.memory_space<vmem>>, vector<1x128xf32>
    %c0_43 = arith.constant 0 : index
    %c0_44 = arith.constant 0 : index
    %117 = vector.load %arg10[%c0_43, %c0_44] : memref<1x128xf32, #tpu.memory_space<vmem>>, vector<1x128xf32>
    %cst_45 = arith.constant dense<0.000000e+00> : vector<8xf32>
    %118 = vector.multi_reduction <add>, %115, %cst_45 [1] : vector<8x128xf32> to vector<8xf32>
    %119 = vector.shape_cast %118 : vector<8xf32> to vector<8x1xf32>
    %cst_46 = arith.constant 1.280000e+02 : f32
    %120 = vector.broadcast %cst_46 : f32 to vector<8x1xf32>
    %121 = arith.divf %119, %120 : vector<8x1xf32>
    %122 = vector.broadcast %121 : vector<8x1xf32> to vector<8x128xf32>
    %123 = arith.subf %115, %122 : vector<8x128xf32>
    %124 = arith.mulf %123, %123 : vector<8x128xf32>
    %cst_47 = arith.constant dense<0.000000e+00> : vector<8xf32>
    %125 = vector.multi_reduction <add>, %124, %cst_47 [1] : vector<8x128xf32> to vector<8xf32>
    %126 = vector.shape_cast %125 : vector<8xf32> to vector<8x1xf32>
    %cst_48 = arith.constant 1.280000e+02 : f32
    %127 = vector.broadcast %cst_48 : f32 to vector<8x1xf32>
    %128 = arith.divf %126, %127 : vector<8x1xf32>
    %129 = vector.broadcast %121 : vector<8x1xf32> to vector<8x128xf32>
    %130 = arith.subf %115, %129 : vector<8x128xf32>
    %cst_49 = arith.constant 9.99999974E-6 : f32
    %131 = vector.broadcast %cst_49 : f32 to vector<8x1xf32>
    %132 = arith.addf %128, %131 : vector<8x1xf32>
    %133 = math.rsqrt %132 : vector<8x1xf32>
    %134 = vector.broadcast %133 : vector<8x1xf32> to vector<8x128xf32>
    %135 = arith.mulf %130, %134 : vector<8x128xf32>
    %136 = vector.broadcast %116 : vector<1x128xf32> to vector<8x128xf32>
    %137 = arith.mulf %135, %136 : vector<8x128xf32>
    %138 = vector.broadcast %117 : vector<1x128xf32> to vector<8x128xf32>
    %139 = arith.addf %137, %138 : vector<8x128xf32>
    %c0_50 = arith.constant 0 : index
    %c0_51 = arith.constant 0 : index
    %c0_52 = arith.constant 0 : index
    %140 = vector.load %arg11[%c0_50, %c0_51, %c0_52] : memref<1x8x128xf32, #tpu.memory_space<vmem>>, vector<1x8x128xf32>
    %141 = vector.shape_cast %140 : vector<1x8x128xf32> to vector<8x128xf32>
    %142 = vector.shape_cast %139 : vector<8x128xf32> to vector<1x8x128xf32>
    tpu.vector_store %arg11[%c0_50, %c0_51, %c0_52], %142 {strides = array<i32>} : memref<1x8x128xf32, #tpu.memory_space<vmem>>, vector<1x8x128xf32>,
    %c0_53 = arith.constant 0 : index
    %c0_54 = arith.constant 0 : index
    %c0_55 = arith.constant 0 : index
    %143 = vector.load %arg12[%c0_53, %c0_54, %c0_55] : memref<1x8x32xf32, #tpu.memory_space<vmem>>, vector<1x8x32xf32>
    %144 = vector.shape_cast %143 : vector<1x8x32xf32> to vector<8x32xf32>
    %145 = vector.shape_cast %108 : vector<8x32xf32> to vector<1x8x32xf32>
    tpu.vector_store %arg12[%c0_53, %c0_54, %c0_55], %145 {strides = array<i32>} : memref<1x8x32xf32, #tpu.memory_space<vmem>>, vector<1x8x32xf32>,
    return
  }
  func.func @transform_0(%arg0: i32) -> (i32, i32, i32) {
    %c0_i32 = arith.constant 0 : i32
    %c0_i32_0 = arith.constant 0 : i32
    %c0_i32_1 = arith.constant 0 : i32
    return %arg0, %c0_i32, %c0_i32_0 : i32, i32, i32
  }
  func.func @transform_1(%arg0: i32) -> (i32, i32, i32) {
    %c0_i32 = arith.constant 0 : i32
    %c0_i32_0 = arith.constant 0 : i32
    %c0_i32_1 = arith.constant 0 : i32
    return %arg0, %c0_i32, %c0_i32_0 : i32, i32, i32
  }
  func.func @transform_2(%arg0: i32) -> (i32, i32) {
    %c0_i32 = arith.constant 0 : i32
    %c0_i32_0 = arith.constant 0 : i32
    %c0_i32_1 = arith.constant 0 : i32
    return %c0_i32, %c0_i32_0 : i32, i32
  }
  func.func @transform_3(%arg0: i32) -> (i32, i32) {
    %c0_i32 = arith.constant 0 : i32
    %c0_i32_0 = arith.constant 0 : i32
    %c0_i32_1 = arith.constant 0 : i32
    return %c0_i32, %c0_i32_0 : i32, i32
  }
  func.func @transform_4(%arg0: i32) -> (i32, i32) {
    %c0_i32 = arith.constant 0 : i32
    %c0_i32_0 = arith.constant 0 : i32
    %c0_i32_1 = arith.constant 0 : i32
    return %c0_i32, %c0_i32_0 : i32, i32
  }
  func.func @transform_5(%arg0: i32) -> (i32, i32) {
    %c0_i32 = arith.constant 0 : i32
    %c0_i32_0 = arith.constant 0 : i32
    %c0_i32_1 = arith.constant 0 : i32
    return %c0_i32, %c0_i32_0 : i32, i32
  }
  func.func @transform_6(%arg0: i32) -> (i32, i32) {
    %c0_i32 = arith.constant 0 : i32
    %c0_i32_0 = arith.constant 0 : i32
    %c0_i32_1 = arith.constant 0 : i32
    return %c0_i32, %c0_i32_0 : i32, i32
  }
  func.func @transform_7(%arg0: i32) -> (i32, i32) {
    %c0_i32 = arith.constant 0 : i32
    %c0_i32_0 = arith.constant 0 : i32
    %c0_i32_1 = arith.constant 0 : i32
    return %c0_i32, %c0_i32_0 : i32, i32
  }
  func.func @transform_8(%arg0: i32) -> (i32, i32) {
    %c0_i32 = arith.constant 0 : i32
    %c0_i32_0 = arith.constant 0 : i32
    %c0_i32_1 = arith.constant 0 : i32
    return %c0_i32, %c0_i32_0 : i32, i32
  }
  func.func @transform_9(%arg0: i32) -> (i32, i32) {
    %c0_i32 = arith.constant 0 : i32
    %c0_i32_0 = arith.constant 0 : i32
    %c0_i32_1 = arith.constant 0 : i32
    return %c0_i32, %c0_i32_0 : i32, i32
  }
  func.func @transform_10(%arg0: i32) -> (i32, i32, i32) {
    %c0_i32 = arith.constant 0 : i32
    %c0_i32_0 = arith.constant 0 : i32
    %c0_i32_1 = arith.constant 0 : i32
    return %arg0, %c0_i32, %c0_i32_0 : i32, i32, i32
  }
  func.func @transform_11(%arg0: i32) -> (i32, i32, i32) {
    %c0_i32 = arith.constant 0 : i32
    %c0_i32_0 = arith.constant 0 : i32
    %c0_i32_1 = arith.constant 0 : i32
    return %arg0, %c0_i32, %c0_i32_0 : i32, i32, i32
  }
}

module attributes {stable_mosaic.version = 11 : i64} {
  func.func @_self_attn_block_kernel(%arg0: i32, %arg1: memref<1x8x128xf32, #tpu.memory_space<vmem>>, %arg2: memref<128x384xbf16, #tpu.memory_space<vmem>>, %arg3: memref<1x384xf32, #tpu.memory_space<vmem>>, %arg4: memref<128x128xbf16, #tpu.memory_space<vmem>>, %arg5: memref<1x128xf32, #tpu.memory_space<vmem>>, %arg6: memref<1x128xf32, #tpu.memory_space<vmem>>, %arg7: memref<1x128xf32, #tpu.memory_space<vmem>>, %arg8: memref<1x8x128xf32, #tpu.memory_space<vmem>>) attributes {dimension_semantics = [#tpu.dimension_semantics<parallel>], iteration_bounds = array<i64: 2>, scalar_prefetch = 0 : i64, scratch_operands = 0 : i64, tpu.core_type = #tpu.core_type<tc>, window_params = [{transform_indices = @transform_0, window_bounds = array<i64: 1, 8, 128>}, {pipeline_mode = #tpu.pipeline_mode<synchronous>, transform_indices = @transform_1, window_bounds = array<i64: 128, 384>}, {pipeline_mode = #tpu.pipeline_mode<synchronous>, transform_indices = @transform_2, window_bounds = array<i64: 1, 384>}, {pipeline_mode = #tpu.pipeline_mode<synchronous>, transform_indices = @transform_3, window_bounds = array<i64: 128, 128>}, {pipeline_mode = #tpu.pipeline_mode<synchronous>, transform_indices = @transform_4, window_bounds = array<i64: 1, 128>}, {pipeline_mode = #tpu.pipeline_mode<synchronous>, transform_indices = @transform_5, window_bounds = array<i64: 1, 128>}, {pipeline_mode = #tpu.pipeline_mode<synchronous>, transform_indices = @transform_6, window_bounds = array<i64: 1, 128>}, {transform_indices = @transform_7, window_bounds = array<i64: 1, 8, 128>}]} {
    %c0 = arith.constant 0 : index
    %c0_0 = arith.constant 0 : index
    %c0_1 = arith.constant 0 : index
    %0 = vector.load %arg1[%c0, %c0_0, %c0_1] : memref<1x8x128xf32, #tpu.memory_space<vmem>>, vector<1x8x128xf32>
    %1 = vector.shape_cast %0 : vector<1x8x128xf32> to vector<8x128xf32>
    %2 = arith.truncf %1 : vector<8x128xf32> to vector<8x128xbf16>
    %c0_2 = arith.constant 0 : index
    %c0_3 = arith.constant 0 : index
    %3 = vector.load %arg2[%c0_2, %c0_3] : memref<128x384xbf16, #tpu.memory_space<vmem>>, vector<128x384xbf16>
    %cst = arith.constant dense<0.000000e+00> : vector<8x384xf32>
    %4 = tpu.matmul %2, %3, %cst {dimension_numbers = #tpu.dot_dimension_numbers<[1], [0], [0], [1], [0, 0, 1, 1], [], []>} : vector<8x128xbf16>, vector<128x384xbf16>, vector<8x384xf32> -> vector<8x384xf32>
    %c0_4 = arith.constant 0 : index
    %c0_5 = arith.constant 0 : index
    %5 = vector.load %arg3[%c0_4, %c0_5] : memref<1x384xf32, #tpu.memory_space<vmem>>, vector<1x384xf32>
    %6 = vector.broadcast %5 : vector<1x384xf32> to vector<8x384xf32>
    %7 = arith.addf %4, %6 : vector<8x384xf32>
    %8 = vector.extract_strided_slice %7 {offsets = [0, 0], sizes = [8, 128], strides = [1, 1]} : vector<8x384xf32> to vector<8x128xf32>
    %9 = vector.extract_strided_slice %7 {offsets = [0, 128], sizes = [8, 128], strides = [1, 1]} : vector<8x384xf32> to vector<8x128xf32>
    %10 = vector.extract_strided_slice %7 {offsets = [0, 256], sizes = [8, 128], strides = [1, 1]} : vector<8x384xf32> to vector<8x128xf32>
    %11 = vector.extract_strided_slice %8 {offsets = [0, 0], sizes = [8, 32], strides = [1, 1]} : vector<8x128xf32> to vector<8x32xf32>
    %12 = arith.truncf %11 : vector<8x32xf32> to vector<8x32xbf16>
    %13 = vector.extract_strided_slice %9 {offsets = [0, 0], sizes = [8, 32], strides = [1, 1]} : vector<8x128xf32> to vector<8x32xf32>
    %14 = arith.truncf %13 : vector<8x32xf32> to vector<8x32xbf16>
    %15 = vector.extract_strided_slice %10 {offsets = [0, 0], sizes = [8, 32], strides = [1, 1]} : vector<8x128xf32> to vector<8x32xf32>
    %16 = arith.truncf %15 : vector<8x32xf32> to vector<8x32xbf16>
    %cst_6 = arith.constant dense<0.000000e+00> : vector<8x8xf32>
    %17 = tpu.matmul %12, %14, %cst_6 {dimension_numbers = #tpu.dot_dimension_numbers<[1], [1], [0], [0], [0, 0, 1, 0], [], []>} : vector<8x32xbf16>, vector<8x32xbf16>, vector<8x8xf32> -> vector<8x8xf32>
    %cst_7 = arith.constant 0.176776692 : f32
    %18 = vector.broadcast %cst_7 : f32 to vector<8x8xf32>
    %19 = arith.mulf %17, %18 : vector<8x8xf32>
    %cst_8 = arith.constant dense<0xFF800000> : vector<8xf32>
    %20 = vector.multi_reduction <maximumf>, %19, %cst_8 [1] : vector<8x8xf32> to vector<8xf32>
    %21 = vector.shape_cast %20 : vector<8xf32> to vector<8x1xf32>
    %22 = vector.broadcast %21 : vector<8x1xf32> to vector<8x8xf32>
    %23 = arith.subf %19, %22 : vector<8x8xf32>
    %24 = math.exp %23 : vector<8x8xf32>
    %cst_9 = arith.constant dense<0.000000e+00> : vector<8xf32>
    %25 = vector.multi_reduction <add>, %24, %cst_9 [1] : vector<8x8xf32> to vector<8xf32>
    %26 = vector.shape_cast %25 : vector<8xf32> to vector<8x1xf32>
    %27 = tpu.reciprocal %26 {approx = true} : vector<8x1xf32> -> vector<8x1xf32>
    %28 = vector.broadcast %27 : vector<8x1xf32> to vector<8x8xf32>
    %29 = arith.mulf %24, %28 : vector<8x8xf32>
    %30 = arith.truncf %29 : vector<8x8xf32> to vector<8x8xbf16>
    %cst_10 = arith.constant dense<0.000000e+00> : vector<8x32xf32>
    %31 = tpu.matmul %30, %16, %cst_10 {dimension_numbers = #tpu.dot_dimension_numbers<[1], [0], [0], [1], [0, 0, 1, 1], [], []>} : vector<8x8xbf16>, vector<8x32xbf16>, vector<8x32xf32> -> vector<8x32xf32>
    %32 = vector.extract_strided_slice %8 {offsets = [0, 32], sizes = [8, 32], strides = [1, 1]} : vector<8x128xf32> to vector<8x32xf32>
    %33 = arith.truncf %32 : vector<8x32xf32> to vector<8x32xbf16>
    %34 = vector.extract_strided_slice %9 {offsets = [0, 32], sizes = [8, 32], strides = [1, 1]} : vector<8x128xf32> to vector<8x32xf32>
    %35 = arith.truncf %34 : vector<8x32xf32> to vector<8x32xbf16>
    %36 = vector.extract_strided_slice %10 {offsets = [0, 32], sizes = [8, 32], strides = [1, 1]} : vector<8x128xf32> to vector<8x32xf32>
    %37 = arith.truncf %36 : vector<8x32xf32> to vector<8x32xbf16>
    %cst_11 = arith.constant dense<0.000000e+00> : vector<8x8xf32>
    %38 = tpu.matmul %33, %35, %cst_11 {dimension_numbers = #tpu.dot_dimension_numbers<[1], [1], [0], [0], [0, 0, 1, 0], [], []>} : vector<8x32xbf16>, vector<8x32xbf16>, vector<8x8xf32> -> vector<8x8xf32>
    %cst_12 = arith.constant 0.176776692 : f32
    %39 = vector.broadcast %cst_12 : f32 to vector<8x8xf32>
    %40 = arith.mulf %38, %39 : vector<8x8xf32>
    %cst_13 = arith.constant dense<0xFF800000> : vector<8xf32>
    %41 = vector.multi_reduction <maximumf>, %40, %cst_13 [1] : vector<8x8xf32> to vector<8xf32>
    %42 = vector.shape_cast %41 : vector<8xf32> to vector<8x1xf32>
    %43 = vector.broadcast %42 : vector<8x1xf32> to vector<8x8xf32>
    %44 = arith.subf %40, %43 : vector<8x8xf32>
    %45 = math.exp %44 : vector<8x8xf32>
    %cst_14 = arith.constant dense<0.000000e+00> : vector<8xf32>
    %46 = vector.multi_reduction <add>, %45, %cst_14 [1] : vector<8x8xf32> to vector<8xf32>
    %47 = vector.shape_cast %46 : vector<8xf32> to vector<8x1xf32>
    %48 = tpu.reciprocal %47 {approx = true} : vector<8x1xf32> -> vector<8x1xf32>
    %49 = vector.broadcast %48 : vector<8x1xf32> to vector<8x8xf32>
    %50 = arith.mulf %45, %49 : vector<8x8xf32>
    %51 = arith.truncf %50 : vector<8x8xf32> to vector<8x8xbf16>
    %cst_15 = arith.constant dense<0.000000e+00> : vector<8x32xf32>
    %52 = tpu.matmul %51, %37, %cst_15 {dimension_numbers = #tpu.dot_dimension_numbers<[1], [0], [0], [1], [0, 0, 1, 1], [], []>} : vector<8x8xbf16>, vector<8x32xbf16>, vector<8x32xf32> -> vector<8x32xf32>
    %53 = vector.extract_strided_slice %8 {offsets = [0, 64], sizes = [8, 32], strides = [1, 1]} : vector<8x128xf32> to vector<8x32xf32>
    %54 = arith.truncf %53 : vector<8x32xf32> to vector<8x32xbf16>
    %55 = vector.extract_strided_slice %9 {offsets = [0, 64], sizes = [8, 32], strides = [1, 1]} : vector<8x128xf32> to vector<8x32xf32>
    %56 = arith.truncf %55 : vector<8x32xf32> to vector<8x32xbf16>
    %57 = vector.extract_strided_slice %10 {offsets = [0, 64], sizes = [8, 32], strides = [1, 1]} : vector<8x128xf32> to vector<8x32xf32>
    %58 = arith.truncf %57 : vector<8x32xf32> to vector<8x32xbf16>
    %cst_16 = arith.constant dense<0.000000e+00> : vector<8x8xf32>
    %59 = tpu.matmul %54, %56, %cst_16 {dimension_numbers = #tpu.dot_dimension_numbers<[1], [1], [0], [0], [0, 0, 1, 0], [], []>} : vector<8x32xbf16>, vector<8x32xbf16>, vector<8x8xf32> -> vector<8x8xf32>
    %cst_17 = arith.constant 0.176776692 : f32
    %60 = vector.broadcast %cst_17 : f32 to vector<8x8xf32>
    %61 = arith.mulf %59, %60 : vector<8x8xf32>
    %cst_18 = arith.constant dense<0xFF800000> : vector<8xf32>
    %62 = vector.multi_reduction <maximumf>, %61, %cst_18 [1] : vector<8x8xf32> to vector<8xf32>
    %63 = vector.shape_cast %62 : vector<8xf32> to vector<8x1xf32>
    %64 = vector.broadcast %63 : vector<8x1xf32> to vector<8x8xf32>
    %65 = arith.subf %61, %64 : vector<8x8xf32>
    %66 = math.exp %65 : vector<8x8xf32>
    %cst_19 = arith.constant dense<0.000000e+00> : vector<8xf32>
    %67 = vector.multi_reduction <add>, %66, %cst_19 [1] : vector<8x8xf32> to vector<8xf32>
    %68 = vector.shape_cast %67 : vector<8xf32> to vector<8x1xf32>
    %69 = tpu.reciprocal %68 {approx = true} : vector<8x1xf32> -> vector<8x1xf32>
    %70 = vector.broadcast %69 : vector<8x1xf32> to vector<8x8xf32>
    %71 = arith.mulf %66, %70 : vector<8x8xf32>
    %72 = arith.truncf %71 : vector<8x8xf32> to vector<8x8xbf16>
    %cst_20 = arith.constant dense<0.000000e+00> : vector<8x32xf32>
    %73 = tpu.matmul %72, %58, %cst_20 {dimension_numbers = #tpu.dot_dimension_numbers<[1], [0], [0], [1], [0, 0, 1, 1], [], []>} : vector<8x8xbf16>, vector<8x32xbf16>, vector<8x32xf32> -> vector<8x32xf32>
    %74 = vector.extract_strided_slice %8 {offsets = [0, 96], sizes = [8, 32], strides = [1, 1]} : vector<8x128xf32> to vector<8x32xf32>
    %75 = arith.truncf %74 : vector<8x32xf32> to vector<8x32xbf16>
    %76 = vector.extract_strided_slice %9 {offsets = [0, 96], sizes = [8, 32], strides = [1, 1]} : vector<8x128xf32> to vector<8x32xf32>
    %77 = arith.truncf %76 : vector<8x32xf32> to vector<8x32xbf16>
    %78 = vector.extract_strided_slice %10 {offsets = [0, 96], sizes = [8, 32], strides = [1, 1]} : vector<8x128xf32> to vector<8x32xf32>
    %79 = arith.truncf %78 : vector<8x32xf32> to vector<8x32xbf16>
    %cst_21 = arith.constant dense<0.000000e+00> : vector<8x8xf32>
    %80 = tpu.matmul %75, %77, %cst_21 {dimension_numbers = #tpu.dot_dimension_numbers<[1], [1], [0], [0], [0, 0, 1, 0], [], []>} : vector<8x32xbf16>, vector<8x32xbf16>, vector<8x8xf32> -> vector<8x8xf32>
    %cst_22 = arith.constant 0.176776692 : f32
    %81 = vector.broadcast %cst_22 : f32 to vector<8x8xf32>
    %82 = arith.mulf %80, %81 : vector<8x8xf32>
    %cst_23 = arith.constant dense<0xFF800000> : vector<8xf32>
    %83 = vector.multi_reduction <maximumf>, %82, %cst_23 [1] : vector<8x8xf32> to vector<8xf32>
    %84 = vector.shape_cast %83 : vector<8xf32> to vector<8x1xf32>
    %85 = vector.broadcast %84 : vector<8x1xf32> to vector<8x8xf32>
    %86 = arith.subf %82, %85 : vector<8x8xf32>
    %87 = math.exp %86 : vector<8x8xf32>
    %cst_24 = arith.constant dense<0.000000e+00> : vector<8xf32>
    %88 = vector.multi_reduction <add>, %87, %cst_24 [1] : vector<8x8xf32> to vector<8xf32>
    %89 = vector.shape_cast %88 : vector<8xf32> to vector<8x1xf32>
    %90 = tpu.reciprocal %89 {approx = true} : vector<8x1xf32> -> vector<8x1xf32>
    %91 = vector.broadcast %90 : vector<8x1xf32> to vector<8x8xf32>
    %92 = arith.mulf %87, %91 : vector<8x8xf32>
    %93 = arith.truncf %92 : vector<8x8xf32> to vector<8x8xbf16>
    %cst_25 = arith.constant dense<0.000000e+00> : vector<8x32xf32>
    %94 = tpu.matmul %93, %79, %cst_25 {dimension_numbers = #tpu.dot_dimension_numbers<[1], [0], [0], [1], [0, 0, 1, 1], [], []>} : vector<8x8xbf16>, vector<8x32xbf16>, vector<8x32xf32> -> vector<8x32xf32>
    %95 = tpu.concatenate %31, %52, %73, %94 in 1 : vector<8x32xf32>, vector<8x32xf32>, vector<8x32xf32>, vector<8x32xf32> -> vector<8x128xf32>
    %96 = arith.truncf %95 : vector<8x128xf32> to vector<8x128xbf16>
    %c0_26 = arith.constant 0 : index
    %c0_27 = arith.constant 0 : index
    %97 = vector.load %arg4[%c0_26, %c0_27] : memref<128x128xbf16, #tpu.memory_space<vmem>>, vector<128x128xbf16>
    %cst_28 = arith.constant dense<0.000000e+00> : vector<8x128xf32>
    %98 = tpu.matmul %96, %97, %cst_28 {dimension_numbers = #tpu.dot_dimension_numbers<[1], [0], [0], [1], [0, 0, 1, 1], [], []>} : vector<8x128xbf16>, vector<128x128xbf16>, vector<8x128xf32> -> vector<8x128xf32>
    %c0_29 = arith.constant 0 : index
    %c0_30 = arith.constant 0 : index
    %99 = vector.load %arg5[%c0_29, %c0_30] : memref<1x128xf32, #tpu.memory_space<vmem>>, vector<1x128xf32>
    %100 = vector.broadcast %99 : vector<1x128xf32> to vector<8x128xf32>
    %101 = arith.addf %98, %100 : vector<8x128xf32>
    %102 = arith.addf %1, %101 : vector<8x128xf32>
    %c0_31 = arith.constant 0 : index
    %c0_32 = arith.constant 0 : index
    %103 = vector.load %arg6[%c0_31, %c0_32] : memref<1x128xf32, #tpu.memory_space<vmem>>, vector<1x128xf32>
    %c0_33 = arith.constant 0 : index
    %c0_34 = arith.constant 0 : index
    %104 = vector.load %arg7[%c0_33, %c0_34] : memref<1x128xf32, #tpu.memory_space<vmem>>, vector<1x128xf32>
    %cst_35 = arith.constant dense<0.000000e+00> : vector<8xf32>
    %105 = vector.multi_reduction <add>, %102, %cst_35 [1] : vector<8x128xf32> to vector<8xf32>
    %106 = vector.shape_cast %105 : vector<8xf32> to vector<8x1xf32>
    %cst_36 = arith.constant 1.280000e+02 : f32
    %107 = vector.broadcast %cst_36 : f32 to vector<8x1xf32>
    %108 = arith.divf %106, %107 : vector<8x1xf32>
    %109 = vector.broadcast %108 : vector<8x1xf32> to vector<8x128xf32>
    %110 = arith.subf %102, %109 : vector<8x128xf32>
    %111 = arith.mulf %110, %110 : vector<8x128xf32>
    %cst_37 = arith.constant dense<0.000000e+00> : vector<8xf32>
    %112 = vector.multi_reduction <add>, %111, %cst_37 [1] : vector<8x128xf32> to vector<8xf32>
    %113 = vector.shape_cast %112 : vector<8xf32> to vector<8x1xf32>
    %cst_38 = arith.constant 1.280000e+02 : f32
    %114 = vector.broadcast %cst_38 : f32 to vector<8x1xf32>
    %115 = arith.divf %113, %114 : vector<8x1xf32>
    %116 = vector.broadcast %108 : vector<8x1xf32> to vector<8x128xf32>
    %117 = arith.subf %102, %116 : vector<8x128xf32>
    %cst_39 = arith.constant 9.99999974E-6 : f32
    %118 = vector.broadcast %cst_39 : f32 to vector<8x1xf32>
    %119 = arith.addf %115, %118 : vector<8x1xf32>
    %120 = math.rsqrt %119 : vector<8x1xf32>
    %121 = vector.broadcast %120 : vector<8x1xf32> to vector<8x128xf32>
    %122 = arith.mulf %117, %121 : vector<8x128xf32>
    %123 = vector.broadcast %103 : vector<1x128xf32> to vector<8x128xf32>
    %124 = arith.mulf %122, %123 : vector<8x128xf32>
    %125 = vector.broadcast %104 : vector<1x128xf32> to vector<8x128xf32>
    %126 = arith.addf %124, %125 : vector<8x128xf32>
    %c0_40 = arith.constant 0 : index
    %c0_41 = arith.constant 0 : index
    %c0_42 = arith.constant 0 : index
    %127 = vector.load %arg8[%c0_40, %c0_41, %c0_42] : memref<1x8x128xf32, #tpu.memory_space<vmem>>, vector<1x8x128xf32>
    %128 = vector.shape_cast %127 : vector<1x8x128xf32> to vector<8x128xf32>
    %129 = vector.shape_cast %126 : vector<8x128xf32> to vector<1x8x128xf32>
    tpu.vector_store %arg8[%c0_40, %c0_41, %c0_42], %129 {strides = array<i32>} : memref<1x8x128xf32, #tpu.memory_space<vmem>>, vector<1x8x128xf32>,
    return
  }
  func.func @transform_0(%arg0: i32) -> (i32, i32, i32) {
    %c0_i32 = arith.constant 0 : i32
    %c0_i32_0 = arith.constant 0 : i32
    %c0_i32_1 = arith.constant 0 : i32
    return %arg0, %c0_i32, %c0_i32_0 : i32, i32, i32
  }
  func.func @transform_1(%arg0: i32) -> (i32, i32) {
    %c0_i32 = arith.constant 0 : i32
    %c0_i32_0 = arith.constant 0 : i32
    %c0_i32_1 = arith.constant 0 : i32
    return %c0_i32, %c0_i32_0 : i32, i32
  }
  func.func @transform_2(%arg0: i32) -> (i32, i32) {
    %c0_i32 = arith.constant 0 : i32
    %c0_i32_0 = arith.constant 0 : i32
    %c0_i32_1 = arith.constant 0 : i32
    return %c0_i32, %c0_i32_0 : i32, i32
  }
  func.func @transform_3(%arg0: i32) -> (i32, i32) {
    %c0_i32 = arith.constant 0 : i32
    %c0_i32_0 = arith.constant 0 : i32
    %c0_i32_1 = arith.constant 0 : i32
    return %c0_i32, %c0_i32_0 : i32, i32
  }
  func.func @transform_4(%arg0: i32) -> (i32, i32) {
    %c0_i32 = arith.constant 0 : i32
    %c0_i32_0 = arith.constant 0 : i32
    %c0_i32_1 = arith.constant 0 : i32
    return %c0_i32, %c0_i32_0 : i32, i32
  }
  func.func @transform_5(%arg0: i32) -> (i32, i32) {
    %c0_i32 = arith.constant 0 : i32
    %c0_i32_0 = arith.constant 0 : i32
    %c0_i32_1 = arith.constant 0 : i32
    return %c0_i32, %c0_i32_0 : i32, i32
  }
  func.func @transform_6(%arg0: i32) -> (i32, i32) {
    %c0_i32 = arith.constant 0 : i32
    %c0_i32_0 = arith.constant 0 : i32
    %c0_i32_1 = arith.constant 0 : i32
    return %c0_i32, %c0_i32_0 : i32, i32
  }
  func.func @transform_7(%arg0: i32) -> (i32, i32, i32) {
    %c0_i32 = arith.constant 0 : i32
    %c0_i32_0 = arith.constant 0 : i32
    %c0_i32_1 = arith.constant 0 : i32
    return %arg0, %c0_i32, %c0_i32_0 : i32, i32, i32
  }
}

module attributes {stable_mosaic.version = 11 : i64} {
  func.func @_self_attn_block_kernel(%arg0: i32, %arg1: memref<1x8x128xf32, #tpu.memory_space<vmem>>, %arg2: memref<128x384xbf16, #tpu.memory_space<vmem>>, %arg3: memref<1x384xf32, #tpu.memory_space<vmem>>, %arg4: memref<128x128xbf16, #tpu.memory_space<vmem>>, %arg5: memref<1x128xf32, #tpu.memory_space<vmem>>, %arg6: memref<1x128xf32, #tpu.memory_space<vmem>>, %arg7: memref<1x128xf32, #tpu.memory_space<vmem>>, %arg8: memref<1x8x128xf32, #tpu.memory_space<vmem>>) attributes {dimension_semantics = [#tpu.dimension_semantics<parallel>], iteration_bounds = array<i64: 2>, scalar_prefetch = 0 : i64, scratch_operands = 0 : i64, tpu.core_type = #tpu.core_type<tc>, window_params = [{transform_indices = @transform_0, window_bounds = array<i64: 1, 8, 128>}, {pipeline_mode = #tpu.pipeline_mode<synchronous>, transform_indices = @transform_1, window_bounds = array<i64: 128, 384>}, {pipeline_mode = #tpu.pipeline_mode<synchronous>, transform_indices = @transform_2, window_bounds = array<i64: 1, 384>}, {pipeline_mode = #tpu.pipeline_mode<synchronous>, transform_indices = @transform_3, window_bounds = array<i64: 128, 128>}, {pipeline_mode = #tpu.pipeline_mode<synchronous>, transform_indices = @transform_4, window_bounds = array<i64: 1, 128>}, {pipeline_mode = #tpu.pipeline_mode<synchronous>, transform_indices = @transform_5, window_bounds = array<i64: 1, 128>}, {pipeline_mode = #tpu.pipeline_mode<synchronous>, transform_indices = @transform_6, window_bounds = array<i64: 1, 128>}, {transform_indices = @transform_7, window_bounds = array<i64: 1, 8, 128>}]} {
    %c0 = arith.constant 0 : index
    %c0_0 = arith.constant 0 : index
    %c0_1 = arith.constant 0 : index
    %0 = vector.load %arg1[%c0, %c0_0, %c0_1] : memref<1x8x128xf32, #tpu.memory_space<vmem>>, vector<1x8x128xf32>
    %1 = vector.shape_cast %0 : vector<1x8x128xf32> to vector<8x128xf32>
    %2 = arith.truncf %1 : vector<8x128xf32> to vector<8x128xbf16>
    %c0_2 = arith.constant 0 : index
    %c0_3 = arith.constant 0 : index
    %3 = vector.load %arg2[%c0_2, %c0_3] : memref<128x384xbf16, #tpu.memory_space<vmem>>, vector<128x384xbf16>
    %cst = arith.constant dense<0.000000e+00> : vector<8x384xf32>
    %4 = tpu.matmul %2, %3, %cst {dimension_numbers = #tpu.dot_dimension_numbers<[1], [0], [0], [1], [0, 0, 1, 1], [], []>} : vector<8x128xbf16>, vector<128x384xbf16>, vector<8x384xf32> -> vector<8x384xf32>
    %c0_4 = arith.constant 0 : index
    %c0_5 = arith.constant 0 : index
    %5 = vector.load %arg3[%c0_4, %c0_5] : memref<1x384xf32, #tpu.memory_space<vmem>>, vector<1x384xf32>
    %6 = vector.broadcast %5 : vector<1x384xf32> to vector<8x384xf32>
    %7 = arith.addf %4, %6 : vector<8x384xf32>
    %8 = vector.extract_strided_slice %7 {offsets = [0, 0], sizes = [8, 128], strides = [1, 1]} : vector<8x384xf32> to vector<8x128xf32>
    %9 = vector.extract_strided_slice %7 {offsets = [0, 128], sizes = [8, 128], strides = [1, 1]} : vector<8x384xf32> to vector<8x128xf32>
    %10 = vector.extract_strided_slice %7 {offsets = [0, 256], sizes = [8, 128], strides = [1, 1]} : vector<8x384xf32> to vector<8x128xf32>
    %11 = vector.extract_strided_slice %8 {offsets = [0, 0], sizes = [8, 32], strides = [1, 1]} : vector<8x128xf32> to vector<8x32xf32>
    %12 = arith.truncf %11 : vector<8x32xf32> to vector<8x32xbf16>
    %13 = vector.extract_strided_slice %9 {offsets = [0, 0], sizes = [8, 32], strides = [1, 1]} : vector<8x128xf32> to vector<8x32xf32>
    %14 = arith.truncf %13 : vector<8x32xf32> to vector<8x32xbf16>
    %15 = vector.extract_strided_slice %10 {offsets = [0, 0], sizes = [8, 32], strides = [1, 1]} : vector<8x128xf32> to vector<8x32xf32>
    %16 = arith.truncf %15 : vector<8x32xf32> to vector<8x32xbf16>
    %cst_6 = arith.constant dense<0.000000e+00> : vector<8x8xf32>
    %17 = tpu.matmul %12, %14, %cst_6 {dimension_numbers = #tpu.dot_dimension_numbers<[1], [1], [0], [0], [0, 0, 1, 0], [], []>} : vector<8x32xbf16>, vector<8x32xbf16>, vector<8x8xf32> -> vector<8x8xf32>
    %cst_7 = arith.constant 0.176776692 : f32
    %18 = vector.broadcast %cst_7 : f32 to vector<8x8xf32>
    %19 = arith.mulf %17, %18 : vector<8x8xf32>
    %cst_8 = arith.constant dense<0xFF800000> : vector<8xf32>
    %20 = vector.multi_reduction <maximumf>, %19, %cst_8 [1] : vector<8x8xf32> to vector<8xf32>
    %21 = vector.shape_cast %20 : vector<8xf32> to vector<8x1xf32>
    %22 = vector.broadcast %21 : vector<8x1xf32> to vector<8x8xf32>
    %23 = arith.subf %19, %22 : vector<8x8xf32>
    %24 = math.exp %23 : vector<8x8xf32>
    %cst_9 = arith.constant dense<0.000000e+00> : vector<8xf32>
    %25 = vector.multi_reduction <add>, %24, %cst_9 [1] : vector<8x8xf32> to vector<8xf32>
    %26 = vector.shape_cast %25 : vector<8xf32> to vector<8x1xf32>
    %27 = tpu.reciprocal %26 {approx = true} : vector<8x1xf32> -> vector<8x1xf32>
    %28 = vector.broadcast %27 : vector<8x1xf32> to vector<8x8xf32>
    %29 = arith.mulf %24, %28 : vector<8x8xf32>
    %30 = arith.truncf %29 : vector<8x8xf32> to vector<8x8xbf16>
    %cst_10 = arith.constant dense<0.000000e+00> : vector<8x32xf32>
    %31 = tpu.matmul %30, %16, %cst_10 {dimension_numbers = #tpu.dot_dimension_numbers<[1], [0], [0], [1], [0, 0, 1, 1], [], []>} : vector<8x8xbf16>, vector<8x32xbf16>, vector<8x32xf32> -> vector<8x32xf32>
    %32 = vector.extract_strided_slice %8 {offsets = [0, 32], sizes = [8, 32], strides = [1, 1]} : vector<8x128xf32> to vector<8x32xf32>
    %33 = arith.truncf %32 : vector<8x32xf32> to vector<8x32xbf16>
    %34 = vector.extract_strided_slice %9 {offsets = [0, 32], sizes = [8, 32], strides = [1, 1]} : vector<8x128xf32> to vector<8x32xf32>
    %35 = arith.truncf %34 : vector<8x32xf32> to vector<8x32xbf16>
    %36 = vector.extract_strided_slice %10 {offsets = [0, 32], sizes = [8, 32], strides = [1, 1]} : vector<8x128xf32> to vector<8x32xf32>
    %37 = arith.truncf %36 : vector<8x32xf32> to vector<8x32xbf16>
    %cst_11 = arith.constant dense<0.000000e+00> : vector<8x8xf32>
    %38 = tpu.matmul %33, %35, %cst_11 {dimension_numbers = #tpu.dot_dimension_numbers<[1], [1], [0], [0], [0, 0, 1, 0], [], []>} : vector<8x32xbf16>, vector<8x32xbf16>, vector<8x8xf32> -> vector<8x8xf32>
    %cst_12 = arith.constant 0.176776692 : f32
    %39 = vector.broadcast %cst_12 : f32 to vector<8x8xf32>
    %40 = arith.mulf %38, %39 : vector<8x8xf32>
    %cst_13 = arith.constant dense<0xFF800000> : vector<8xf32>
    %41 = vector.multi_reduction <maximumf>, %40, %cst_13 [1] : vector<8x8xf32> to vector<8xf32>
    %42 = vector.shape_cast %41 : vector<8xf32> to vector<8x1xf32>
    %43 = vector.broadcast %42 : vector<8x1xf32> to vector<8x8xf32>
    %44 = arith.subf %40, %43 : vector<8x8xf32>
    %45 = math.exp %44 : vector<8x8xf32>
    %cst_14 = arith.constant dense<0.000000e+00> : vector<8xf32>
    %46 = vector.multi_reduction <add>, %45, %cst_14 [1] : vector<8x8xf32> to vector<8xf32>
    %47 = vector.shape_cast %46 : vector<8xf32> to vector<8x1xf32>
    %48 = tpu.reciprocal %47 {approx = true} : vector<8x1xf32> -> vector<8x1xf32>
    %49 = vector.broadcast %48 : vector<8x1xf32> to vector<8x8xf32>
    %50 = arith.mulf %45, %49 : vector<8x8xf32>
    %51 = arith.truncf %50 : vector<8x8xf32> to vector<8x8xbf16>
    %cst_15 = arith.constant dense<0.000000e+00> : vector<8x32xf32>
    %52 = tpu.matmul %51, %37, %cst_15 {dimension_numbers = #tpu.dot_dimension_numbers<[1], [0], [0], [1], [0, 0, 1, 1], [], []>} : vector<8x8xbf16>, vector<8x32xbf16>, vector<8x32xf32> -> vector<8x32xf32>
    %53 = vector.extract_strided_slice %8 {offsets = [0, 64], sizes = [8, 32], strides = [1, 1]} : vector<8x128xf32> to vector<8x32xf32>
    %54 = arith.truncf %53 : vector<8x32xf32> to vector<8x32xbf16>
    %55 = vector.extract_strided_slice %9 {offsets = [0, 64], sizes = [8, 32], strides = [1, 1]} : vector<8x128xf32> to vector<8x32xf32>
    %56 = arith.truncf %55 : vector<8x32xf32> to vector<8x32xbf16>
    %57 = vector.extract_strided_slice %10 {offsets = [0, 64], sizes = [8, 32], strides = [1, 1]} : vector<8x128xf32> to vector<8x32xf32>
    %58 = arith.truncf %57 : vector<8x32xf32> to vector<8x32xbf16>
    %cst_16 = arith.constant dense<0.000000e+00> : vector<8x8xf32>
    %59 = tpu.matmul %54, %56, %cst_16 {dimension_numbers = #tpu.dot_dimension_numbers<[1], [1], [0], [0], [0, 0, 1, 0], [], []>} : vector<8x32xbf16>, vector<8x32xbf16>, vector<8x8xf32> -> vector<8x8xf32>
    %cst_17 = arith.constant 0.176776692 : f32
    %60 = vector.broadcast %cst_17 : f32 to vector<8x8xf32>
    %61 = arith.mulf %59, %60 : vector<8x8xf32>
    %cst_18 = arith.constant dense<0xFF800000> : vector<8xf32>
    %62 = vector.multi_reduction <maximumf>, %61, %cst_18 [1] : vector<8x8xf32> to vector<8xf32>
    %63 = vector.shape_cast %62 : vector<8xf32> to vector<8x1xf32>
    %64 = vector.broadcast %63 : vector<8x1xf32> to vector<8x8xf32>
    %65 = arith.subf %61, %64 : vector<8x8xf32>
    %66 = math.exp %65 : vector<8x8xf32>
    %cst_19 = arith.constant dense<0.000000e+00> : vector<8xf32>
    %67 = vector.multi_reduction <add>, %66, %cst_19 [1] : vector<8x8xf32> to vector<8xf32>
    %68 = vector.shape_cast %67 : vector<8xf32> to vector<8x1xf32>
    %69 = tpu.reciprocal %68 {approx = true} : vector<8x1xf32> -> vector<8x1xf32>
    %70 = vector.broadcast %69 : vector<8x1xf32> to vector<8x8xf32>
    %71 = arith.mulf %66, %70 : vector<8x8xf32>
    %72 = arith.truncf %71 : vector<8x8xf32> to vector<8x8xbf16>
    %cst_20 = arith.constant dense<0.000000e+00> : vector<8x32xf32>
    %73 = tpu.matmul %72, %58, %cst_20 {dimension_numbers = #tpu.dot_dimension_numbers<[1], [0], [0], [1], [0, 0, 1, 1], [], []>} : vector<8x8xbf16>, vector<8x32xbf16>, vector<8x32xf32> -> vector<8x32xf32>
    %74 = vector.extract_strided_slice %8 {offsets = [0, 96], sizes = [8, 32], strides = [1, 1]} : vector<8x128xf32> to vector<8x32xf32>
    %75 = arith.truncf %74 : vector<8x32xf32> to vector<8x32xbf16>
    %76 = vector.extract_strided_slice %9 {offsets = [0, 96], sizes = [8, 32], strides = [1, 1]} : vector<8x128xf32> to vector<8x32xf32>
    %77 = arith.truncf %76 : vector<8x32xf32> to vector<8x32xbf16>
    %78 = vector.extract_strided_slice %10 {offsets = [0, 96], sizes = [8, 32], strides = [1, 1]} : vector<8x128xf32> to vector<8x32xf32>
    %79 = arith.truncf %78 : vector<8x32xf32> to vector<8x32xbf16>
    %cst_21 = arith.constant dense<0.000000e+00> : vector<8x8xf32>
    %80 = tpu.matmul %75, %77, %cst_21 {dimension_numbers = #tpu.dot_dimension_numbers<[1], [1], [0], [0], [0, 0, 1, 0], [], []>} : vector<8x32xbf16>, vector<8x32xbf16>, vector<8x8xf32> -> vector<8x8xf32>
    %cst_22 = arith.constant 0.176776692 : f32
    %81 = vector.broadcast %cst_22 : f32 to vector<8x8xf32>
    %82 = arith.mulf %80, %81 : vector<8x8xf32>
    %cst_23 = arith.constant dense<0xFF800000> : vector<8xf32>
    %83 = vector.multi_reduction <maximumf>, %82, %cst_23 [1] : vector<8x8xf32> to vector<8xf32>
    %84 = vector.shape_cast %83 : vector<8xf32> to vector<8x1xf32>
    %85 = vector.broadcast %84 : vector<8x1xf32> to vector<8x8xf32>
    %86 = arith.subf %82, %85 : vector<8x8xf32>
    %87 = math.exp %86 : vector<8x8xf32>
    %cst_24 = arith.constant dense<0.000000e+00> : vector<8xf32>
    %88 = vector.multi_reduction <add>, %87, %cst_24 [1] : vector<8x8xf32> to vector<8xf32>
    %89 = vector.shape_cast %88 : vector<8xf32> to vector<8x1xf32>
    %90 = tpu.reciprocal %89 {approx = true} : vector<8x1xf32> -> vector<8x1xf32>
    %91 = vector.broadcast %90 : vector<8x1xf32> to vector<8x8xf32>
    %92 = arith.mulf %87, %91 : vector<8x8xf32>
    %93 = arith.truncf %92 : vector<8x8xf32> to vector<8x8xbf16>
    %cst_25 = arith.constant dense<0.000000e+00> : vector<8x32xf32>
    %94 = tpu.matmul %93, %79, %cst_25 {dimension_numbers = #tpu.dot_dimension_numbers<[1], [0], [0], [1], [0, 0, 1, 1], [], []>} : vector<8x8xbf16>, vector<8x32xbf16>, vector<8x32xf32> -> vector<8x32xf32>
    %95 = tpu.concatenate %31, %52, %73, %94 in 1 : vector<8x32xf32>, vector<8x32xf32>, vector<8x32xf32>, vector<8x32xf32> -> vector<8x128xf32>
    %96 = arith.truncf %95 : vector<8x128xf32> to vector<8x128xbf16>
    %c0_26 = arith.constant 0 : index
    %c0_27 = arith.constant 0 : index
    %97 = vector.load %arg4[%c0_26, %c0_27] : memref<128x128xbf16, #tpu.memory_space<vmem>>, vector<128x128xbf16>
    %cst_28 = arith.constant dense<0.000000e+00> : vector<8x128xf32>
    %98 = tpu.matmul %96, %97, %cst_28 {dimension_numbers = #tpu.dot_dimension_numbers<[1], [0], [0], [1], [0, 0, 1, 1], [], []>} : vector<8x128xbf16>, vector<128x128xbf16>, vector<8x128xf32> -> vector<8x128xf32>
    %c0_29 = arith.constant 0 : index
    %c0_30 = arith.constant 0 : index
    %99 = vector.load %arg5[%c0_29, %c0_30] : memref<1x128xf32, #tpu.memory_space<vmem>>, vector<1x128xf32>
    %100 = vector.broadcast %99 : vector<1x128xf32> to vector<8x128xf32>
    %101 = arith.addf %98, %100 : vector<8x128xf32>
    %102 = arith.addf %1, %101 : vector<8x128xf32>
    %c0_31 = arith.constant 0 : index
    %c0_32 = arith.constant 0 : index
    %103 = vector.load %arg6[%c0_31, %c0_32] : memref<1x128xf32, #tpu.memory_space<vmem>>, vector<1x128xf32>
    %c0_33 = arith.constant 0 : index
    %c0_34 = arith.constant 0 : index
    %104 = vector.load %arg7[%c0_33, %c0_34] : memref<1x128xf32, #tpu.memory_space<vmem>>, vector<1x128xf32>
    %cst_35 = arith.constant dense<0.000000e+00> : vector<8xf32>
    %105 = vector.multi_reduction <add>, %102, %cst_35 [1] : vector<8x128xf32> to vector<8xf32>
    %106 = vector.shape_cast %105 : vector<8xf32> to vector<8x1xf32>
    %cst_36 = arith.constant 1.280000e+02 : f32
    %107 = vector.broadcast %cst_36 : f32 to vector<8x1xf32>
    %108 = arith.divf %106, %107 : vector<8x1xf32>
    %109 = vector.broadcast %108 : vector<8x1xf32> to vector<8x128xf32>
    %110 = arith.subf %102, %109 : vector<8x128xf32>
    %111 = arith.mulf %110, %110 : vector<8x128xf32>
    %cst_37 = arith.constant dense<0.000000e+00> : vector<8xf32>
    %112 = vector.multi_reduction <add>, %111, %cst_37 [1] : vector<8x128xf32> to vector<8xf32>
    %113 = vector.shape_cast %112 : vector<8xf32> to vector<8x1xf32>
    %cst_38 = arith.constant 1.280000e+02 : f32
    %114 = vector.broadcast %cst_38 : f32 to vector<8x1xf32>
    %115 = arith.divf %113, %114 : vector<8x1xf32>
    %116 = vector.broadcast %108 : vector<8x1xf32> to vector<8x128xf32>
    %117 = arith.subf %102, %116 : vector<8x128xf32>
    %cst_39 = arith.constant 9.99999974E-6 : f32
    %118 = vector.broadcast %cst_39 : f32 to vector<8x1xf32>
    %119 = arith.addf %115, %118 : vector<8x1xf32>
    %120 = math.rsqrt %119 : vector<8x1xf32>
    %121 = vector.broadcast %120 : vector<8x1xf32> to vector<8x128xf32>
    %122 = arith.mulf %117, %121 : vector<8x128xf32>
    %123 = vector.broadcast %103 : vector<1x128xf32> to vector<8x128xf32>
    %124 = arith.mulf %122, %123 : vector<8x128xf32>
    %125 = vector.broadcast %104 : vector<1x128xf32> to vector<8x128xf32>
    %126 = arith.addf %124, %125 : vector<8x128xf32>
    %c0_40 = arith.constant 0 : index
    %c0_41 = arith.constant 0 : index
    %c0_42 = arith.constant 0 : index
    %127 = vector.load %arg8[%c0_40, %c0_41, %c0_42] : memref<1x8x128xf32, #tpu.memory_space<vmem>>, vector<1x8x128xf32>
    %128 = vector.shape_cast %127 : vector<1x8x128xf32> to vector<8x128xf32>
    %129 = vector.shape_cast %126 : vector<8x128xf32> to vector<1x8x128xf32>
    tpu.vector_store %arg8[%c0_40, %c0_41, %c0_42], %129 {strides = array<i32>} : memref<1x8x128xf32, #tpu.memory_space<vmem>>, vector<1x8x128xf32>,
    return
  }
  func.func @transform_0(%arg0: i32) -> (i32, i32, i32) {
    %c0_i32 = arith.constant 0 : i32
    %c0_i32_0 = arith.constant 0 : i32
    %c0_i32_1 = arith.constant 0 : i32
    return %arg0, %c0_i32, %c0_i32_0 : i32, i32, i32
  }
  func.func @transform_1(%arg0: i32) -> (i32, i32) {
    %c0_i32 = arith.constant 0 : i32
    %c0_i32_0 = arith.constant 0 : i32
    %c0_i32_1 = arith.constant 0 : i32
    return %c0_i32, %c0_i32_0 : i32, i32
  }
  func.func @transform_2(%arg0: i32) -> (i32, i32) {
    %c0_i32 = arith.constant 0 : i32
    %c0_i32_0 = arith.constant 0 : i32
    %c0_i32_1 = arith.constant 0 : i32
    return %c0_i32, %c0_i32_0 : i32, i32
  }
  func.func @transform_3(%arg0: i32) -> (i32, i32) {
    %c0_i32 = arith.constant 0 : i32
    %c0_i32_0 = arith.constant 0 : i32
    %c0_i32_1 = arith.constant 0 : i32
    return %c0_i32, %c0_i32_0 : i32, i32
  }
  func.func @transform_4(%arg0: i32) -> (i32, i32) {
    %c0_i32 = arith.constant 0 : i32
    %c0_i32_0 = arith.constant 0 : i32
    %c0_i32_1 = arith.constant 0 : i32
    return %c0_i32, %c0_i32_0 : i32, i32
  }
  func.func @transform_5(%arg0: i32) -> (i32, i32) {
    %c0_i32 = arith.constant 0 : i32
    %c0_i32_0 = arith.constant 0 : i32
    %c0_i32_1 = arith.constant 0 : i32
    return %c0_i32, %c0_i32_0 : i32, i32
  }
  func.func @transform_6(%arg0: i32) -> (i32, i32) {
    %c0_i32 = arith.constant 0 : i32
    %c0_i32_0 = arith.constant 0 : i32
    %c0_i32_1 = arith.constant 0 : i32
    return %c0_i32, %c0_i32_0 : i32, i32
  }
  func.func @transform_7(%arg0: i32) -> (i32, i32, i32) {
    %c0_i32 = arith.constant 0 : i32
    %c0_i32_0 = arith.constant 0 : i32
    %c0_i32_1 = arith.constant 0 : i32
    return %arg0, %c0_i32, %c0_i32_0 : i32, i32, i32
  }
}

module attributes {stable_mosaic.version = 11 : i64} {
  func.func @_ffn_block_kernel(%arg0: i32, %arg1: memref<1x8x128xf32, #tpu.memory_space<vmem>>, %arg2: memref<128x256xbf16, #tpu.memory_space<vmem>>, %arg3: memref<1x256xf32, #tpu.memory_space<vmem>>, %arg4: memref<256x128xbf16, #tpu.memory_space<vmem>>, %arg5: memref<1x128xf32, #tpu.memory_space<vmem>>, %arg6: memref<1x128xf32, #tpu.memory_space<vmem>>, %arg7: memref<1x128xf32, #tpu.memory_space<vmem>>, %arg8: memref<1x8x128xf32, #tpu.memory_space<vmem>>) attributes {dimension_semantics = [#tpu.dimension_semantics<parallel>], iteration_bounds = array<i64: 2>, scalar_prefetch = 0 : i64, scratch_operands = 0 : i64, tpu.core_type = #tpu.core_type<tc>, window_params = [{transform_indices = @transform_0, window_bounds = array<i64: 1, 8, 128>}, {pipeline_mode = #tpu.pipeline_mode<synchronous>, transform_indices = @transform_1, window_bounds = array<i64: 128, 256>}, {pipeline_mode = #tpu.pipeline_mode<synchronous>, transform_indices = @transform_2, window_bounds = array<i64: 1, 256>}, {pipeline_mode = #tpu.pipeline_mode<synchronous>, transform_indices = @transform_3, window_bounds = array<i64: 256, 128>}, {pipeline_mode = #tpu.pipeline_mode<synchronous>, transform_indices = @transform_4, window_bounds = array<i64: 1, 128>}, {pipeline_mode = #tpu.pipeline_mode<synchronous>, transform_indices = @transform_5, window_bounds = array<i64: 1, 128>}, {pipeline_mode = #tpu.pipeline_mode<synchronous>, transform_indices = @transform_6, window_bounds = array<i64: 1, 128>}, {transform_indices = @transform_7, window_bounds = array<i64: 1, 8, 128>}]} {
    %c0 = arith.constant 0 : index
    %c0_0 = arith.constant 0 : index
    %c0_1 = arith.constant 0 : index
    %0 = vector.load %arg1[%c0, %c0_0, %c0_1] : memref<1x8x128xf32, #tpu.memory_space<vmem>>, vector<1x8x128xf32>
    %1 = vector.shape_cast %0 : vector<1x8x128xf32> to vector<8x128xf32>
    %2 = arith.truncf %1 : vector<8x128xf32> to vector<8x128xbf16>
    %c0_2 = arith.constant 0 : index
    %c0_3 = arith.constant 0 : index
    %3 = vector.load %arg2[%c0_2, %c0_3] : memref<128x256xbf16, #tpu.memory_space<vmem>>, vector<128x256xbf16>
    %cst = arith.constant dense<0.000000e+00> : vector<8x256xf32>
    %4 = tpu.matmul %2, %3, %cst {dimension_numbers = #tpu.dot_dimension_numbers<[1], [0], [0], [1], [0, 0, 1, 1], [], []>} : vector<8x128xbf16>, vector<128x256xbf16>, vector<8x256xf32> -> vector<8x256xf32>
    %c0_4 = arith.constant 0 : index
    %c0_5 = arith.constant 0 : index
    %5 = vector.load %arg3[%c0_4, %c0_5] : memref<1x256xf32, #tpu.memory_space<vmem>>, vector<1x256xf32>
    %6 = vector.broadcast %5 : vector<1x256xf32> to vector<8x256xf32>
    %7 = arith.addf %4, %6 : vector<8x256xf32>
    %cst_6 = arith.constant 0.707106769 : f32
    %8 = vector.broadcast %cst_6 : f32 to vector<8x256xf32>
    %9 = arith.mulf %7, %8 : vector<8x256xf32>
    %10 = math.absf %9 : vector<8x256xf32>
    %cst_7 = arith.constant 0.327591091 : f32
    %11 = vector.broadcast %cst_7 : f32 to vector<8x256xf32>
    %12 = arith.mulf %11, %10 : vector<8x256xf32>
    %cst_8 = arith.constant 1.000000e+00 : f32
    %13 = vector.broadcast %cst_8 : f32 to vector<8x256xf32>
    %14 = arith.addf %13, %12 : vector<8x256xf32>
    %cst_9 = arith.constant 1.000000e+00 : f32
    %15 = vector.broadcast %cst_9 : f32 to vector<8x256xf32>
    %16 = arith.divf %15, %14 : vector<8x256xf32>
    %cst_10 = arith.constant 1.06140542 : f32
    %17 = vector.broadcast %cst_10 : f32 to vector<8x256xf32>
    %18 = arith.mulf %16, %17 : vector<8x256xf32>
    %cst_11 = arith.constant -1.45315206 : f32
    %19 = vector.broadcast %cst_11 : f32 to vector<8x256xf32>
    %20 = arith.addf %19, %18 : vector<8x256xf32>
    %21 = arith.mulf %16, %20 : vector<8x256xf32>
    %cst_12 = arith.constant 1.42141378 : f32
    %22 = vector.broadcast %cst_12 : f32 to vector<8x256xf32>
    %23 = arith.addf %22, %21 : vector<8x256xf32>
    %24 = arith.mulf %16, %23 : vector<8x256xf32>
    %cst_13 = arith.constant -0.284496725 : f32
    %25 = vector.broadcast %cst_13 : f32 to vector<8x256xf32>
    %26 = arith.addf %25, %24 : vector<8x256xf32>
    %27 = arith.mulf %16, %26 : vector<8x256xf32>
    %cst_14 = arith.constant 0.254829586 : f32
    %28 = vector.broadcast %cst_14 : f32 to vector<8x256xf32>
    %29 = arith.addf %28, %27 : vector<8x256xf32>
    %30 = arith.mulf %16, %29 : vector<8x256xf32>
    %cst_15 = arith.constant 0.000000e+00 : f32
    %31 = vector.broadcast %cst_15 : f32 to vector<8x256xf32>
    %32 = arith.subf %31, %10 : vector<8x256xf32>
    %33 = arith.mulf %32, %10 : vector<8x256xf32>
    %34 = math.exp %33 : vector<8x256xf32>
    %35 = arith.mulf %30, %34 : vector<8x256xf32>
    %cst_16 = arith.constant 1.000000e+00 : f32
    %36 = vector.broadcast %cst_16 : f32 to vector<8x256xf32>
    %37 = arith.subf %36, %35 : vector<8x256xf32>
    %cst_17 = arith.constant 0.000000e+00 : f32
    %38 = vector.broadcast %cst_17 : f32 to vector<8x256xf32>
    %39 = arith.cmpf oge, %9, %38 : vector<8x256xf32>
    %cst_18 = arith.constant 0.000000e+00 : f32
    %40 = vector.broadcast %cst_18 : f32 to vector<8x256xf32>
    %41 = arith.subf %40, %37 : vector<8x256xf32>
    %42 = arith.select %39, %37, %41 : vector<8x256xi1>, vector<8x256xf32>
    %cst_19 = arith.constant 5.000000e-01 : f32
    %43 = vector.broadcast %cst_19 : f32 to vector<8x256xf32>
    %44 = arith.mulf %43, %7 : vector<8x256xf32>
    %cst_20 = arith.constant 1.000000e+00 : f32
    %45 = vector.broadcast %cst_20 : f32 to vector<8x256xf32>
    %46 = arith.addf %45, %42 : vector<8x256xf32>
    %47 = arith.mulf %44, %46 : vector<8x256xf32>
    %48 = arith.truncf %47 : vector<8x256xf32> to vector<8x256xbf16>
    %c0_21 = arith.constant 0 : index
    %c0_22 = arith.constant 0 : index
    %49 = vector.load %arg4[%c0_21, %c0_22] : memref<256x128xbf16, #tpu.memory_space<vmem>>, vector<256x128xbf16>
    %cst_23 = arith.constant dense<0.000000e+00> : vector<8x128xf32>
    %50 = tpu.matmul %48, %49, %cst_23 {dimension_numbers = #tpu.dot_dimension_numbers<[1], [0], [0], [1], [0, 0, 1, 1], [], []>} : vector<8x256xbf16>, vector<256x128xbf16>, vector<8x128xf32> -> vector<8x128xf32>
    %c0_24 = arith.constant 0 : index
    %c0_25 = arith.constant 0 : index
    %51 = vector.load %arg5[%c0_24, %c0_25] : memref<1x128xf32, #tpu.memory_space<vmem>>, vector<1x128xf32>
    %52 = vector.broadcast %51 : vector<1x128xf32> to vector<8x128xf32>
    %53 = arith.addf %50, %52 : vector<8x128xf32>
    %54 = arith.addf %1, %53 : vector<8x128xf32>
    %c0_26 = arith.constant 0 : index
    %c0_27 = arith.constant 0 : index
    %55 = vector.load %arg6[%c0_26, %c0_27] : memref<1x128xf32, #tpu.memory_space<vmem>>, vector<1x128xf32>
    %c0_28 = arith.constant 0 : index
    %c0_29 = arith.constant 0 : index
    %56 = vector.load %arg7[%c0_28, %c0_29] : memref<1x128xf32, #tpu.memory_space<vmem>>, vector<1x128xf32>
    %cst_30 = arith.constant dense<0.000000e+00> : vector<8xf32>
    %57 = vector.multi_reduction <add>, %54, %cst_30 [1] : vector<8x128xf32> to vector<8xf32>
    %58 = vector.shape_cast %57 : vector<8xf32> to vector<8x1xf32>
    %cst_31 = arith.constant 1.280000e+02 : f32
    %59 = vector.broadcast %cst_31 : f32 to vector<8x1xf32>
    %60 = arith.divf %58, %59 : vector<8x1xf32>
    %61 = vector.broadcast %60 : vector<8x1xf32> to vector<8x128xf32>
    %62 = arith.subf %54, %61 : vector<8x128xf32>
    %63 = arith.mulf %62, %62 : vector<8x128xf32>
    %cst_32 = arith.constant dense<0.000000e+00> : vector<8xf32>
    %64 = vector.multi_reduction <add>, %63, %cst_32 [1] : vector<8x128xf32> to vector<8xf32>
    %65 = vector.shape_cast %64 : vector<8xf32> to vector<8x1xf32>
    %cst_33 = arith.constant 1.280000e+02 : f32
    %66 = vector.broadcast %cst_33 : f32 to vector<8x1xf32>
    %67 = arith.divf %65, %66 : vector<8x1xf32>
    %68 = vector.broadcast %60 : vector<8x1xf32> to vector<8x128xf32>
    %69 = arith.subf %54, %68 : vector<8x128xf32>
    %cst_34 = arith.constant 9.99999974E-6 : f32
    %70 = vector.broadcast %cst_34 : f32 to vector<8x1xf32>
    %71 = arith.addf %67, %70 : vector<8x1xf32>
    %72 = math.rsqrt %71 : vector<8x1xf32>
    %73 = vector.broadcast %72 : vector<8x1xf32> to vector<8x128xf32>
    %74 = arith.mulf %69, %73 : vector<8x128xf32>
    %75 = vector.broadcast %55 : vector<1x128xf32> to vector<8x128xf32>
    %76 = arith.mulf %74, %75 : vector<8x128xf32>
    %77 = vector.broadcast %56 : vector<1x128xf32> to vector<8x128xf32>
    %78 = arith.addf %76, %77 : vector<8x128xf32>
    %c0_35 = arith.constant 0 : index
    %c0_36 = arith.constant 0 : index
    %c0_37 = arith.constant 0 : index
    %79 = vector.load %arg8[%c0_35, %c0_36, %c0_37] : memref<1x8x128xf32, #tpu.memory_space<vmem>>, vector<1x8x128xf32>
    %80 = vector.shape_cast %79 : vector<1x8x128xf32> to vector<8x128xf32>
    %81 = vector.shape_cast %78 : vector<8x128xf32> to vector<1x8x128xf32>
    tpu.vector_store %arg8[%c0_35, %c0_36, %c0_37], %81 {strides = array<i32>} : memref<1x8x128xf32, #tpu.memory_space<vmem>>, vector<1x8x128xf32>,
    return
  }
  func.func @transform_0(%arg0: i32) -> (i32, i32, i32) {
    %c0_i32 = arith.constant 0 : i32
    %c0_i32_0 = arith.constant 0 : i32
    %c0_i32_1 = arith.constant 0 : i32
    return %arg0, %c0_i32, %c0_i32_0 : i32, i32, i32
  }
  func.func @transform_1(%arg0: i32) -> (i32, i32) {
    %c0_i32 = arith.constant 0 : i32
    %c0_i32_0 = arith.constant 0 : i32
    %c0_i32_1 = arith.constant 0 : i32
    return %c0_i32, %c0_i32_0 : i32, i32
  }
  func.func @transform_2(%arg0: i32) -> (i32, i32) {
    %c0_i32 = arith.constant 0 : i32
    %c0_i32_0 = arith.constant 0 : i32
    %c0_i32_1 = arith.constant 0 : i32
    return %c0_i32, %c0_i32_0 : i32, i32
  }
  func.func @transform_3(%arg0: i32) -> (i32, i32) {
    %c0_i32 = arith.constant 0 : i32
    %c0_i32_0 = arith.constant 0 : i32
    %c0_i32_1 = arith.constant 0 : i32
    return %c0_i32, %c0_i32_0 : i32, i32
  }
  func.func @transform_4(%arg0: i32) -> (i32, i32) {
    %c0_i32 = arith.constant 0 : i32
    %c0_i32_0 = arith.constant 0 : i32
    %c0_i32_1 = arith.constant 0 : i32
    return %c0_i32, %c0_i32_0 : i32, i32
  }
  func.func @transform_5(%arg0: i32) -> (i32, i32) {
    %c0_i32 = arith.constant 0 : i32
    %c0_i32_0 = arith.constant 0 : i32
    %c0_i32_1 = arith.constant 0 : i32
    return %c0_i32, %c0_i32_0 : i32, i32
  }
  func.func @transform_6(%arg0: i32) -> (i32, i32) {
    %c0_i32 = arith.constant 0 : i32
    %c0_i32_0 = arith.constant 0 : i32
    %c0_i32_1 = arith.constant 0 : i32
    return %c0_i32, %c0_i32_0 : i32, i32
  }
  func.func @transform_7(%arg0: i32) -> (i32, i32, i32) {
    %c0_i32 = arith.constant 0 : i32
    %c0_i32_0 = arith.constant 0 : i32
    %c0_i32_1 = arith.constant 0 : i32
    return %arg0, %c0_i32, %c0_i32_0 : i32, i32, i32
  }
}

module attributes {stable_mosaic.version = 11 : i64} {
  func.func @_ffn_block_kernel(%arg0: i32, %arg1: memref<1x8x128xf32, #tpu.memory_space<vmem>>, %arg2: memref<128x256xbf16, #tpu.memory_space<vmem>>, %arg3: memref<1x256xf32, #tpu.memory_space<vmem>>, %arg4: memref<256x128xbf16, #tpu.memory_space<vmem>>, %arg5: memref<1x128xf32, #tpu.memory_space<vmem>>, %arg6: memref<1x128xf32, #tpu.memory_space<vmem>>, %arg7: memref<1x128xf32, #tpu.memory_space<vmem>>, %arg8: memref<1x8x128xf32, #tpu.memory_space<vmem>>) attributes {dimension_semantics = [#tpu.dimension_semantics<parallel>], iteration_bounds = array<i64: 2>, scalar_prefetch = 0 : i64, scratch_operands = 0 : i64, tpu.core_type = #tpu.core_type<tc>, window_params = [{transform_indices = @transform_0, window_bounds = array<i64: 1, 8, 128>}, {pipeline_mode = #tpu.pipeline_mode<synchronous>, transform_indices = @transform_1, window_bounds = array<i64: 128, 256>}, {pipeline_mode = #tpu.pipeline_mode<synchronous>, transform_indices = @transform_2, window_bounds = array<i64: 1, 256>}, {pipeline_mode = #tpu.pipeline_mode<synchronous>, transform_indices = @transform_3, window_bounds = array<i64: 256, 128>}, {pipeline_mode = #tpu.pipeline_mode<synchronous>, transform_indices = @transform_4, window_bounds = array<i64: 1, 128>}, {pipeline_mode = #tpu.pipeline_mode<synchronous>, transform_indices = @transform_5, window_bounds = array<i64: 1, 128>}, {pipeline_mode = #tpu.pipeline_mode<synchronous>, transform_indices = @transform_6, window_bounds = array<i64: 1, 128>}, {transform_indices = @transform_7, window_bounds = array<i64: 1, 8, 128>}]} {
    %c0 = arith.constant 0 : index
    %c0_0 = arith.constant 0 : index
    %c0_1 = arith.constant 0 : index
    %0 = vector.load %arg1[%c0, %c0_0, %c0_1] : memref<1x8x128xf32, #tpu.memory_space<vmem>>, vector<1x8x128xf32>
    %1 = vector.shape_cast %0 : vector<1x8x128xf32> to vector<8x128xf32>
    %2 = arith.truncf %1 : vector<8x128xf32> to vector<8x128xbf16>
    %c0_2 = arith.constant 0 : index
    %c0_3 = arith.constant 0 : index
    %3 = vector.load %arg2[%c0_2, %c0_3] : memref<128x256xbf16, #tpu.memory_space<vmem>>, vector<128x256xbf16>
    %cst = arith.constant dense<0.000000e+00> : vector<8x256xf32>
    %4 = tpu.matmul %2, %3, %cst {dimension_numbers = #tpu.dot_dimension_numbers<[1], [0], [0], [1], [0, 0, 1, 1], [], []>} : vector<8x128xbf16>, vector<128x256xbf16>, vector<8x256xf32> -> vector<8x256xf32>
    %c0_4 = arith.constant 0 : index
    %c0_5 = arith.constant 0 : index
    %5 = vector.load %arg3[%c0_4, %c0_5] : memref<1x256xf32, #tpu.memory_space<vmem>>, vector<1x256xf32>
    %6 = vector.broadcast %5 : vector<1x256xf32> to vector<8x256xf32>
    %7 = arith.addf %4, %6 : vector<8x256xf32>
    %cst_6 = arith.constant 0.707106769 : f32
    %8 = vector.broadcast %cst_6 : f32 to vector<8x256xf32>
    %9 = arith.mulf %7, %8 : vector<8x256xf32>
    %10 = math.absf %9 : vector<8x256xf32>
    %cst_7 = arith.constant 0.327591091 : f32
    %11 = vector.broadcast %cst_7 : f32 to vector<8x256xf32>
    %12 = arith.mulf %11, %10 : vector<8x256xf32>
    %cst_8 = arith.constant 1.000000e+00 : f32
    %13 = vector.broadcast %cst_8 : f32 to vector<8x256xf32>
    %14 = arith.addf %13, %12 : vector<8x256xf32>
    %cst_9 = arith.constant 1.000000e+00 : f32
    %15 = vector.broadcast %cst_9 : f32 to vector<8x256xf32>
    %16 = arith.divf %15, %14 : vector<8x256xf32>
    %cst_10 = arith.constant 1.06140542 : f32
    %17 = vector.broadcast %cst_10 : f32 to vector<8x256xf32>
    %18 = arith.mulf %16, %17 : vector<8x256xf32>
    %cst_11 = arith.constant -1.45315206 : f32
    %19 = vector.broadcast %cst_11 : f32 to vector<8x256xf32>
    %20 = arith.addf %19, %18 : vector<8x256xf32>
    %21 = arith.mulf %16, %20 : vector<8x256xf32>
    %cst_12 = arith.constant 1.42141378 : f32
    %22 = vector.broadcast %cst_12 : f32 to vector<8x256xf32>
    %23 = arith.addf %22, %21 : vector<8x256xf32>
    %24 = arith.mulf %16, %23 : vector<8x256xf32>
    %cst_13 = arith.constant -0.284496725 : f32
    %25 = vector.broadcast %cst_13 : f32 to vector<8x256xf32>
    %26 = arith.addf %25, %24 : vector<8x256xf32>
    %27 = arith.mulf %16, %26 : vector<8x256xf32>
    %cst_14 = arith.constant 0.254829586 : f32
    %28 = vector.broadcast %cst_14 : f32 to vector<8x256xf32>
    %29 = arith.addf %28, %27 : vector<8x256xf32>
    %30 = arith.mulf %16, %29 : vector<8x256xf32>
    %cst_15 = arith.constant 0.000000e+00 : f32
    %31 = vector.broadcast %cst_15 : f32 to vector<8x256xf32>
    %32 = arith.subf %31, %10 : vector<8x256xf32>
    %33 = arith.mulf %32, %10 : vector<8x256xf32>
    %34 = math.exp %33 : vector<8x256xf32>
    %35 = arith.mulf %30, %34 : vector<8x256xf32>
    %cst_16 = arith.constant 1.000000e+00 : f32
    %36 = vector.broadcast %cst_16 : f32 to vector<8x256xf32>
    %37 = arith.subf %36, %35 : vector<8x256xf32>
    %cst_17 = arith.constant 0.000000e+00 : f32
    %38 = vector.broadcast %cst_17 : f32 to vector<8x256xf32>
    %39 = arith.cmpf oge, %9, %38 : vector<8x256xf32>
    %cst_18 = arith.constant 0.000000e+00 : f32
    %40 = vector.broadcast %cst_18 : f32 to vector<8x256xf32>
    %41 = arith.subf %40, %37 : vector<8x256xf32>
    %42 = arith.select %39, %37, %41 : vector<8x256xi1>, vector<8x256xf32>
    %cst_19 = arith.constant 5.000000e-01 : f32
    %43 = vector.broadcast %cst_19 : f32 to vector<8x256xf32>
    %44 = arith.mulf %43, %7 : vector<8x256xf32>
    %cst_20 = arith.constant 1.000000e+00 : f32
    %45 = vector.broadcast %cst_20 : f32 to vector<8x256xf32>
    %46 = arith.addf %45, %42 : vector<8x256xf32>
    %47 = arith.mulf %44, %46 : vector<8x256xf32>
    %48 = arith.truncf %47 : vector<8x256xf32> to vector<8x256xbf16>
    %c0_21 = arith.constant 0 : index
    %c0_22 = arith.constant 0 : index
    %49 = vector.load %arg4[%c0_21, %c0_22] : memref<256x128xbf16, #tpu.memory_space<vmem>>, vector<256x128xbf16>
    %cst_23 = arith.constant dense<0.000000e+00> : vector<8x128xf32>
    %50 = tpu.matmul %48, %49, %cst_23 {dimension_numbers = #tpu.dot_dimension_numbers<[1], [0], [0], [1], [0, 0, 1, 1], [], []>} : vector<8x256xbf16>, vector<256x128xbf16>, vector<8x128xf32> -> vector<8x128xf32>
    %c0_24 = arith.constant 0 : index
    %c0_25 = arith.constant 0 : index
    %51 = vector.load %arg5[%c0_24, %c0_25] : memref<1x128xf32, #tpu.memory_space<vmem>>, vector<1x128xf32>
    %52 = vector.broadcast %51 : vector<1x128xf32> to vector<8x128xf32>
    %53 = arith.addf %50, %52 : vector<8x128xf32>
    %54 = arith.addf %1, %53 : vector<8x128xf32>
    %c0_26 = arith.constant 0 : index
    %c0_27 = arith.constant 0 : index
    %55 = vector.load %arg6[%c0_26, %c0_27] : memref<1x128xf32, #tpu.memory_space<vmem>>, vector<1x128xf32>
    %c0_28 = arith.constant 0 : index
    %c0_29 = arith.constant 0 : index
    %56 = vector.load %arg7[%c0_28, %c0_29] : memref<1x128xf32, #tpu.memory_space<vmem>>, vector<1x128xf32>
    %cst_30 = arith.constant dense<0.000000e+00> : vector<8xf32>
    %57 = vector.multi_reduction <add>, %54, %cst_30 [1] : vector<8x128xf32> to vector<8xf32>
    %58 = vector.shape_cast %57 : vector<8xf32> to vector<8x1xf32>
    %cst_31 = arith.constant 1.280000e+02 : f32
    %59 = vector.broadcast %cst_31 : f32 to vector<8x1xf32>
    %60 = arith.divf %58, %59 : vector<8x1xf32>
    %61 = vector.broadcast %60 : vector<8x1xf32> to vector<8x128xf32>
    %62 = arith.subf %54, %61 : vector<8x128xf32>
    %63 = arith.mulf %62, %62 : vector<8x128xf32>
    %cst_32 = arith.constant dense<0.000000e+00> : vector<8xf32>
    %64 = vector.multi_reduction <add>, %63, %cst_32 [1] : vector<8x128xf32> to vector<8xf32>
    %65 = vector.shape_cast %64 : vector<8xf32> to vector<8x1xf32>
    %cst_33 = arith.constant 1.280000e+02 : f32
    %66 = vector.broadcast %cst_33 : f32 to vector<8x1xf32>
    %67 = arith.divf %65, %66 : vector<8x1xf32>
    %68 = vector.broadcast %60 : vector<8x1xf32> to vector<8x128xf32>
    %69 = arith.subf %54, %68 : vector<8x128xf32>
    %cst_34 = arith.constant 9.99999974E-6 : f32
    %70 = vector.broadcast %cst_34 : f32 to vector<8x1xf32>
    %71 = arith.addf %67, %70 : vector<8x1xf32>
    %72 = math.rsqrt %71 : vector<8x1xf32>
    %73 = vector.broadcast %72 : vector<8x1xf32> to vector<8x128xf32>
    %74 = arith.mulf %69, %73 : vector<8x128xf32>
    %75 = vector.broadcast %55 : vector<1x128xf32> to vector<8x128xf32>
    %76 = arith.mulf %74, %75 : vector<8x128xf32>
    %77 = vector.broadcast %56 : vector<1x128xf32> to vector<8x128xf32>
    %78 = arith.addf %76, %77 : vector<8x128xf32>
    %c0_35 = arith.constant 0 : index
    %c0_36 = arith.constant 0 : index
    %c0_37 = arith.constant 0 : index
    %79 = vector.load %arg8[%c0_35, %c0_36, %c0_37] : memref<1x8x128xf32, #tpu.memory_space<vmem>>, vector<1x8x128xf32>
    %80 = vector.shape_cast %79 : vector<1x8x128xf32> to vector<8x128xf32>
    %81 = vector.shape_cast %78 : vector<8x128xf32> to vector<1x8x128xf32>
    tpu.vector_store %arg8[%c0_35, %c0_36, %c0_37], %81 {strides = array<i32>} : memref<1x8x128xf32, #tpu.memory_space<vmem>>, vector<1x8x128xf32>,
    return
  }
  func.func @transform_0(%arg0: i32) -> (i32, i32, i32) {
    %c0_i32 = arith.constant 0 : i32
    %c0_i32_0 = arith.constant 0 : i32
    %c0_i32_1 = arith.constant 0 : i32
    return %arg0, %c0_i32, %c0_i32_0 : i32, i32, i32
  }
  func.func @transform_1(%arg0: i32) -> (i32, i32) {
    %c0_i32 = arith.constant 0 : i32
    %c0_i32_0 = arith.constant 0 : i32
    %c0_i32_1 = arith.constant 0 : i32
    return %c0_i32, %c0_i32_0 : i32, i32
  }
  func.func @transform_2(%arg0: i32) -> (i32, i32) {
    %c0_i32 = arith.constant 0 : i32
    %c0_i32_0 = arith.constant 0 : i32
    %c0_i32_1 = arith.constant 0 : i32
    return %c0_i32, %c0_i32_0 : i32, i32
  }
  func.func @transform_3(%arg0: i32) -> (i32, i32) {
    %c0_i32 = arith.constant 0 : i32
    %c0_i32_0 = arith.constant 0 : i32
    %c0_i32_1 = arith.constant 0 : i32
    return %c0_i32, %c0_i32_0 : i32, i32
  }
  func.func @transform_4(%arg0: i32) -> (i32, i32) {
    %c0_i32 = arith.constant 0 : i32
    %c0_i32_0 = arith.constant 0 : i32
    %c0_i32_1 = arith.constant 0 : i32
    return %c0_i32, %c0_i32_0 : i32, i32
  }
  func.func @transform_5(%arg0: i32) -> (i32, i32) {
    %c0_i32 = arith.constant 0 : i32
    %c0_i32_0 = arith.constant 0 : i32
    %c0_i32_1 = arith.constant 0 : i32
    return %c0_i32, %c0_i32_0 : i32, i32
  }
  func.func @transform_6(%arg0: i32) -> (i32, i32) {
    %c0_i32 = arith.constant 0 : i32
    %c0_i32_0 = arith.constant 0 : i32
    %c0_i32_1 = arith.constant 0 : i32
    return %c0_i32, %c0_i32_0 : i32, i32
  }
  func.func @transform_7(%arg0: i32) -> (i32, i32, i32) {
    %c0_i32 = arith.constant 0 : i32
    %c0_i32_0 = arith.constant 0 : i32
    %c0_i32_1 = arith.constant 0 : i32
    return %arg0, %c0_i32, %c0_i32_0 : i32, i32, i32
  }
}

</mosaic_0001>

<bundles_post_ra>
// kernel: _lambda_.7
= control target key start
LH: loop header
LB: loop body
LE: loop exit
PB: predicated region body
PF: predicated region fallthrough
CT: control target
= control target key end

     0   :  { %s2269_s0 = inlined_call_operand.vmem [shape: f32[2,8,128], index: 0, kind: input, shape index: {}]   ;;  %s2270_s1 = inlined_call_operand.vmem [shape: bf16[2,32,128], index: 1, kind: input, shape index: {}]   ;;  %s2271_s2 = inlined_call_operand.vmem [shape: bf16[128,128], index: 2, kind: input, shape index: {}]   ;;  %s2272_s3 = inlined_call_operand.vmem [shape: f32[1,128], index: 3, kind: input, shape index: {}]   ;;  %s2273_s4 = inlined_call_operand.vmem [shape: bf16[128,256], index: 4, kind: input, shape index: {}]   ;;  %s2274_s5 = inlined_call_operand.vmem [shape: f32[1,256], index: 5, kind: input, shape index: {}]   ;;  %s2275_s6 = inlined_call_operand.vmem [shape: bf16[128,128], index: 6, kind: input, shape index: {}]   ;;  %s2276_s7 = inlined_call_operand.vmem [shape: f32[1,128], index: 7, kind: input, shape index: {}]   ;;  %s2277_s8 = inlined_call_operand.vmem [shape: f32[1,128], index: 8, kind: input, shape index: {}]   ;;  %s2278_s9 = inlined_call_operand.vmem [shape: f32[1,128], index: 9, kind: input, shape index: {}]   ;;  %s2279_s10 = inlined_call_operand.vmem [shape: f32[2,8,128], index: 10, kind: output, shape index: {0}]   ;;  %s2280_s11 = inlined_call_operand.hbm [shape: f32[2,8,32], index: 11, kind: output, shape index: {1}]  }
   0x1   :  { %2284 = sst [smem:[#allocation6_spill]] %s2269_s0 }
   0x2   :  { %2285 = sst [smem:[#allocation7_spill]] %s2270_s1 }
   0x3   :  { %2286 = sst [smem:[#allocation8_spill]] %s2271_s2 }
   0x4   :  { %17 = vsyncpa [#allocation3], 0 }
   0x5   :  { %19 = vsyncpa [#allocation3 + $0x1], 0  ;;  %s1894_s17 = smov 0   ;;  %s1896_s18 = smov 0  }
   0x6   :  { %s1898_s19 = smov 0   ;;  %s1900_s20 = smov 0  }
   0x7 LB: > { %s1915_s21 = sadd.s32 4294967295, %s1825_s20   ;;  %s1452_s22 = sadd.s32 4294967294, %s1825_s20   ;;  %s1825_s20 = sphi %s1900_s20, %s2300_s20   ;;  %s1821_s19 = sphi %s1898_s19, %s2299_s19   ;;  %s1817_s18 = sphi %s1896_s18, %s2298_s18   ;;  %s1813_s17 = sphi %s1894_s17, %s2297_s17  }
   0x8   : > { %s1919_s23 = sadd.s32 1, %s1825_s20   ;;  %s278_s24 = sadd.s32 1, %s1821_s19 }
   0x9   : > { %s275_s25 = ssub.s32 %s1825_s20, %s1919_s23  ;;  %p288_p0 = scmp.ne.s32.totalorder %s1821_s19, %s1817_s18 }
   0xa   : > { %p276_p1 = scmp.eq.s32.totalorder %s275_s25, 0  ;;  %p289_p2 = scmp.eq.s32.totalorder %s1915_s21, 1 }
   0xb   : > { %p294_p3 = scmp.ne.s32.totalorder %s1817_s18, %s1813_s17  ;;  %p295_p4 = scmp.eq.s32.totalorder %s1452_s22, 1 }
   0xc   : > { %s1930_s26 = scalar_select %p276_p1, %s1821_s19, %s278_s24  }
   0xd   : > { %p1932_p5 = por %p289_p2, %p288_p0  ;;  %p1936_p6 = por %p295_p4, %p294_p3 }
   0xe   : > { %2287 = sst [smem:[#allocation5_spill]] %s1930_s26  ;;  %p1455_p7 = scmp.ge.s32.totalorder %s1825_s20, 1 }
   0xf   : > { %p352_p8 = scmp.lt.s32.totalorder %s1825_s20, 3 }
  0x11   : > { %p353_p9 = pnand %p1455_p7, %p352_p8 }
  0x12   : > { %v1703_v0 = vld [vmem:[%s2273_s4 + $0x4] ss:$8 sps:$4 sm:$0xff] (!%p353_p9)   ;;  %v1705_v1 = vld [vmem:[%s2273_s4] ss:$8 sps:$4 sm:$0xff] (!%p353_p9)   ;;  %v1827_v2 = vmov (!%p353_p9), 0.0   ;;  %v1828_v3 = vmov (!%p353_p9), 0   ;;  %v549_v30 = vlaneseq (!%p353_p9) }
  0x13   : > { %356 = sbr.rel (%p353_p9) target bundleno = 3312 (0xcf0), region = 60  ;;  %1554 = vmatprep.subr.bf16.mxu0 (!%p353_p9), %v1827_v2  ;;  %683 = vmatprep.mubr.bf16.mxu1 (!%p353_p9), %v1828_v3  ;;  %v1706_v4 = vld [vmem:[%s2273_s4 + $0x14] ss:$8 sps:$4 sm:$0xff] (!%p353_p9)   ;;  %vm1829_vm0 = vmmov (!%p353_p9), 0   ;;  %v1708_v5 = vld [vmem:[%s2273_s4 + $0x10] ss:$8 sps:$4 sm:$0xff] (!%p353_p9)  }
  0x14   : > { %651 = vmatprep.subr.bf16.mxu1 (!%p353_p9), %v1703_v0  ;;  %1570 = vmatprep.mubr.msk.bf16.mxu0 (!%p353_p9), %vm1829_vm0, %v1827_v2  ;;  %p400_p10 = scmp.lt.s32.totalorder (!%p353_p9), %s1915_s21, 1  ;;  %v1709_v6 = vld [vmem:[%s2273_s4 + $0x24] ss:$8 sps:$4 sm:$0xff] (!%p353_p9)   ;;  %v1711_v7 = vld [vmem:[%s2273_s4 + $0x20] ss:$8 sps:$4 sm:$0xff] (!%p353_p9)   ;;  %s2290_s2 = sld [smem:[#allocation8_spill]] (!%p353_p9) }
  0x15   : > { %652 = vmatpush1.bf16.msra.mxu1 (!%p353_p9), %v1705_v1  ;;  %v1712_v9 = vld [vmem:[%s2273_s4 + $0x34] ss:$8 sps:$4 sm:$0xff] (!%p353_p9)   ;;  %v1714_v11 = vld [vmem:[%s2273_s4 + $0x30] ss:$8 sps:$4 sm:$0xff] (!%p353_p9)   ;;  %v1716_v12 = vld [vmem:[%s2273_s4 + $0x44] ss:$8 sps:$4 sm:$0xff] (!%p353_p9)  }
  0x16   : > { %653 = vmatprep.subr.bf16.mxu1 (!%p353_p9), %v1706_v4  ;;  %v1718_v14 = vld [vmem:[%s2273_s4 + $0x40] ss:$8 sps:$4 sm:$0xff] (!%p353_p9)   ;;  %s2291_s1 = sld [smem:[#allocation7_spill]] (!%p353_p9)  ;;  %v1720_v15 = vld [vmem:[%s2273_s4 + $0x54] ss:$8 sps:$4 sm:$0xff] (!%p353_p9)   ;;  %s2292_s0 = sld [smem:[#allocation6_spill]] (!%p353_p9) }
  0x17   : > { %v1722_v17 = vld [vmem:[%s2273_s4 + $0x50] ss:$8 sps:$4 sm:$0xff] (!%p353_p9)   ;;  %v1724_v18 = vld [vmem:[%s2273_s4 + $0x64] ss:$8 sps:$4 sm:$0xff] (!%p353_p9)   ;;  %v1726_v20 = vld [vmem:[%s2273_s4 + $0x60] ss:$8 sps:$4 sm:$0xff] (!%p353_p9)  }
  0x18   : > { %v1728_v21 = vld [vmem:[%s2273_s4 + $0x74] ss:$8 sps:$4 sm:$0xff] (!%p353_p9)   ;;  %v1730_v23 = vld [vmem:[%s2273_s4 + $0x70] ss:$8 sps:$4 sm:$0xff] (!%p353_p9)   ;;  %v550_v31 = vshrl.u32 (!%p353_p9), %v549_v30, 7  ;;  %vm709_vm1 = vcmask (!%p353_p9), 261120  }
  0x19   : > { %654 = vmatpush1.bf16.msra.mxu1 (!%p353_p9), %v1708_v5  ;;  %v547_v33 = vld [vmem:[%s2274_s5] sm:$0x3] (!%p353_p9)  ;;  %s1831_s22 = smov (!%p353_p9), 64   ;;  %vm1188_vm2 = vcmask (!%p353_p9), 523264   ;;  %vm1190_vm3 = vcmask (!%p353_p9), 785408  }
  0x1a   : > { %v1715_v8 = vld [vmem:[%s2290_s2] sm:$0xff]   ;;  %s1972_s16 = scalar_select %p400_p10, %s1915_s21, 1  ;;  %655 = vmatprep.subr.bf16.mxu1 %v1709_v6  ;;  %v1719_v10 = vld [vmem:[%s2290_s2 + $0x8] sm:$0xff]   ;;  %v1723_v13 = vld [vmem:[%s2290_s2 + $0x10] sm:$0xff]   ;;  %v551_v32 = vsub.s32 0, %v550_v31  ;;  %v555_v34 = vsub.s32 1, %v550_v31 }
  0x1b   : > { %1555 = vmatpush3.bf16.msra.mxu0 %v1715_v8  ;;  %v1727_v16 = vld [vmem:[%s2290_s2 + $0x18] sm:$0xff]   ;;  %v1731_v19 = vld [vmem:[%s2290_s2 + $0x20] sm:$0xff]   ;;  %v1733_v22 = vld [vmem:[%s2290_s2 + $0x28] sm:$0xff]  }
  0x1c   : > { %1556 = vmatprep.subr.bf16.mxu0 %v1827_v2  ;;  %s1511_s13 = sshll.u32 %s1972_s16, 4  ;;  %s2281_s25 = sshll.u32 %s1972_s16, 3  ;;  %v1734_v24 = vld [vmem:[%s2290_s2 + $0x30] sm:$0xff]   ;;  %v1736_v26 = vld [vmem:[%s2290_s2 + $0x38] sm:$0xff]   ;;  %v552_v35 = vrot.slane %v547_v33, %v551_v32  ;;  %v556_v37 = vrot.slane %v547_v33, %v555_v34  ;;  %v1461_v60 = vld [vmem:[%s2272_s3] ss:$0 sm:$0xff] }
  0x1d   : > { %656 = vmatpush1.bf16.msra.mxu1 %v1711_v7  ;;  %s1995_s26 = scalar_lea.vmem %s2291_s1, %s1511_s13  ;;  %s403_s24 = scalar_lea.vmem %s2292_s0, %s2281_s25 }
  0x1e   : > { %657 = vmatprep.subr.bf16.mxu1 %v1712_v9  ;;  %v1732_v25 = vld [vmem:[%s1995_s26] sm:$0xff]   ;;  %v1735_v29 = vld [vmem:[%s1995_s26 + $0x8] sm:$0xff]   ;;  %s1830_s26 = smov 96   ;;  %s2282_s13 = sand.u32 1, %s1817_s18  }
  0x1f   : > { %1557 = vmatpush3.bf16.msra.mxu0 %v1719_v10  ;;  %v2041_v27 = vld [vmem:[%s403_s24] sm:$0xff]  ;;  %s1832_s24 = smov 32   ;;  %s2167_s29 = sshll.u32 %s2282_s13, 3 }
  0x20   : > { %1558 = vmatprep.subr.bf16.mxu0 %v1827_v2  ;;  %v419_v28 = vpack.c.bf16 %v2041_v27, %v2041_v27  ;;  %s2283_s30 = scalar_lea.vmem [#allocation2], %s2167_s29  ;;  %s2293_s15 = scalar_lea.vmem [#allocation2], %s2167_s29 }
  0x21   : > { %658 = vmatpush1.bf16.msra.mxu1 %v1714_v11  ;;  %s1357_s25 = sshll.u32 %s2293_s15, 4  ;;  %s1833_s0 = smov [#allocation2]   ;;  %s1358_s25 = int_to_ptr.vmem [resolvable:$true] %s1357_s25 }
  0x22   : > { %659 = vmatprep.subr.bf16.mxu1 %v1716_v12  ;;  %s1763_s14 = scalar_lea.vmem %s1358_s25, 128  ;;  %s1767_s1 = sshll.u32 %s1833_s0, 4  ;;  %s1768_s1 = int_to_ptr.vmem [resolvable:$false] %s1767_s1 }
  0x23   : > { %1559 = vmatpush3.bf16.msra.mxu0 %v1723_v13  ;;  %p1764_p11 = scmp.ne.s32.totalorder %s1358_s25, %s1763_s14  ;;  %s1769_s2 = scalar_lea.vmem %s1768_s1, 256 }
  0x24   : > { %1560 = vmatprep.subr.bf16.mxu0 %v1827_v2  ;;  %p1770_p0 = scmp.lt.s32.totalorder %s1358_s25, %s1768_s1  ;;  %p1771_p1 = scmp.lt.s32.totalorder %s1769_s2, %s1763_s14 }
  0x25   : > { %660 = vmatpush1.bf16.msra.mxu1 %v1718_v14  ;;  %p1765_p12 = pnand %p1764_p11, %p1932_p5 }
  0x26   : > { %661 = vmatprep.subr.bf16.mxu1 %v1720_v15  ;;  %p1772_p2 = por %p1771_p1, %p1770_p0 }
  0x27   : > { %1561 = vmatpush3.bf16.msra.mxu0 %v1727_v16  ;;  %p1766_p13 = pneg %p1765_p12 }
  0x28   : > { %1562 = vmatprep.subr.bf16.mxu0 %v1827_v2 }
  0x29   : > { %662 = vmatpush1.bf16.msra.mxu1 %v1722_v17  ;;  %p1773_p3 = pnand %p1772_p2, %p1766_p13 }
  0x2a   : > { %663 = vmatprep.subr.bf16.mxu1 %v1724_v18 }
  0x2b   : > { %1563 = vmatpush3.bf16.msra.mxu0 %v1731_v19 }
  0x2c   : > { %1564 = vmatprep.subr.bf16.mxu0 %v1827_v2 }
  0x2d   : > { %664 = vmatpush1.bf16.msra.mxu1 %v1726_v20 }
  0x2e   : > { %665 = vmatprep.subr.bf16.mxu1 %v1728_v21 }
  0x2f   : > { %1565 = vmatpush3.bf16.msra.mxu0 %v1733_v22 }
  0x30   : > { %1566 = vmatprep.subr.bf16.mxu0 %v1827_v2 }
  0x31   : > { %666 = vmatpush1.bf16.msra.mxu1 %v1730_v23 }
  0x32   : > { %1598 = vmatprep.subr.bf16.mxu1 %v1827_v2 }
  0x33   : > { %1567 = vmatpush3.bf16.msra.mxu0 %v1734_v24 }
  0x34   : > { %1568 = vmatprep.subr.bf16.mxu0 %v1827_v2  ;;  %684 = vmatmul.mubr.bf16.vlgmr.msra.gmra.mrb[0].mxu1 %v1732_v25 }
  0x35   : > { %693 = vmatprep.mubr.bf16.mxu1 %v1828_v3 }
  0x37   : > { %1569 = vmatpush3.bf16.msra.mxu0 %v1736_v26 }
  0x38   : > { %1574 = vmatprep.subr.bf16.mxu0 %v1827_v2 }
  0x3a   : > { %1571 = vmatmul.mubr.bf16.vlgmr.msra.gmra.mrb[0].mxu0 %v419_v28 }
  0x3b   : > { %1578 = vmatprep.mubr.msk.bf16.mxu0 %vm1829_vm0, %v1827_v2 }
  0x3c   : > { %694 = vmatmul.mubr.bf16.gmra.mrb[4].mxu1 %v1735_v29 }
  0x3d   : > { %1602 = vmatprep.mubr.msk.bf16.mxu1 %vm1829_vm0, %v1827_v2 }
 0x107   : > { %v685_v36 = vpop.f32.mrb[0].mxu1 }
 0x108   : > { %v687_v38 = vpop.f32.mrb[1].mxu1  ;;  %v686_v40 = vadd.f32 %v685_v36, %v552_v35 }
 0x109   : > { %v689_v39 = vpop.f32.mrb[2].mxu1  ;;  %v688_v43 = vadd.f32 %v687_v38, %v556_v37 }
 0x10a   : > { %v690_v41 = vadd.f32 %v689_v39, %v552_v35  ;;  %v691_v42 = vpop.f32.mrb[3].mxu1 }
 0x10b   : > { %v692_v44 = vadd.f32 %v691_v42, %v556_v37 }
 0x10c   : > { %v2057_v45 = vpack.c.bf16 %v690_v41, %v686_v40 }
 0x10d   : > { %v525_v46 = vpop.f32.mrb[0].mxu0  ;;  %v2059_v47 = vpack.c.bf16 %v692_v44, %v688_v43 }
 0x10e   : > { %v1572_v48 = vpop.f32.mrb[1].mxu0  ;;  %821 = vrot.lane.b32.xlu1 %v2057_v45, %s1830_s26  ;;  %v714_v49 = vsel %vm709_vm1, %v2057_v45, 0  ;;  %v526_v63 = vadd.f32 %v1461_v60, %v525_v46 }
 0x10f   : > { %v528_v50 = vpop.f32.mrb[2].mxu0  ;;  %v695_v51 = vpop.f32.mrb[4].mxu1  ;;  %1575 = vmatpush3.bf16.xpose.msra.mxu0 %v714_v49 }
 0x110   : > { %v1573_v52 = vpop.f32.mrb[3].mxu0  ;;  %v697_v53 = vpop.f32.mrb[5].mxu1  ;;  %1576 = vmatprep.subr.bf16.mxu0 %v1827_v2  ;;  %v696_v55 = vadd.f32 %v695_v51, %v552_v35  ;;  %v2078_v1 = vpack.c.bf16 %v526_v63, %v526_v63 }
 0x111   : > { %v699_v54 = vpop.f32.mrb[6].mxu1  ;;  %v698_v58 = vadd.f32 %v697_v53, %v556_v37 }
 0x112   : > { %v700_v56 = vadd.f32 %v699_v54, %v552_v35  ;;  %v701_v57 = vpop.f32.mrb[7].mxu1 }
 0x113   : > { %v702_v59 = vadd.f32 %v701_v57, %v556_v37 }
 0x114   : > { %v2069_v61 = vpack.c.bf16 %v700_v56, %v696_v55 }
 0x115   : > { %v2071_v62 = vpack.c.bf16 %v702_v59, %v698_v58 }
 0x116   : > { %823 = vrot.lane.b32.xlu1 %v2069_v61, %s1830_s26  ;;  %v717_v0 = vsel %vm709_vm1, %v2069_v61, 0 }
 0x117   : > { %1577 = vmatpush3.bf16.xpose.msra.mxu0 %v717_v0 }
 0x118   : > { %1582 = vmatprep.subr.bf16.mxu0 %v1827_v2 }
 0x11e   : > { %1579 = vmatmul.mubr.msk.bf16.vlgmr.msra.gmra.mrb[4].mxu0 %vm709_vm1, %v2078_v1 }
 0x11f   : > { %1583 = vmatpush3.bf16.msra.mxu0 %v2059_v47  ;;  %1586 = vmatprep.mubr.msk.bf16.mxu0 %vm1829_vm0, %v1827_v2 }
 0x120   : > { %1584 = vmatprep.subr.bf16.mxu0 %v1827_v2 }
 0x123   : > { %1585 = vmatpush3.bf16.msra.mxu0 %v2071_v62 }
 0x124   : > { %1590 = vmatprep.subr.bf16.mxu0 %v1827_v2 }
 0x180   : > { %v822_v17 = vpop.permute.xlu1 %821 }
 0x181   : > { %v829_v19 = vsel %vm709_vm1, %v822_v17, 0 }
 0x188   : > { %v824_v20 = vpop.permute.xlu1 %823 }
 0x189   : > { %v832_v21 = vsel %vm709_vm1, %v824_v20, 0 }
 0x1f1   : > { %v753_v3 = vpop.f32.mrb[4].mxu0 }
 0x1f2   : > { %v759_v4 = vmul.f32 0.17677669, %v753_v3  ;;  %v1580_v5 = vpop.f32.mrb[5].mxu0 }
 0x1f3   : > { %v756_v6 = vpop.f32.mrb[6].mxu0 }
 0x1f4   : > { %v1581_v7 = vpop.f32.mrb[7].mxu0  ;;  %v760_v8 = vsel %vm709_vm1, %v759_v4, -inf }
 0x1f5   : > { %761 = vmax.xlane.f32.xlu0 %v760_v8 }
 0x282   : > { %v762_v9 = vpop.xlane.xlu0 %761 }
 0x283   : > { %v763_v10 = vsub.f32 %v759_v4, %v762_v9 }
 0x285   : > { %v764_v11 = vmul.f32 1.442695, %v763_v10 }
 0x287   : > { %1745 = vpow2.f32 %v764_v11 }
 0x291   : > { %v1746_v12 = vpop.eup %1745 }
 0x292   : > { %v766_v13 = vsel %vm709_vm1, %v1746_v12, 0.0 }
 0x293   : > { %767 = vadd.xlane.f32.xlu0 %v766_v13 }
 0x2a9   : > { %817 = vrot.lane.b32.xlu0 %v2078_v1, %s1830_s26 }
 0x320   : > { %v768_v14 = vpop.xlane.xlu0 %767 }
 0x321   : > { %1747 = vrcp.f32 %v768_v14 }
 0x324   : > { %v818_v22 = vpop.permute.xlu0 %817 }
 0x32b   : > { %v1748_v15 = vpop.eup %1747 }
 0x32c   : > { %v2092_v16 = vmul.f32 %v1748_v15, %v1746_v12 }
 0x32e   : > { %v772_v18 = vpack.c.bf16 %v2092_v16, %v2092_v16 }
 0x330   : > { %1587 = vmatmul.mubr.msk.bf16.vlgmr.msra.gmra.mrb[8].mxu0 %vm709_vm1, %v772_v18 }
 0x331   : > { %1591 = vmatpush3.bf16.xpose.msra.mxu0 %v829_v19  ;;  %1594 = vmatprep.mubr.msk.bf16.mxu0 %vm1829_vm0, %v1827_v2 }
 0x332   : > { %1592 = vmatprep.subr.bf16.mxu0 %v1827_v2 }
 0x339   : > { %1593 = vmatpush3.bf16.xpose.msra.mxu0 %v832_v21 }
 0x33a   : > { %1614 = vmatprep.subr.bf16.mxu0 %v1827_v2 }
 0x340   : > { %1595 = vmatmul.mubr.msk.bf16.vlgmr.msra.gmra.mrb[12].mxu0 %vm709_vm1, %v818_v22 }
 0x341   : > { %1618 = vmatprep.mubr.msk.bf16.mxu0 %vm1829_vm0, %v1827_v2 }
 0x403   : > { %v2106_v23 = vpop.f32.mrb[8].mxu0 }
 0x404   : > { %v1588_v24 = vpop.f32.mrb[9].mxu0 }
 0x405   : > { %v813_v25 = vpop.f32.mrb[10].mxu0 }
 0x406   : > { %v1589_v26 = vpop.f32.mrb[11].mxu0 }
 0x413   : > { %v868_v28 = vpop.f32.mrb[12].mxu0 }
 0x414   : > { %v874_v29 = vmul.f32 0.17677669, %v868_v28  ;;  %v1596_v30 = vpop.f32.mrb[13].mxu0 }
 0x415   : > { %v871_v31 = vpop.f32.mrb[14].mxu0 }
 0x416   : > { %v1597_v32 = vpop.f32.mrb[15].mxu0  ;;  %v875_v33 = vsel %vm709_vm1, %v874_v29, -inf }
 0x417   : > { %876 = vmax.xlane.f32.xlu1 %v875_v33 }
 0x428   : > { %890 = vrot.lane.b32.xlu1 %v2059_v47, %s1830_s26 }
 0x42c   : > { %941 = vrot.lane.b32.xlu1 %v2057_v45, %s1831_s22 }
 0x430   : > { %943 = vrot.lane.b32.xlu1 %v2069_v61, %s1831_s22 }
 0x434   : > { %939 = vrot.lane.b32.xlu1 %v2078_v1, %s1831_s22 }
 0x4a4   : > { %v877_v34 = vpop.xlane.xlu1 %876 }
 0x4a5   : > { %v878_v35 = vsub.f32 %v874_v29, %v877_v34 }
 0x4a7   : > { %v879_v36 = vmul.f32 1.442695, %v878_v35 }
 0x4a8   : > { %v891_v37 = vpop.permute.xlu1 %890 }
 0x4a9   : > { %1749 = vpow2.f32 %v879_v36  ;;  %1599 = vmatpush3.bf16.msra.mxu1 %v891_v37 }
 0x4aa   : > { %1600 = vmatprep.subr.bf16.mxu1 %v1827_v2 }
 0x4ac   : > { %v942_v44 = vpop.permute.xlu1 %941 }
 0x4ad   : > { %v949_v48 = vsel %vm709_vm1, %v942_v44, 0  ;;  %v1741_v44 = vld [vmem:[%s2275_s6 + $0x20] sm:$0xff]  }
 0x4b0   : > { %v944_v49 = vpop.permute.xlu1 %943 }
 0x4b1   : > { %v952_v50 = vsel %vm709_vm1, %v944_v49, 0  ;;  %v1744_v49 = vld [vmem:[%s2275_s6 + $0x38] sm:$0xff]  }
 0x4b3   : > { %v1750_v38 = vpop.eup %1749 }
 0x4b4   : > { %v881_v39 = vsel %vm709_vm1, %v1750_v38, 0.0  ;;  %v940_v51 = vpop.permute.xlu1 %939 }
 0x4b5   : > { %882 = vadd.xlane.f32.xlu0 %v881_v39 }
 0x4cb   : > { %892 = vrot.lane.b32.xlu0 %v2071_v62, %s1830_s26 }
 0x542   : > { %v883_v40 = vpop.xlane.xlu0 %882 }
 0x543   : > { %1751 = vrcp.f32 %v883_v40  ;;  %v1737_v40 = vld [vmem:[%s2275_s6] sm:$0xff]  }
 0x546   : > { %v893_v41 = vpop.permute.xlu0 %892 }
 0x547   : > { %1601 = vmatpush3.bf16.msra.mxu1 %v893_v41  ;;  %v1738_v41 = vld [vmem:[%s2275_s6 + $0x8] sm:$0xff]  }
 0x548   : > { %1606 = vmatprep.subr.bf16.mxu1 %v1827_v2 }
 0x54d   : > { %v1752_v42 = vpop.eup %1751 }
 0x54e   : > { %v885_v43 = vmul.f32 %v1752_v42, %v1750_v38  ;;  %v1739_v42 = vld [vmem:[%s2275_s6 + $0x10] sm:$0xff]  }
 0x550   : > { %v887_v46 = vpack.c.bf16 %v885_v43, %v885_v43  ;;  %v886_v9 = vadd.f32 %v885_v43, %v2092_v16  ;;  %v1740_v43 = vld [vmem:[%s2275_s6 + $0x18] sm:$0xff]  }
 0x552   : > { %1603 = vmatmul.mubr.msk.bf16.vlgmr.msra.gmra.mrb[8].mxu1 %vm709_vm1, %v887_v46  ;;  %v1742_v46 = vld [vmem:[%s2275_s6 + $0x28] sm:$0xff]  }
 0x553   : > { %1607 = vmatpush3.bf16.xpose.msra.mxu1 %v949_v48  ;;  %1610 = vmatprep.mubr.msk.bf16.mxu1 %vm1829_vm0, %v1827_v2  ;;  %v1743_v48 = vld [vmem:[%s2275_s6 + $0x30] sm:$0xff]  }
 0x554   : > { %1608 = vmatprep.subr.bf16.mxu1 %v1827_v2 }
 0x55b   : > { %1609 = vmatpush3.bf16.xpose.msra.mxu1 %v952_v50 }
 0x55c   : > { %1630 = vmatprep.subr.bf16.mxu1 %v1827_v2 }
 0x562   : > { %1611 = vmatmul.mubr.msk.bf16.vlgmr.msra.gmra.mrb[12].mxu1 %vm709_vm1, %v940_v51 }
 0x563   : > { %1634 = vmatprep.mubr.msk.bf16.mxu1 %vm1829_vm0, %v1827_v2 }
 0x625   : > { %v933_v52 = vpop.f32.mrb[8].mxu1 }
 0x626   : > { %v1604_v53 = vpop.f32.mrb[9].mxu1 }
 0x627   : > { %v936_v54 = vpop.f32.mrb[10].mxu1 }
 0x628   : > { %v1605_v55 = vpop.f32.mrb[11].mxu1 }
 0x635   : > { %v988_v56 = vpop.f32.mrb[12].mxu1 }
 0x636   : > { %v994_v57 = vmul.f32 0.17677669, %v988_v56  ;;  %v1612_v58 = vpop.f32.mrb[13].mxu1 }
 0x637   : > { %v991_v59 = vpop.f32.mrb[14].mxu1 }
 0x638   : > { %v1613_v60 = vpop.f32.mrb[15].mxu1  ;;  %v995_v63 = vsel %vm709_vm1, %v994_v57, -inf }
 0x639   : > { %996 = vmax.xlane.f32.xlu1 %v995_v63  ;;  %v1496_v60 = vld [vmem:[%s2276_s7] ss:$0 sm:$0xff] }
 0x64a   : > { %1008 = vrot.lane.b32.xlu1 %v2059_v47, %s1831_s22 }
 0x64e   : > { %1059 = vrot.lane.b32.xlu1 %v2057_v45, %s1832_s24 }
 0x652   : > { %1061 = vrot.lane.b32.xlu1 %v2069_v61, %s1832_s24 }
 0x656   : > { %1057 = vrot.lane.b32.xlu1 %v2078_v1, %s1832_s24 }
 0x6c6   : > { %v997_v0 = vpop.xlane.xlu1 %996 }
 0x6c7   : > { %v998_v3 = vsub.f32 %v994_v57, %v997_v0 }
 0x6c9   : > { %v999_v4 = vmul.f32 1.442695, %v998_v3 }
 0x6ca   : > { %v1009_v5 = vpop.permute.xlu1 %1008 }
 0x6cb   : > { %1753 = vpow2.f32 %v999_v4  ;;  %1615 = vmatpush3.bf16.msra.mxu0 %v1009_v5 }
 0x6cc   : > { %1616 = vmatprep.subr.bf16.mxu0 %v1827_v2 }
 0x6ce   : > { %v1060_v10 = vpop.permute.xlu1 %1059 }
 0x6cf   : > { %v1067_v13 = vsel %vm709_vm1, %v1060_v10, 0 }
 0x6d2   : > { %v1062_v14 = vpop.permute.xlu1 %1061 }
 0x6d3   : > { %v1070_v15 = vsel %vm709_vm1, %v1062_v14, 0 }
 0x6d5   : > { %v1754_v6 = vpop.eup %1753 }
 0x6d6   : > { %v1001_v7 = vsel %vm709_vm1, %v1754_v6, 0.0  ;;  %v1058_v17 = vpop.permute.xlu1 %1057 }
 0x6d7   : > { %1002 = vadd.xlane.f32.xlu0 %v1001_v7 }
 0x6ed   : > { %1010 = vrot.lane.b32.xlu0 %v2071_v62, %s1831_s22 }
 0x764   : > { %v1003_v45 = vpop.xlane.xlu0 %1002 }
 0x765   : > { %1755 = vrcp.f32 %v1003_v45 }
 0x768   : > { %v1011_v61 = vpop.permute.xlu0 %1010 }
 0x769   : > { %1617 = vmatpush3.bf16.msra.mxu0 %v1011_v61 }
 0x76a   : > { %1622 = vmatprep.subr.bf16.mxu0 %v1827_v2 }
 0x76f   : > { %v1756_v1 = vpop.eup %1755 }
 0x770   : > { %v1005_v8 = vmul.f32 %v1756_v1, %v1754_v6 }
 0x772   : > { %v1007_v11 = vpack.c.bf16 %v1005_v8, %v1005_v8  ;;  %v1006_v12 = vadd.f32 %v1005_v8, %v886_v9 }
 0x774   : > { %1619 = vmatmul.mubr.msk.bf16.vlgmr.msra.gmra.mrb[16].mxu0 %vm709_vm1, %v1007_v11 }
 0x775   : > { %1623 = vmatpush3.bf16.xpose.msra.mxu0 %v1067_v13  ;;  %1626 = vmatprep.mubr.msk.bf16.mxu0 %vm1829_vm0, %v1827_v2 }
 0x776   : > { %1624 = vmatprep.subr.bf16.mxu0 %v1827_v2 }
 0x77d   : > { %1625 = vmatpush3.bf16.xpose.msra.mxu0 %v1070_v15 }
 0x784   : > { %1627 = vmatmul.mubr.msk.bf16.vlgmr.msra.gmra.mrb[20].mxu0 %vm709_vm1, %v1058_v17 }
 0x847   : > { %v1051_v16 = vpop.f32.mrb[16].mxu0 }
 0x848   : > { %v1620_v18 = vpop.f32.mrb[17].mxu0 }
 0x849   : > { %v1054_v19 = vpop.f32.mrb[18].mxu0 }
 0x84a   : > { %v1621_v20 = vpop.f32.mrb[19].mxu0 }
 0x857   : > { %v1106_v21 = vpop.f32.mrb[20].mxu0 }
 0x858   : > { %v1112_v22 = vmul.f32 0.17677669, %v1106_v21  ;;  %v1628_v24 = vpop.f32.mrb[21].mxu0 }
 0x859   : > { %v1109_v25 = vpop.f32.mrb[22].mxu0 }
 0x85a   : > { %v1629_v26 = vpop.f32.mrb[23].mxu0  ;;  %v1113_v28 = vsel %vm709_vm1, %v1112_v22, -inf }
 0x85b   : > { %1114 = vmax.xlane.f32.xlu0 %v1113_v28 }
 0x871   : > { %1126 = vrot.lane.b32.xlu0 %v2059_v47, %s1832_s24 }
 0x875   : > { %1176 = vrot.lane.b32.xlu0 %v933_v52, %s1832_s24 }
 0x8e8   : > { %v1115_v29 = vpop.xlane.xlu0 %1114 }
 0x8e9   : > { %v1116_v30 = vsub.f32 %v1112_v22, %v1115_v29 }
 0x8eb   : > { %v1117_v31 = vmul.f32 1.442695, %v1116_v30 }
 0x8ec   : > { %v1127_v32 = vpop.permute.xlu0 %1126 }
 0x8ed   : > { %1757 = vpow2.f32 %v1117_v31  ;;  %1631 = vmatpush3.bf16.msra.mxu1 %v1127_v32 }
 0x8ee   : > { %1632 = vmatprep.subr.bf16.mxu1 %v1827_v2 }
 0x8f0   : > { %v1177_v54 = vpop.permute.xlu0 %1176 }
 0x8f1   : > { %v1187_v56 = vsel %vm709_vm1, %v2106_v23, %v1177_v54 }
 0x8f7   : > { %v1758_v33 = vpop.eup %1757 }
 0x8f8   : > { %v1119_v34 = vsel %vm709_vm1, %v1758_v33, 0.0 }
 0x8f9   : > { %1120 = vadd.xlane.f32.xlu1 %v1119_v34 }
 0x90a   : > { %1128 = vrot.lane.b32.xlu1 %v2071_v62, %s1832_s24  ;;  %s2294_s24 = sand.u32 1, %s1817_s18  }
 0x90b   : > { %s1341_s12 = scalar_lea.sflag [#allocation3], %s2294_s24 }
 0x90e   : > { %1180 = vrot.lane.b32.xlu1 %v1051_v16, %s1831_s22 }
 0x986   : > { %v1121_v47 = vpop.xlane.xlu1 %1120 }
 0x987   : > { %1759 = vrcp.f32 %v1121_v47 }
 0x98a   : > { %v1129_v35 = vpop.permute.xlu1 %1128 }
 0x98b   : > { %1633 = vmatpush3.bf16.msra.mxu1 %v1129_v35 }
 0x98c   : > { %1638 = vmatprep.subr.bf16.mxu1 %v1827_v2 }
 0x98e   : > { %v1181_v55 = vpop.permute.xlu1 %1180 }
 0x98f   : > { %v1189_v57 = vsel %vm1188_vm2, %v1187_v56, %v1181_v55 }
 0x991   : > { %v1760_v36 = vpop.eup %1759 }
 0x992   : > { %v1123_v37 = vmul.f32 %v1760_v36, %v1758_v33 }
 0x994   : > { %v1125_v38 = vpack.c.bf16 %v1123_v37, %v1123_v37  ;;  %v1124_v39 = vadd.f32 %v1123_v37, %v1006_v12 }
 0x996   : > { %1635 = vmatmul.mubr.msk.bf16.vlgmr.msra.gmra.mrb[16].mxu1 %vm709_vm1, %v1125_v38  ;;  %v1192_v62 = vmul.f32 0.25, %v1124_v39 }
 0x997   : > { %1654 = vmatprep.mubr.msk.bf16.mxu1 %vm1829_vm0, %v1827_v2  ;;  %1639 = vmatpush3.bf16.msra.mxu1 %v1737_v40 }
 0x998   : > { %1335 = vst.msk [vmem:[%s2283_s30] sm:$0xff] %vm709_vm1, %v1192_v62  ;;  %1640 = vmatprep.subr.bf16.mxu1 %v1827_v2 }
 0x99b   : > { %1641 = vmatpush3.bf16.msra.mxu1 %v1738_v41 }
 0x99c   : > { %1642 = vmatprep.subr.bf16.mxu1 %v1827_v2 }
 0x99f   : > { %1643 = vmatpush3.bf16.msra.mxu1 %v1739_v42 }
 0x9a0   : > { %1644 = vmatprep.subr.bf16.mxu1 %v1827_v2 }
 0x9a3   : > { %1645 = vmatpush3.bf16.msra.mxu1 %v1740_v43 }
 0x9a4   : > { %1646 = vmatprep.subr.bf16.mxu1 %v1827_v2 }
 0x9a7   : > { %1647 = vmatpush3.bf16.msra.mxu1 %v1741_v44 }
 0x9a8   : > { %1648 = vmatprep.subr.bf16.mxu1 %v1827_v2 }
 0x9ab   : > { %1649 = vmatpush3.bf16.msra.mxu1 %v1742_v46 }
 0x9ac   : > { %1650 = vmatprep.subr.bf16.mxu1 %v1827_v2 }
 0x9af   : > { %1651 = vmatpush3.bf16.msra.mxu1 %v1743_v48 }
 0x9b0   : > { %1652 = vmatprep.subr.bf16.mxu1 %v1827_v2 }
 0x9b3   : > { %1653 = vmatpush3.bf16.msra.mxu1 %v1744_v49 }
 0xa69   : > { %v1169_v50 = vpop.f32.mrb[16].mxu1 }
 0xa6a   : > { %1184 = vrot.lane.b32.xlu0 %v1169_v50, %s1830_s26  ;;  %v1636_v51 = vpop.f32.mrb[17].mxu1  ;;  %s1508_s26 = sshll.u32 %s1915_s21, 7 }
 0xa6b   : > { %v1172_v52 = vpop.f32.mrb[18].mxu1  ;;  %s2220_s30 = scalar_lea.hbm %s2280_s11, %s1508_s26 }
 0xa6c   : > { %v1637_v53 = vpop.f32.mrb[19].mxu1 }
 0xadc   : > { %v1185_v2 = vpop.permute.xlu0 %1184 }
 0xadd   : > { %v1191_v58 = vsel %vm1190_vm3, %v1189_v57, %v1185_v2 }
 0xade   : > { %v1193_v59 = vpack.c.bf16 %v1191_v58, %v1191_v58 }
 0xae0   : > { %1655 = vmatmul.mubr.bf16.vlgmr.msra.gmra.mrb[20].mxu1 %v1193_v59 }
 0xbb3   : > { %v1299_v63 = vpop.f32.mrb[20].mxu1 }
 0xbb4   : > { %v1300_v0 = vadd.f32 %v1496_v60, %v1299_v63  ;;  %v1656_v3 = vpop.f32.mrb[21].mxu1 }
 0xbb5   : > { %v1302_v4 = vpop.f32.mrb[22].mxu1 }
 0xbb6   : > { %v1657_v5 = vpop.f32.mrb[23].mxu1  ;;  %v1305_v23 = vadd.f32 %v1300_v0, %v2041_v27 }
 0xbb8   : > { %1308 = vadd.xlane.f32.xlu1 %v1305_v23 }
 0xc45   : > { %v1309_v6 = vpop.xlane.xlu1 %1308 }
 0xc46   : > { %v1311_v7 = vmul.f32 0.0078125, %v1309_v6 }
 0xc48   : > { %v1312_v45 = vsub.f32 %v1305_v23, %v1311_v7 }
 0xc4a   : > { %v1313_v61 = vmul.f32 %v1312_v45, %v1312_v45 }
 0xc4c   : > { %1314 = vadd.xlane.f32.xlu0 %v1313_v61 }
 0xc4d   : > { %1776 = shalt.err (!%p1773_p3)
}
 0xc4e   : > { %s1777_s21 = scalar_lea.hbm %s2220_s30, 128  ;;  %s1781_s0 = scalar_lea.hbm %s2280_s11, 256 }
 0xc4f   : > { %p1778_p4 = scmp.ne.s32.totalorder %s2220_s30, %s1777_s21  ;;  %p1782_p9 = scmp.lt.u32.totalorder %s2220_s30, %s2280_s11 }
 0xc50   : > { %p1783_p10 = scmp.lt.u32.totalorder %s1781_s0, %s1777_s21  ;;  %p1785_p12 = scmp.lt.u32.totalorder %s1777_s21, %s2220_s30 }
 0xc51   : > { %p1779_p7 = pnand %p1778_p4, %p1932_p5 }
 0xc52   : > { %p1784_p11 = por %p1783_p10, %p1782_p9 }
 0xc53   : > { %p1780_p8 = pneg %p1779_p7 }
 0xc54   : > { %p1786_p13 = por %p1785_p12, %p1784_p11 }
 0xc56   : > { %p1787_p0 = pnand %p1786_p13, %p1780_p8 }
 0xc58   : > { %1790 = shalt.err (!%p1787_p0)
}
 0xc59   : > { %1658 = dma.vmem_to_hbm [thread:$0]  (%p1932_p5), %s1358_s25, 128, %s2220_s30, %s1341_s12   ;;  %v1505_v10 = vld [vmem:[%s2277_s8] ss:$0 sm:$0xff] }
 0xc5a   : > { %v1506_v12 = vld [vmem:[%s2278_s9] ss:$0 sm:$0xff]  ;;  %s2295_s14 = sshll.u32 %s1972_s16, 3 }
 0xc5b   : > { %s412_s25 = scalar_lea.vmem %s2279_s10, %s2295_s14 }
 0xcd9   : > { %v1315_v27 = vpop.xlane.xlu0 %1314 }
 0xcda   : > { %v1316_v1 = vmul.f32 0.0078125, %v1315_v27 }
 0xcdc   : > { %v1317_v8 = vadd.f32 1e-05, %v1316_v1 }
 0xcde   : > { %1761 = vrsqrt.f32 %v1317_v8 }
 0xce8   : > { %v1762_v9 = vpop.eup %1761 }
 0xce9   : > { %v1319_v11 = vmul.f32 %v1762_v9, %v1312_v45 }
 0xceb   : > { %v1326_v13 = vmul.f32 %v1505_v10, %v1319_v11 }
 0xced   : > { %v1333_v14 = vadd.f32 %v1506_v12, %v1326_v13 }
 0xcef   : > { %1334 = vst [vmem:[%s412_s25] sm:$0xff] %v1333_v14 }
 0xcf0 PF: > { %p1664_p5 = scmp.ge.s32.totalorder %s1825_s20, 2  ;;  %s1376_s30 = sand.u32 1, %s1813_s17  }
 0xcf1   : > { %s1377_s12 = scalar_lea.sflag [#allocation3], %s1376_s30 }
 0xcf2   : > { %p1661_p1 = pnand %p1664_p5, %p1936_p6 }
 0xcf4   : > { %1808 = dma.done.wait (!%p1661_p1), %s1377_s12, 128  }
 0xcf5   : > { %1810 = vsyncadd (!%p1661_p1), %s1377_s12, 4294967168  ;;  %s2296_s16 = sld [smem:[#allocation5_spill]]  ;;  %p22_p2 = scmp.ge.s32.totalorder %s1919_s23, 4  }
 0xcf6   : > { %s2297_s17 = smov %s1817_s18  ;;  %s2298_s18 = smov %s1821_s19 }
 0xcf7   : > { %s2300_s20 = smov %s1919_s23  ;;  %24 = sbr.rel (!%p22_p2) target bundleno = 7 (0x7), region = 110 }
 0xcfb   : > { %s2299_s19 = smov %s2296_s16 }
 0xcfe   :  { %1382 = vsyncpa [#allocation3], 1 }
 0xcff   :  { %1384 = vsyncpa [#allocation3 + $0x1], 1 }

// kernel: _lambda_.6
= control target key start
LH: loop header
LB: loop body
LE: loop exit
PB: predicated region body
PF: predicated region fallthrough
CT: control target
= control target key end

     0   :  { %12 = vsyncpa [#allocation3], 0  ;;  %s1571_s24 = smov 0   ;;  %s1765_s0 = inlined_call_operand.vmem [shape: f32[2,8,128], index: 0, kind: input, shape index: {}]   ;;  %s1766_s1 = inlined_call_operand.hbm [shape: bf16[128,384], index: 1, kind: input, shape index: {}]   ;;  %s1767_s2 = inlined_call_operand.vmem [shape: f32[1,384], index: 2, kind: input, shape index: {}]   ;;  %s1768_s3 = inlined_call_operand.vmem [shape: bf16[128,128], index: 3, kind: input, shape index: {}]   ;;  %s1769_s4 = inlined_call_operand.vmem [shape: f32[1,128], index: 4, kind: input, shape index: {}]   ;;  %s1770_s5 = inlined_call_operand.vmem [shape: f32[1,128], index: 5, kind: input, shape index: {}]   ;;  %s1771_s6 = inlined_call_operand.vmem [shape: f32[1,128], index: 6, kind: input, shape index: {}]   ;;  %s1772_s7 = inlined_call_operand.vmem [shape: f32[2,8,128], index: 7, kind: output, shape index: {}]  }
   0x1 LB: > { %s1577_s25 = sadd.s32 4294967295, %s1520_s24   ;;  %p1223_p0 = scmp.ge.s32.totalorder %s1520_s24, 1  ;;  %s1520_s24 = sphi %s1571_s24, %s18_s24  }
   0x2   : > { %p201_p1 = scmp.lt.s32.totalorder %s1520_s24, 3  ;;  %s1522_s26 = smov [#allocation2]  }
   0x3   : > { %s213_s27 = sshll.u32 %s1522_s26, 4  ;;  %p1773_p3 = scmp.eq.s32.totalorder %s1577_s25, 0  ;;  %s214_s27 = int_to_ptr.vmem [resolvable:$true] %s213_s27 }
   0x4   : > { %p1581_p2 = pnand %p1223_p0, %p201_p1  ;;  %s1482_s9 = scalar_lea.hbm %s1766_s1, 3072 }
   0x5   : > { %p1483_p6 = scmp.ne.s32.totalorder %s1766_s1, %s1482_s9  ;;  %p1489_p10 = scmp.lt.u32.totalorder %s1482_s9, %s1766_s1 }
   0x6   : > { %s1775_s28 = scalar_select %p1581_p2, 1, 0 }
   0x7   : > { %p1401_p4 = pneg %p1581_p2 }
   0x9   : > { %p1590_p5 = pnand %p1773_p3, %p1401_p4 }
   0xb   : > { %p1484_p7 = pneg %p1590_p5 }
   0xd   : > { %p1485_p8 = pnand %p1484_p7, %p1483_p6 }
   0xf   : > { %p1486_p9 = pneg %p1485_p8 }
  0x11   : > { %p1491_p11 = pnand %p1489_p10, %p1486_p9 }
  0x13   : > { %1494 = shalt.err (!%p1491_p11)
}
  0x14   : > { %s1495_s14 = scalar_lea.vmem %s214_s27, 3072  ;;  %p1503_p1 = scmp.lt.s32.totalorder %s214_s27, %s214_s27 }
  0x15   : > { %p1496_p12 = scmp.ne.s32.totalorder %s214_s27, %s1495_s14  ;;  %p1504_p4 = scmp.lt.s32.totalorder %s1495_s14, %s1495_s14 }
  0x17   : > { %p1498_p13 = pnand %p1496_p12, %p1484_p7  ;;  %p1505_p3 = por %p1504_p4, %p1503_p1 }
  0x19   : > { %p1499_p0 = pneg %p1498_p13 }
  0x1b   : > { %p1506_p2 = pnand %p1505_p3, %p1499_p0 }
  0x1d   : > { %1509 = shalt.err (!%p1506_p2)
}
  0x1e   : > { %s1523_s15 = smov 192   ;;  %s1524_s16 = smov 12  }
  0x1f   : > { %1404 = dma.hbm_to_vmem [thread:$0]  (!%p1590_p5), %s1766_s1, 3072, %s214_s27, [#allocation3], %s1523_s15, %s1523_s15, %s1524_s16  }
  0x20   : > { %p1777_p6 = scmp.ne.s32.totalorder %s1775_s28, 0 }
  0x21   : > { %p1778_p8 = scmp.eq.s32.totalorder (!%p1777_p6), %s1577_s25, 0 }
  0x22   : > { %251 = sbr.rel (%p1777_p6) target bundleno = 2251 (0x8cb), region = 48 }
  0x29   : > { %1515 = dma.done.wait (%p1778_p8), [#allocation3], 3072   ;;  %p1779_p7 = pmov %p1778_p8 }
  0x2a   : > { %v1525_v0 = vmov 0   ;;  %v1526_v1 = vmov 0.0   ;;  %v1424_v2 = vld [vmem:[#allocation2 + $0x4] ss:$12 sps:$4 sm:$0xff]   ;;  %v1426_v3 = vld [vmem:[#allocation2] ss:$12 sps:$4 sm:$0xff]   ;;  %v326_v28 = vlaneseq }
  0x2b   : > { %1517 = vsyncadd (%p1779_p7), [#allocation3], 4294964224  ;;  %501 = vmatprep.mubr.bf16.mxu0 %v1525_v0  ;;  %1309 = vmatprep.subr.bf16.mxu1 %v1526_v1  ;;  %v1427_v4 = vld [vmem:[#allocation2 + $0x1c] ss:$12 sps:$4 sm:$0xff]   ;;  %v1429_v5 = vld [vmem:[#allocation2 + $0x18] ss:$12 sps:$4 sm:$0xff]  }
  0x2c   : > { %469 = vmatprep.subr.bf16.mxu0 %v1424_v2  ;;  %v1430_v6 = vld [vmem:[#allocation2 + $0x34] ss:$12 sps:$4 sm:$0xff]   ;;  %p281_p2 = scmp.lt.s32.totalorder %s1577_s25, 1  ;;  %v1432_v7 = vld [vmem:[#allocation2 + $0x30] ss:$12 sps:$4 sm:$0xff]   ;;  %vm1527_vm0 = vmmov 0  }
  0x2d   : > { %470 = vmatpush1.bf16.msra.mxu0 %v1426_v3  ;;  %v1433_v8 = vld [vmem:[#allocation2 + $0x4c] ss:$12 sps:$4 sm:$0xff]   ;;  %v1435_v9 = vld [vmem:[#allocation2 + $0x48] ss:$12 sps:$4 sm:$0xff]   ;;  %v1436_v11 = vld [vmem:[#allocation2 + $0x64] ss:$12 sps:$4 sm:$0xff]   ;;  %1325 = vmatprep.mubr.msk.bf16.mxu1 %vm1527_vm0, %v1526_v1 }
  0x2e   : > { %471 = vmatprep.subr.bf16.mxu0 %v1427_v4  ;;  %s1781_s25 = smov (!%p281_p2, %s1577_s25), 1  ;;  %v1448_v10 = vld [vmem:[#allocation2 + $0x8] ss:$12 sps:$4 sm:$0xff]   ;;  %v1449_v12 = vld [vmem:[#allocation2 + $0x20] ss:$12 sps:$4 sm:$0xff]   ;;  %v327_v29 = vshrl.u32 %v326_v28, 7 }
  0x2f   : > { %1310 = vmatpush3.bf16.msra.mxu1 %v1448_v10  ;;  %s1228_s19 = sshll.u32 %s1781_s25, 3  ;;  %v1438_v13 = vld [vmem:[#allocation2 + $0x60] ss:$12 sps:$4 sm:$0xff]   ;;  %v1439_v14 = vld [vmem:[#allocation2 + $0x7c] ss:$12 sps:$4 sm:$0xff]   ;;  %vm553_vm1 = vcmask 261120  }
  0x30   : > { %1311 = vmatprep.subr.bf16.mxu1 %v1526_v1  ;;  %v1441_v15 = vld [vmem:[#allocation2 + $0x78] ss:$12 sps:$4 sm:$0xff]   ;;  %v1442_v17 = vld [vmem:[#allocation2 + $0x94] ss:$12 sps:$4 sm:$0xff]   ;;  %v1451_v18 = vld [vmem:[#allocation2 + $0x50] ss:$12 sps:$4 sm:$0xff]   ;;  %s284_s22 = scalar_lea.vmem %s1765_s0, %s1228_s19  ;;  %s288_s11 = scalar_lea.vmem %s1772_s7, %s1228_s19 }
  0x31   : > { %472 = vmatpush1.bf16.msra.mxu0 %v1429_v5  ;;  %v1450_v16 = vld [vmem:[#allocation2 + $0x38] ss:$12 sps:$4 sm:$0xff]   ;;  %v1444_v19 = vld [vmem:[#allocation2 + $0x90] ss:$12 sps:$4 sm:$0xff]   ;;  %v1452_v21 = vld [vmem:[#allocation2 + $0x68] ss:$12 sps:$4 sm:$0xff]  }
  0x32   : > { %473 = vmatprep.subr.bf16.mxu0 %v1430_v6  ;;  %v1445_v20 = vld [vmem:[#allocation2 + $0xac] ss:$12 sps:$4 sm:$0xff]   ;;  %v1447_v22 = vld [vmem:[#allocation2 + $0xa8] ss:$12 sps:$4 sm:$0xff]   ;;  %v1631_v23 = vld [vmem:[%s284_s22] sm:$0xff]  ;;  %v332_v30 = vsub.s32 1, %v327_v29 }
  0x33   : > { %1312 = vmatpush3.bf16.msra.mxu1 %v1449_v12  ;;  %v1453_v24 = vld [vmem:[#allocation2 + $0x80] ss:$12 sps:$4 sm:$0xff]   ;;  %v291_v25 = vpack.c.bf16 %v1631_v23, %v1631_v23  ;;  %v1454_v26 = vld [vmem:[#allocation2 + $0x98] ss:$12 sps:$4 sm:$0xff]   ;;  %v1455_v27 = vld [vmem:[#allocation2 + $0xb0] ss:$12 sps:$4 sm:$0xff]  }
  0x34   : > { %1313 = vmatprep.subr.bf16.mxu1 %v1526_v1  ;;  %v324_v31 = vld [vmem:[%s1767_s2] sm:$0x7]  ;;  %v328_v32 = vsub.s32 0, %v327_v29  ;;  %s1528_s27 = smov 96   ;;  %s1529_s28 = smov 64   ;;  %v336_v44 = vsub.s32 2, %v327_v29 }
  0x35   : > { %474 = vmatpush1.bf16.msra.mxu0 %v1432_v7  ;;  %v333_v33 = vrot.slane %v324_v31, %v332_v30  ;;  %s1530_s29 = smov 32   ;;  %vm617_vm2 = vcmask 1043456   ;;  %vm601_vm3 = vcmask 64512   ;;  %vm1010_vm4 = vcmask 523264  }
  0x36   : > { %475 = vmatprep.subr.bf16.mxu0 %v1433_v8  ;;  %v329_v34 = vrot.slane %v324_v31, %v328_v32  ;;  %v337_v45 = vrot.slane %v324_v31, %v336_v44  ;;  %vm1012_vm5 = vcmask 785408  }
  0x37   : > { %1314 = vmatpush3.bf16.msra.mxu1 %v1450_v16 }
  0x38   : > { %1315 = vmatprep.subr.bf16.mxu1 %v1526_v1 }
  0x39   : > { %476 = vmatpush1.bf16.msra.mxu0 %v1435_v9 }
  0x3a   : > { %477 = vmatprep.subr.bf16.mxu0 %v1436_v11 }
  0x3b   : > { %1316 = vmatpush3.bf16.msra.mxu1 %v1451_v18 }
  0x3c   : > { %1317 = vmatprep.subr.bf16.mxu1 %v1526_v1 }
  0x3d   : > { %478 = vmatpush1.bf16.msra.mxu0 %v1438_v13 }
  0x3e   : > { %479 = vmatprep.subr.bf16.mxu0 %v1439_v14 }
  0x3f   : > { %1318 = vmatpush3.bf16.msra.mxu1 %v1452_v21 }
  0x40   : > { %1319 = vmatprep.subr.bf16.mxu1 %v1526_v1 }
  0x41   : > { %480 = vmatpush1.bf16.msra.mxu0 %v1441_v15 }
  0x42   : > { %481 = vmatprep.subr.bf16.mxu0 %v1442_v17 }
  0x43   : > { %1320 = vmatpush3.bf16.msra.mxu1 %v1453_v24 }
  0x44   : > { %1321 = vmatprep.subr.bf16.mxu1 %v1526_v1 }
  0x45   : > { %482 = vmatpush1.bf16.msra.mxu0 %v1444_v19 }
  0x46   : > { %483 = vmatprep.subr.bf16.mxu0 %v1445_v20 }
  0x47   : > { %1322 = vmatpush3.bf16.msra.mxu1 %v1454_v26 }
  0x48   : > { %1323 = vmatprep.subr.bf16.mxu1 %v1526_v1 }
  0x49   : > { %484 = vmatpush1.bf16.msra.mxu0 %v1447_v22 }
  0x4a   : > { %1353 = vmatprep.subr.bf16.mxu0 %v1526_v1 }
  0x4b   : > { %1324 = vmatpush3.bf16.msra.mxu1 %v1455_v27 }
  0x4c   : > { %502 = vmatmul.mubr.bf16.vlgmr.msra.gmra.mrb[0].mxu0 %v291_v25  ;;  %1329 = vmatprep.subr.bf16.mxu1 %v1526_v1 }
  0x4d   : > { %1355 = vmatprep.mubr.msk.bf16.mxu0 %vm1527_vm0, %v1526_v1 }
  0x4e   : > { %1326 = vmatmul.mubr.bf16.vlgmr.msra.gmra.mrb[0].mxu1 %v291_v25 }
  0x4f   : > { %1331 = vmatprep.mubr.msk.bf16.mxu1 %vm1527_vm0, %v1526_v1 }
 0x11f   : > { %v503_v35 = vpop.f32.mrb[0].mxu0 }
 0x120   : > { %v505_v36 = vpop.f32.mrb[1].mxu0  ;;  %v504_v40 = vadd.f32 %v503_v35, %v329_v34 }
 0x121   : > { %v506_v37 = vadd.f32 %v505_v36, %v333_v33  ;;  %v507_v38 = vpop.f32.mrb[2].mxu0  ;;  %v544_v46 = vpop.f32.mrb[0].mxu1 }
 0x122   : > { %v508_v39 = vpop.f32.mrb[3].mxu0  ;;  %v550_v43 = vpack.c.bf16 %v504_v40, %v504_v40  ;;  %v545_v47 = vadd.f32 %v544_v46, %v337_v45  ;;  %v1327_v48 = vpop.f32.mrb[1].mxu1 }
 0x123   : > { %v551_v41 = vpack.c.bf16 %v506_v37, %v506_v37  ;;  %v547_v49 = vpop.f32.mrb[2].mxu1 }
 0x124   : > { %v1659_v50 = vpack.c.bf16 %v545_v47, %v545_v47  ;;  %v1328_v51 = vpop.f32.mrb[3].mxu1 }
 0x125   : > { %665 = vrot.lane.b32.xlu1 %v551_v41, %s1528_s27  ;;  %v558_v42 = vsel %vm553_vm1, %v551_v41, 0 }
 0x126   : > { %1330 = vmatpush3.bf16.xpose.msra.mxu1 %v558_v42  ;;  %v619_v52 = vsel %vm617_vm2, %v1659_v50, 0 }
 0x127   : > { %1335 = vmatprep.subr.bf16.mxu1 %v1526_v1 }
 0x129   : > { %662 = vrot.lane.b32.xlu1 %v550_v43, %s1528_s27 }
 0x12d   : > { %775 = vrot.lane.b32.xlu1 %v550_v43, %s1529_s28  ;;  %1332 = vmatmul.mubr.msk.bf16.vlgmr.msra.gmra.mrb[4].mxu1 %vm553_vm1, %v550_v43 }
 0x12e   : > { %1337 = vmatprep.mubr.msk.bf16.mxu1 %vm1527_vm0, %v1526_v1  ;;  %1336 = vmatpush3.bf16.msra.mxu1 %v619_v52 }
 0x12f   : > { %1341 = vmatprep.subr.bf16.mxu1 %v1526_v1 }
 0x131   : > { %888 = vrot.lane.b32.xlu1 %v551_v41, %s1530_s29 }
 0x135   : > { %886 = vrot.lane.b32.xlu1 %v550_v43, %s1530_s29 }
 0x197   : > { %v666_v0 = vpop.permute.xlu1 %665 }
 0x198   : > { %v671_v12 = vsel %vm553_vm1, %v666_v0, 0 }
 0x19b   : > { %v663_v2 = vpop.permute.xlu1 %662 }
 0x19f   : > { %v776_v4 = vpop.permute.xlu1 %775 }
 0x1a3   : > { %v889_v7 = vpop.permute.xlu1 %888 }
 0x1a4   : > { %v894_v10 = vsel %vm553_vm1, %v889_v7, 0  ;;  %v1456_v7 = vld [vmem:[%s1768_s3] sm:$0xff]  }
 0x1a7   : > { %v887_v13 = vpop.permute.xlu1 %886 }
 0x200   : > { %v594_v53 = vpop.f32.mrb[4].mxu1 }
 0x201   : > { %v600_v54 = vmul.f32 0.17677669, %v594_v53  ;;  %v1333_v55 = vpop.f32.mrb[5].mxu1 }
 0x202   : > { %v597_v56 = vpop.f32.mrb[6].mxu1 }
 0x203   : > { %v1334_v57 = vpop.f32.mrb[7].mxu1  ;;  %v602_v58 = vsel %vm601_vm3, %v600_v54, -inf }
 0x204   : > { %603 = vmax.xlane.f32.xlu0 %v602_v58 }
 0x291   : > { %v604_v59 = vpop.xlane.xlu0 %603 }
 0x292   : > { %v605_v60 = vsub.f32 %v600_v54, %v604_v59 }
 0x294   : > { %v606_v61 = vmul.f32 1.442695, %v605_v60 }
 0x296   : > { %1464 = vpow2.f32 %v606_v61 }
 0x2a0   : > { %v1465_v62 = vpop.eup %1464 }
 0x2a1   : > { %v608_v63 = vsel %vm601_vm3, %v1465_v62, 0.0 }
 0x2a2   : > { %609 = vadd.xlane.f32.xlu0 %v608_v63 }
 0x2b8   : > { %777 = vrot.lane.b32.xlu0 %v551_v41, %s1529_s28 }
 0x32f   : > { %v610_v3 = vpop.xlane.xlu0 %609 }
 0x330   : > { %1466 = vrcp.f32 %v610_v3 }
 0x333   : > { %v778_v5 = vpop.permute.xlu0 %777 }
 0x334   : > { %v783_v6 = vsel %vm553_vm1, %v778_v5, 0 }
 0x335   : > { %1354 = vmatpush3.bf16.xpose.msra.mxu0 %v783_v6 }
 0x336   : > { %1365 = vmatprep.subr.bf16.mxu0 %v1526_v1 }
 0x33a   : > { %v1467_v8 = vpop.eup %1466 }
 0x33b   : > { %v612_v9 = vmul.f32 %v1467_v8, %v1465_v62  ;;  %v1457_v8 = vld [vmem:[%s1768_s3 + $0x8] sm:$0xff]  }
 0x33c   : > { %1356 = vmatmul.mubr.msk.bf16.vlgmr.msra.gmra.mrb[4].mxu0 %vm553_vm1, %v776_v4 }
 0x33d   : > { %1366 = vmatpush3.bf16.xpose.msra.mxu0 %v894_v10  ;;  %v613_v11 = vpack.c.bf16 %v612_v9, %v612_v9  ;;  %1367 = vmatprep.mubr.msk.bf16.mxu0 %vm1527_vm0, %v1526_v1  ;;  %v1458_v9 = vld [vmem:[%s1768_s3 + $0x10] sm:$0xff]   ;;  %v1459_v10 = vld [vmem:[%s1768_s3 + $0x18] sm:$0xff]  }
 0x33e   : > { %1377 = vmatprep.subr.bf16.mxu0 %v1526_v1 }
 0x33f   : > { %1338 = vmatmul.mubr.msk.bf16.vlgmr.msra.gmra.mrb[8].mxu1 %vm601_vm3, %v613_v11  ;;  %v1460_v11 = vld [vmem:[%s1768_s3 + $0x20] sm:$0xff]  }
 0x340   : > { %1342 = vmatpush3.bf16.xpose.msra.mxu1 %v671_v12  ;;  %1343 = vmatprep.mubr.msk.bf16.mxu1 %vm1527_vm0, %v1526_v1  ;;  %v1461_v12 = vld [vmem:[%s1768_s3 + $0x28] sm:$0xff]  }
 0x341   : > { %1347 = vmatprep.subr.bf16.mxu1 %v1526_v1 }
 0x344   : > { %1368 = vmatmul.mubr.msk.bf16.vlgmr.msra.gmra.mrb[8].mxu0 %vm553_vm1, %v887_v13  ;;  %v1462_v13 = vld [vmem:[%s1768_s3 + $0x30] sm:$0xff]  }
 0x345   : > { %1393 = vmatprep.mubr.msk.bf16.mxu0 %vm1527_vm0, %v1526_v1  ;;  %1378 = vmatpush3.bf16.msra.mxu0 %v1456_v7 }
 0x346   : > { %1379 = vmatprep.subr.bf16.mxu0 %v1526_v1 }
 0x347   : > { %1344 = vmatmul.mubr.msk.bf16.vlgmr.msra.gmra.mrb[12].mxu1 %vm553_vm1, %v663_v2 }
 0x348   : > { %1349 = vmatprep.mubr.msk.bf16.mxu1 %vm1527_vm0, %v1526_v1 }
 0x349   : > { %1380 = vmatpush3.bf16.msra.mxu0 %v1457_v8 }
 0x34a   : > { %1381 = vmatprep.subr.bf16.mxu0 %v1526_v1 }
 0x34d   : > { %1382 = vmatpush3.bf16.msra.mxu0 %v1458_v9 }
 0x34e   : > { %1383 = vmatprep.subr.bf16.mxu0 %v1526_v1 }
 0x351   : > { %1384 = vmatpush3.bf16.msra.mxu0 %v1459_v10 }
 0x352   : > { %1385 = vmatprep.subr.bf16.mxu0 %v1526_v1 }
 0x355   : > { %1386 = vmatpush3.bf16.msra.mxu0 %v1460_v11 }
 0x356   : > { %1387 = vmatprep.subr.bf16.mxu0 %v1526_v1 }
 0x359   : > { %1388 = vmatpush3.bf16.msra.mxu0 %v1461_v12 }
 0x35a   : > { %1389 = vmatprep.subr.bf16.mxu0 %v1526_v1 }
 0x35d   : > { %1390 = vmatpush3.bf16.msra.mxu0 %v1462_v13 }
 0x35e   : > { %1391 = vmatprep.subr.bf16.mxu0 %v1526_v1 }
 0x40f   : > { %v819_v14 = vpop.f32.mrb[4].mxu0 }
 0x410   : > { %v825_v15 = vmul.f32 0.17677669, %v819_v14  ;;  %v1357_v16 = vpop.f32.mrb[5].mxu0 }
 0x411   : > { %v822_v17 = vpop.f32.mrb[6].mxu0 }
 0x412   : > { %v1685_v18 = vpop.f32.mrb[8].mxu1  ;;  %v1358_v19 = vpop.f32.mrb[7].mxu0  ;;  %v826_v20 = vsel %vm601_vm3, %v825_v15, -inf }
 0x413   : > { %827 = vmax.xlane.f32.xlu0 %v826_v20  ;;  %v1339_v21 = vpop.f32.mrb[9].mxu1  ;;  %v1463_v19 = vld [vmem:[%s1768_s3 + $0x38] sm:$0xff]  }
 0x414   : > { %v658_v22 = vpop.f32.mrb[10].mxu1  ;;  %1392 = vmatpush3.bf16.msra.mxu0 %v1463_v19 }
 0x415   : > { %v1340_v24 = vpop.f32.mrb[11].mxu1 }
 0x417   : > { %v930_v25 = vpop.f32.mrb[8].mxu0 }
 0x418   : > { %v1369_v26 = vpop.f32.mrb[9].mxu0  ;;  %v936_v33 = vmul.f32 0.17677669, %v930_v25 }
 0x419   : > { %v933_v27 = vpop.f32.mrb[10].mxu0 }
 0x41a   : > { %v707_v28 = vpop.f32.mrb[12].mxu1  ;;  %v1370_v29 = vpop.f32.mrb[11].mxu0  ;;  %v937_v36 = vsel %vm601_vm3, %v936_v33, -inf }
 0x41b   : > { %v713_v30 = vmul.f32 0.17677669, %v707_v28  ;;  %v1345_v31 = vpop.f32.mrb[13].mxu1 }
 0x41c   : > { %v710_v32 = vpop.f32.mrb[14].mxu1 }
 0x41d   : > { %v1346_v34 = vpop.f32.mrb[15].mxu1  ;;  %v714_v35 = vsel %vm601_vm3, %v713_v30, -inf }
 0x41e   : > { %715 = vmax.xlane.f32.xlu1 %v714_v35  ;;  %v1262_v35 = vld [vmem:[%s1769_s4] ss:$0 sm:$0xff] }
 0x422   : > { %938 = vmax.xlane.f32.xlu1 %v937_v36 }
 0x4a0   : > { %v828_v37 = vpop.xlane.xlu0 %827 }
 0x4a1   : > { %v829_v38 = vsub.f32 %v825_v15, %v828_v37 }
 0x4a3   : > { %v830_v39 = vmul.f32 1.442695, %v829_v38 }
 0x4a5   : > { %1468 = vpow2.f32 %v830_v39 }
 0x4ab   : > { %v716_v40 = vpop.xlane.xlu1 %715 }
 0x4ac   : > { %v717_v41 = vsub.f32 %v713_v30, %v716_v40 }
 0x4ae   : > { %v718_v46 = vmul.f32 1.442695, %v717_v41 }
 0x4af   : > { %v1469_v42 = vpop.eup %1468  ;;  %v939_v43 = vpop.xlane.xlu1 %938 }
 0x4b0   : > { %v940_v44 = vsub.f32 %v936_v33, %v939_v43  ;;  %v832_v45 = vsel %vm601_vm3, %v1469_v42, 0.0 }
 0x4b1   : > { %833 = vadd.xlane.f32.xlu0 %v832_v45 }
 0x4b2   : > { %v941_v47 = vmul.f32 1.442695, %v940_v44 }
 0x4b4   : > { %1470 = vpow2.f32 %v941_v47 }
 0x4b5   : > { %1472 = vpow2.f32 %v718_v46 }
 0x4be   : > { %v1471_v48 = vpop.eup %1470 }
 0x4bf   : > { %v943_v49 = vsel %vm601_vm3, %v1471_v48, 0.0  ;;  %v1473_v51 = vpop.eup %1472 }
 0x4c0   : > { %944 = vadd.xlane.f32.xlu1 %v943_v49  ;;  %v720_v52 = vsel %vm601_vm3, %v1473_v51, 0.0  ;;  %v1271_v49 = vld [vmem:[%s1770_s5] ss:$0 sm:$0xff] }
 0x4c4   : > { %721 = vadd.xlane.f32.xlu1 %v720_v52 }
 0x4c7   : > { %727 = vrot.lane.b32.xlu0 %v1659_v50, %s1528_s27 }
 0x4d5   : > { %838 = vrot.lane.b32.xlu1 %v1659_v50, %s1529_s28 }
 0x4d9   : > { %949 = vrot.lane.b32.xlu1 %v1659_v50, %s1530_s29 }
 0x53e   : > { %v834_v53 = vpop.xlane.xlu0 %833 }
 0x542   : > { %v728_v54 = vpop.permute.xlu0 %727 }
 0x543   : > { %v733_v55 = vsel %vm617_vm2, %v728_v54, 0 }
 0x544   : > { %1348 = vmatpush3.bf16.msra.mxu1 %v733_v55 }
 0x545   : > { %1359 = vmatprep.subr.bf16.mxu1 %v1526_v1 }
 0x54d   : > { %v945_v56 = vpop.xlane.xlu1 %944 }
 0x551   : > { %v722_v57 = vpop.xlane.xlu1 %721 }
 0x552   : > { %1474 = vrcp.f32 %v722_v57 }
 0x553   : > { %1476 = vrcp.f32 %v834_v53 }
 0x554   : > { %1478 = vrcp.f32 %v945_v56 }
 0x555   : > { %v839_v60 = vpop.permute.xlu1 %838 }
 0x556   : > { %v844_v63 = vsel %vm617_vm2, %v839_v60, 0 }
 0x559   : > { %v950_v0 = vpop.permute.xlu1 %949 }
 0x55a   : > { %v955_v4 = vsel %vm617_vm2, %v950_v0, 0 }
 0x55c   : > { %v1475_v58 = vpop.eup %1474 }
 0x55d   : > { %v724_v59 = vmul.f32 %v1475_v58, %v1473_v51  ;;  %v1477_v62 = vpop.eup %1476 }
 0x55e   : > { %v836_v50 = vmul.f32 %v1477_v62, %v1469_v42  ;;  %v1479_v3 = vpop.eup %1478 }
 0x55f   : > { %v725_v61 = vpack.c.bf16 %v724_v59, %v724_v59  ;;  %v947_v5 = vmul.f32 %v1479_v3, %v1471_v48 }
 0x560   : > { %v837_v2 = vpack.c.bf16 %v836_v50, %v836_v50 }
 0x561   : > { %1350 = vmatmul.mubr.msk.bf16.vlgmr.msra.gmra.mrb[16].mxu1 %vm601_vm3, %v725_v61  ;;  %v948_v6 = vpack.c.bf16 %v947_v5, %v947_v5 }
 0x562   : > { %1360 = vmatpush3.bf16.msra.mxu1 %v844_v63  ;;  %1361 = vmatprep.mubr.msk.bf16.mxu1 %vm1527_vm0, %v1526_v1 }
 0x563   : > { %1371 = vmatprep.subr.bf16.mxu1 %v1526_v1 }
 0x569   : > { %1362 = vmatmul.mubr.msk.bf16.vlgmr.msra.gmra.mrb[20].mxu1 %vm601_vm3, %v837_v2 }
 0x56a   : > { %1372 = vmatpush3.bf16.msra.mxu1 %v955_v4  ;;  %1373 = vmatprep.mubr.msk.bf16.mxu1 %vm1527_vm0, %v1526_v1 }
 0x571   : > { %1374 = vmatmul.mubr.msk.bf16.vlgmr.msra.gmra.mrb[24].mxu1 %vm601_vm3, %v948_v6 }
 0x634   : > { %v769_v14 = vpop.f32.mrb[16].mxu1 }
 0x635   : > { %998 = vrot.lane.b32.xlu0 %v769_v14, %s1530_s29  ;;  %v1351_v15 = vpop.f32.mrb[17].mxu1 }
 0x636   : > { %v772_v16 = vpop.f32.mrb[18].mxu1 }
 0x637   : > { %v1352_v17 = vpop.f32.mrb[19].mxu1 }
 0x63c   : > { %v880_v20 = vpop.f32.mrb[20].mxu1 }
 0x63d   : > { %1002 = vrot.lane.b32.xlu1 %v880_v20, %s1529_s28  ;;  %v1363_v21 = vpop.f32.mrb[21].mxu1 }
 0x63e   : > { %v883_v22 = vpop.f32.mrb[22].mxu1 }
 0x63f   : > { %v1364_v24 = vpop.f32.mrb[23].mxu1 }
 0x644   : > { %v991_v25 = vpop.f32.mrb[24].mxu1 }
 0x645   : > { %1006 = vrot.lane.b32.xlu0 %v991_v25, %s1528_s27  ;;  %v1375_v26 = vpop.f32.mrb[25].mxu1 }
 0x646   : > { %v994_v27 = vpop.f32.mrb[26].mxu1 }
 0x647   : > { %v1376_v28 = vpop.f32.mrb[27].mxu1 }
 0x6a7   : > { %v999_v29 = vpop.permute.xlu0 %998 }
 0x6a8   : > { %v1009_v30 = vsel %vm553_vm1, %v1685_v18, %v999_v29 }
 0x6af   : > { %v1003_v1 = vpop.permute.xlu1 %1002 }
 0x6b0   : > { %v1011_v31 = vsel %vm1010_vm4, %v1009_v30, %v1003_v1 }
 0x6b7   : > { %v1007_v32 = vpop.permute.xlu0 %1006 }
 0x6b8   : > { %v1013_v33 = vsel %vm1012_vm5, %v1011_v31, %v1007_v32 }
 0x6b9   : > { %v1014_v34 = vpack.c.bf16 %v1013_v33, %v1013_v33 }
 0x6bb   : > { %1394 = vmatmul.mubr.bf16.vlgmr.msra.gmra.mrb[12].mxu0 %v1014_v34 }
 0x78e   : > { %v1120_v36 = vpop.f32.mrb[12].mxu0 }
 0x78f   : > { %v1121_v37 = vadd.f32 %v1262_v35, %v1120_v36  ;;  %v1395_v38 = vpop.f32.mrb[13].mxu0 }
 0x790   : > { %v1123_v39 = vpop.f32.mrb[14].mxu0 }
 0x791   : > { %v1396_v40 = vpop.f32.mrb[15].mxu0  ;;  %v1126_v41 = vadd.f32 %v1121_v37, %v1631_v23  ;;  %v1272_v23 = vld [vmem:[%s1771_s6] ss:$0 sm:$0xff] }
 0x793   : > { %1129 = vadd.xlane.f32.xlu1 %v1126_v41 }
 0x820   : > { %v1130_v42 = vpop.xlane.xlu1 %1129 }
 0x821   : > { %v1132_v18 = vmul.f32 0.0078125, %v1130_v42 }
 0x823   : > { %v1133_v43 = vsub.f32 %v1126_v41, %v1132_v18 }
 0x825   : > { %v1134_v44 = vmul.f32 %v1133_v43, %v1133_v43 }
 0x827   : > { %1135 = vadd.xlane.f32.xlu0 %v1134_v44 }
 0x8b4   : > { %v1136_v45 = vpop.xlane.xlu0 %1135 }
 0x8b5   : > { %v1137_v46 = vmul.f32 0.0078125, %v1136_v45 }
 0x8b7   : > { %v1138_v47 = vadd.f32 1e-05, %v1137_v46 }
 0x8b9   : > { %1480 = vrsqrt.f32 %v1138_v47 }
 0x8c3   : > { %v1481_v48 = vpop.eup %1480 }
 0x8c4   : > { %v1140_v51 = vmul.f32 %v1481_v48, %v1133_v43 }
 0x8c6   : > { %v1147_v52 = vmul.f32 %v1271_v49, %v1140_v51 }
 0x8c8   : > { %v1154_v53 = vadd.f32 %v1272_v23, %v1147_v52 }
 0x8ca   : > { %1155 = vst [vmem:[%s288_s11] sm:$0xff] %v1154_v53 }
 0x8cb PF: > { %s18_s24 = sadd.s32 1, %s1520_s24  }
 0x8cc   : > { %p15_p3 = scmp.ge.s32.totalorder %s18_s24, 4  }
 0x8ce   :  { %17 = sbr.rel (!%p15_p3) target bundleno = 1 (0x1), region = 83 }
 0x8d5   :  { %1175 = vsyncpa [#allocation3], 1 }
 0x8d6   :  { %1177 = vsyncpa [#allocation3 + $0x1], 1 }

// kernel: _lambda_.8
= control target key start
LH: loop header
LB: loop body
LE: loop exit
PB: predicated region body
PF: predicated region fallthrough
CT: control target
= control target key end

     0   :  { %s914_s24 = smov 0   ;;  %s1051_s0 = inlined_call_operand.vmem [shape: f32[2,8,128], index: 0, kind: input, shape index: {}]   ;;  %s1052_s1 = inlined_call_operand.vmem [shape: bf16[128,256], index: 1, kind: input, shape index: {}]   ;;  %s1053_s2 = inlined_call_operand.vmem [shape: f32[1,256], index: 2, kind: input, shape index: {}]   ;;  %s1054_s3 = inlined_call_operand.vmem [shape: bf16[256,128], index: 3, kind: input, shape index: {}]   ;;  %s1055_s4 = inlined_call_operand.vmem [shape: f32[1,128], index: 4, kind: input, shape index: {}]   ;;  %s1056_s5 = inlined_call_operand.vmem [shape: f32[1,128], index: 5, kind: input, shape index: {}]   ;;  %s1057_s6 = inlined_call_operand.vmem [shape: f32[1,128], index: 6, kind: input, shape index: {}]   ;;  %s1058_s7 = inlined_call_operand.vmem [shape: f32[2,8,128], index: 7, kind: output, shape index: {}]  }
   0x1 LB: > { %s740_s25 = sadd.s32 4294967295, %s871_s24   ;;  %p744_p0 = scmp.ge.s32.totalorder %s871_s24, 1  ;;  %s871_s24 = sphi %s914_s24, %s17_s24  }
   0x2   : > { %p236_p1 = scmp.lt.s32.totalorder %s871_s24, 3 }
   0x4   : > { %p237_p2 = pnand %p744_p0, %p236_p1 }
   0x5   : > { %v815_v0 = vld [vmem:[%s1052_s1 + $0x4] ss:$8 sps:$4 sm:$0xff] (!%p237_p2)   ;;  %v817_v1 = vld [vmem:[%s1052_s1] ss:$8 sps:$4 sm:$0xff] (!%p237_p2)   ;;  %v873_v2 = vmov (!%p237_p2), 0   ;;  %p266_p3 = scmp.lt.s32.totalorder (!%p237_p2), %s740_s25, 1  ;;  %v295_v35 = vlaneseq (!%p237_p2) }
   0x6   : > { %240 = sbr.rel (%p237_p2) target bundleno = 835 (0x343), region = 48  ;;  %417 = vmatprep.mubr.bf16.mxu0 (!%p237_p2), %v873_v2  ;;  %385 = vmatprep.subr.bf16.mxu0 (!%p237_p2), %v815_v0  ;;  %v818_v3 = vld [vmem:[%s1052_s1 + $0x14] ss:$8 sps:$4 sm:$0xff] (!%p237_p2)   ;;  %v820_v4 = vld [vmem:[%s1052_s1 + $0x10] ss:$8 sps:$4 sm:$0xff] (!%p237_p2)   ;;  %v839_v19 = vld [vmem:[%s1054_s3 + $0x40] sm:$0xff] (!%p237_p2)  }
   0x7   : > { %386 = vmatpush1.bf16.msra.mxu0 (!%p237_p2), %v817_v1  ;;  %v821_v5 = vld [vmem:[%s1052_s1 + $0x24] ss:$8 sps:$4 sm:$0xff] (!%p237_p2)   ;;  %v823_v6 = vld [vmem:[%s1052_s1 + $0x20] ss:$8 sps:$4 sm:$0xff] (!%p237_p2)   ;;  %v824_v7 = vld [vmem:[%s1052_s1 + $0x34] ss:$8 sps:$4 sm:$0xff] (!%p237_p2)   ;;  %784 = vmatprep.subr.bf16.mxu1 (!%p237_p2), %v839_v19 }
   0x8   : > { %387 = vmatprep.subr.bf16.mxu0 (!%p237_p2), %v818_v3  ;;  %v826_v8 = vld [vmem:[%s1052_s1 + $0x30] ss:$8 sps:$4 sm:$0xff] (!%p237_p2)   ;;  %v827_v9 = vld [vmem:[%s1052_s1 + $0x44] ss:$8 sps:$4 sm:$0xff] (!%p237_p2)   ;;  %v829_v10 = vld [vmem:[%s1052_s1 + $0x40] ss:$8 sps:$4 sm:$0xff] (!%p237_p2)  }
   0x9   : > { %v830_v11 = vld [vmem:[%s1052_s1 + $0x54] ss:$8 sps:$4 sm:$0xff] (!%p237_p2)   ;;  %v832_v12 = vld [vmem:[%s1052_s1 + $0x50] ss:$8 sps:$4 sm:$0xff] (!%p237_p2)   ;;  %v833_v13 = vld [vmem:[%s1052_s1 + $0x64] ss:$8 sps:$4 sm:$0xff] (!%p237_p2)  }
   0xa   : > { %v835_v14 = vld [vmem:[%s1052_s1 + $0x60] ss:$8 sps:$4 sm:$0xff] (!%p237_p2)   ;;  %v836_v15 = vld [vmem:[%s1052_s1 + $0x74] ss:$8 sps:$4 sm:$0xff] (!%p237_p2)   ;;  %v838_v16 = vld [vmem:[%s1052_s1 + $0x70] ss:$8 sps:$4 sm:$0xff] (!%p237_p2)  }
   0xb   : > { %388 = vmatpush1.bf16.msra.mxu0 (!%p237_p2), %v820_v4  ;;  %v840_v20 = vld [vmem:[%s1054_s3] sm:$0xff] (!%p237_p2)   ;;  %v841_v21 = vld [vmem:[%s1054_s3 + $0x48] sm:$0xff] (!%p237_p2)   ;;  %v843_v23 = vld [vmem:[%s1054_s3 + $0x50] sm:$0xff] (!%p237_p2)   ;;  %v296_v36 = vshrl.u32 (!%p237_p2), %v295_v35, 7 }
   0xc   : > { %389 = vmatprep.subr.bf16.mxu0 (!%p237_p2), %v821_v5  ;;  %785 = vmatpush3.bf16.msra.mxu1 (!%p237_p2), %v840_v20  ;;  %v842_v22 = vld [vmem:[%s1054_s3 + $0x8] sm:$0xff] (!%p237_p2)   ;;  %v844_v24 = vld [vmem:[%s1054_s3 + $0x10] sm:$0xff] (!%p237_p2)   ;;  %v845_v25 = vld [vmem:[%s1054_s3 + $0x58] sm:$0xff] (!%p237_p2)  }
   0xd   : > { %s1060_s25 = smov (!%p266_p3, %s740_s25), 1  ;;  %786 = vmatprep.subr.bf16.mxu1 %v841_v21  ;;  %v846_v26 = vld [vmem:[%s1054_s3 + $0x18] sm:$0xff]   ;;  %v847_v27 = vld [vmem:[%s1054_s3 + $0x60] sm:$0xff]   ;;  %v849_v29 = vld [vmem:[%s1054_s3 + $0x68] sm:$0xff]   ;;  %v297_v37 = vsub.s32 0, %v296_v36  ;;  %v301_v39 = vsub.s32 1, %v296_v36 }
   0xe   : > { %s745_s19 = sshll.u32 %s1060_s25, 3  ;;  %v848_v28 = vld [vmem:[%s1054_s3 + $0x20] sm:$0xff]   ;;  %v850_v30 = vld [vmem:[%s1054_s3 + $0x28] sm:$0xff]   ;;  %v851_v31 = vld [vmem:[%s1054_s3 + $0x70] sm:$0xff]  }
   0xf   : > { %390 = vmatpush1.bf16.msra.mxu0 %v823_v6  ;;  %s269_s15 = scalar_lea.vmem %s1051_s0, %s745_s19  ;;  %v852_v32 = vld [vmem:[%s1054_s3 + $0x30] sm:$0xff]   ;;  %v853_v33 = vld [vmem:[%s1054_s3 + $0x78] sm:$0xff]   ;;  %v293_v38 = vld [vmem:[%s1053_s2] sm:$0x3]  ;;  %s273_s21 = scalar_lea.vmem %s1058_s7, %s745_s19 }
  0x10   : > { %391 = vmatprep.subr.bf16.mxu0 %v824_v7  ;;  %v978_v17 = vld [vmem:[%s269_s15] sm:$0xff]  ;;  %787 = vmatpush3.bf16.msra.mxu1 %v842_v22  ;;  %v854_v34 = vld [vmem:[%s1054_s3 + $0x38] sm:$0xff]   ;;  %v298_v40 = vrot.slane %v293_v38, %v297_v37  ;;  %v302_v41 = vrot.slane %v293_v38, %v301_v39 }
  0x11   : > { %v276_v18 = vpack.c.bf16 %v978_v17, %v978_v17  ;;  %788 = vmatprep.subr.bf16.mxu1 %v843_v23  ;;  %v763_v38 = vld [vmem:[%s1055_s4] ss:$0 sm:$0xff] }
  0x13   : > { %392 = vmatpush1.bf16.msra.mxu0 %v826_v8 }
  0x14   : > { %393 = vmatprep.subr.bf16.mxu0 %v827_v9  ;;  %789 = vmatpush3.bf16.msra.mxu1 %v844_v24 }
  0x15   : > { %790 = vmatprep.subr.bf16.mxu1 %v845_v25 }
  0x17   : > { %394 = vmatpush1.bf16.msra.mxu0 %v829_v10 }
  0x18   : > { %395 = vmatprep.subr.bf16.mxu0 %v830_v11  ;;  %791 = vmatpush3.bf16.msra.mxu1 %v846_v26 }
  0x19   : > { %792 = vmatprep.subr.bf16.mxu1 %v847_v27 }
  0x1b   : > { %396 = vmatpush1.bf16.msra.mxu0 %v832_v12 }
  0x1c   : > { %397 = vmatprep.subr.bf16.mxu0 %v833_v13  ;;  %793 = vmatpush3.bf16.msra.mxu1 %v848_v28 }
  0x1d   : > { %794 = vmatprep.subr.bf16.mxu1 %v849_v29 }
  0x1f   : > { %398 = vmatpush1.bf16.msra.mxu0 %v835_v14 }
  0x20   : > { %399 = vmatprep.subr.bf16.mxu0 %v836_v15  ;;  %795 = vmatpush3.bf16.msra.mxu1 %v850_v30 }
  0x21   : > { %796 = vmatprep.subr.bf16.mxu1 %v851_v31 }
  0x23   : > { %400 = vmatpush1.bf16.msra.mxu0 %v838_v16 }
  0x24   : > { %797 = vmatpush3.bf16.msra.mxu1 %v852_v32 }
  0x25   : > { %798 = vmatprep.subr.bf16.mxu1 %v853_v33 }
  0x26   : > { %418 = vmatmul.mubr.bf16.vlgmr.msra.gmra.mrb[0].mxu0 %v276_v18 }
  0x28   : > { %799 = vmatpush3.bf16.msra.mxu1 %v854_v34 }
  0xf9   : > { %v419_v42 = vpop.f32.mrb[0].mxu0 }
  0xfa   : > { %v420_v43 = vadd.f32 %v419_v42, %v298_v40  ;;  %v421_v44 = vpop.f32.mrb[1].mxu0 }
  0xfb   : > { %v422_v45 = vadd.f32 %v421_v44, %v302_v41  ;;  %v423_v46 = vpop.f32.mrb[2].mxu0 }
  0xfc   : > { %v426_v47 = vmul.f32 0.70710677, %v420_v43  ;;  %v424_v48 = vpop.f32.mrb[3].mxu0  ;;  %v474_v28 = vmul.f32 0.5, %v420_v43 }
  0xfd   : > { %v427_v49 = vmul.f32 0.70710677, %v422_v45  ;;  %v475_v31 = vmul.f32 0.5, %v422_v45 }
  0xfe   : > { %v428_v50 = vand.u32 2147483647, %v426_v47  ;;  %vm468_vm0 = vcmp.ge.f32.partialorder %v426_v47, 0.0 }
  0xff   : > { %v429_v51 = vand.u32 2147483647, %v427_v49  ;;  %vm469_vm1 = vcmp.ge.f32.partialorder %v427_v49, 0.0 }
 0x100   : > { %v430_v52 = vmul.f32 0.3275911, %v428_v50  ;;  %v456_v56 = vsub.f32 0.0, %v428_v50 }
 0x101   : > { %v431_v53 = vmul.f32 0.3275911, %v429_v51  ;;  %v457_v57 = vsub.f32 0.0, %v429_v51 }
 0x102   : > { %v432_v54 = vadd.f32 1.0, %v430_v52  ;;  %v458_v59 = vmul.f32 %v456_v56, %v428_v50 }
 0x103   : > { %v433_v55 = vadd.f32 1.0, %v431_v53  ;;  %v459_v61 = vmul.f32 %v457_v57, %v429_v51  ;;  %v780_v53 = vld [vmem:[%s1056_s5] ss:$0 sm:$0xff] }
 0x104   : > { %855 = vrcp.f32 %v432_v54  ;;  %v460_v1 = vmul.f32 1.442695, %v458_v59 }
 0x105   : > { %857 = vrcp.f32 %v433_v55  ;;  %v462_v3 = vmul.f32 1.442695, %v459_v61 }
 0x106   : > { %859 = vpow2.f32 %v460_v1 }
 0x107   : > { %861 = vpow2.f32 %v462_v3 }
 0x10e   : > { %v856_v58 = vpop.eup %855 }
 0x10f   : > { %v858_v60 = vpop.eup %857  ;;  %v438_v62 = vmul.f32 1.0614054, %v856_v58 }
 0x110   : > { %v439_v63 = vmul.f32 1.0614054, %v858_v60  ;;  %v860_v18 = vpop.eup %859 }
 0x111   : > { %v440_v0 = vadd.f32 -1.4531521, %v438_v62  ;;  %v862_v20 = vpop.eup %861 }
 0x112   : > { %v441_v2 = vadd.f32 -1.4531521, %v439_v63 }
 0x113   : > { %v442_v4 = vmul.f32 %v856_v58, %v440_v0 }
 0x114   : > { %v443_v5 = vmul.f32 %v858_v60, %v441_v2 }
 0x115   : > { %v444_v6 = vadd.f32 1.4214138, %v442_v4 }
 0x116   : > { %v445_v7 = vadd.f32 1.4214138, %v443_v5 }
 0x117   : > { %v446_v8 = vmul.f32 %v856_v58, %v444_v6 }
 0x118   : > { %v447_v9 = vmul.f32 %v858_v60, %v445_v7 }
 0x119   : > { %v448_v10 = vadd.f32 -0.28449672, %v446_v8 }
 0x11a   : > { %v449_v11 = vadd.f32 -0.28449672, %v447_v9 }
 0x11b   : > { %v450_v12 = vmul.f32 %v856_v58, %v448_v10 }
 0x11c   : > { %v451_v13 = vmul.f32 %v858_v60, %v449_v11 }
 0x11d   : > { %v452_v14 = vadd.f32 0.2548296, %v450_v12 }
 0x11e   : > { %v453_v15 = vadd.f32 0.2548296, %v451_v13 }
 0x11f   : > { %v454_v16 = vmul.f32 %v856_v58, %v452_v14 }
 0x120   : > { %v455_v19 = vmul.f32 %v858_v60, %v453_v15 }
 0x121   : > { %v464_v21 = vmul.f32 %v860_v18, %v454_v16 }
 0x122   : > { %v465_v22 = vmul.f32 %v862_v20, %v455_v19 }
 0x123   : > { %v466_v23 = vsub.f32 1.0, %v464_v21 }
 0x124   : > { %v467_v24 = vsub.f32 1.0, %v465_v22 }
 0x125   : > { %v470_v25 = vsub.f32 0.0, %v466_v23 }
 0x126   : > { %v471_v26 = vsub.f32 0.0, %v467_v24 }
 0x127   : > { %v472_v27 = vsel %vm468_vm0, %v466_v23, %v470_v25 }
 0x128   : > { %v473_v29 = vsel %vm469_vm1, %v467_v24, %v471_v26  ;;  %v476_v30 = vadd.f32 1.0, %v472_v27 }
 0x129   : > { %v477_v32 = vadd.f32 1.0, %v473_v29 }
 0x12a   : > { %v478_v33 = vmul.f32 %v476_v30, %v474_v28 }
 0x12b   : > { %v479_v34 = vmul.f32 %v477_v32, %v475_v31 }
 0x12c   : > { %v480_v36 = vpack.c.bf16 %v478_v33, %v478_v33 }
 0x12d   : > { %v481_v35 = vpack.c.bf16 %v479_v34, %v479_v34 }
 0x12f   : > { %649 = vmatprep.mubr.bf16.mxu1 %v481_v35 }
 0x130   : > { %650 = vmatmul.mubr.bf16.vlgmr.msra.gmra.mrb[0].mxu1 %v480_v36 }
 0x203   : > { %v800_v37 = vpop.f32.mrb[0].mxu1 }
 0x204   : > { %v801_v39 = vpop.f32.mrb[1].mxu1 }
 0x205   : > { %v802_v40 = vadd.f32 %v801_v39, %v800_v37  ;;  %v803_v41 = vpop.f32.mrb[2].mxu1 }
 0x206   : > { %v804_v42 = vpop.f32.mrb[3].mxu1 }
 0x207   : > { %v652_v43 = vadd.f32 %v802_v40, %v763_v38 }
 0x209   : > { %v657_v44 = vadd.f32 %v652_v43, %v978_v17  ;;  %v781_v17 = vld [vmem:[%s1057_s6] ss:$0 sm:$0xff] }
 0x20b   : > { %660 = vadd.xlane.f32.xlu0 %v657_v44 }
 0x298   : > { %v661_v45 = vpop.xlane.xlu0 %660 }
 0x299   : > { %v663_v46 = vmul.f32 0.0078125, %v661_v45 }
 0x29b   : > { %v664_v47 = vsub.f32 %v657_v44, %v663_v46 }
 0x29d   : > { %v665_v48 = vmul.f32 %v664_v47, %v664_v47 }
 0x29f   : > { %666 = vadd.xlane.f32.xlu0 %v665_v48 }
 0x32c   : > { %v667_v49 = vpop.xlane.xlu0 %666 }
 0x32d   : > { %v668_v50 = vmul.f32 0.0078125, %v667_v49 }
 0x32f   : > { %v669_v51 = vadd.f32 1e-05, %v668_v50 }
 0x331   : > { %863 = vrsqrt.f32 %v669_v51 }
 0x33b   : > { %v864_v52 = vpop.eup %863 }
 0x33c   : > { %v671_v54 = vmul.f32 %v864_v52, %v664_v47 }
 0x33e   : > { %v678_v55 = vmul.f32 %v780_v53, %v671_v54 }
 0x340   : > { %v685_v56 = vadd.f32 %v781_v17, %v678_v55 }
 0x342   : > { %686 = vst [vmem:[%s273_s21] sm:$0xff] %v685_v56 }
 0x343 PF: > { %s17_s24 = sadd.s32 1, %s871_s24  }
 0x344   : > { %p14_p4 = scmp.ge.s32.totalorder %s17_s24, 4  }
 0x346   :  { %16 = sbr.rel (!%p14_p4) target bundleno = 1 (0x1), region = 78 }

// kernel: _lambda_.9
= control target key start
LH: loop header
LB: loop body
LE: loop exit
PB: predicated region body
PF: predicated region fallthrough
CT: control target
= control target key end

     0   :  { %s1494_s24 = smov 0   ;;  %s1721_s0 = inlined_call_operand.vmem [shape: f32[2,8,128], index: 0, kind: input, shape index: {}]   ;;  %s1722_s1 = inlined_call_operand.vmem [shape: bf16[128,384], index: 1, kind: input, shape index: {}]   ;;  %s1723_s2 = inlined_call_operand.vmem [shape: f32[1,384], index: 2, kind: input, shape index: {}]   ;;  %s1724_s3 = inlined_call_operand.vmem [shape: bf16[128,128], index: 3, kind: input, shape index: {}]   ;;  %s1725_s4 = inlined_call_operand.vmem [shape: f32[1,128], index: 4, kind: input, shape index: {}]   ;;  %s1726_s5 = inlined_call_operand.vmem [shape: f32[1,128], index: 5, kind: input, shape index: {}]   ;;  %s1727_s6 = inlined_call_operand.vmem [shape: f32[1,128], index: 6, kind: input, shape index: {}]   ;;  %s1728_s7 = inlined_call_operand.vmem [shape: f32[2,8,128], index: 7, kind: output, shape index: {}]  }
   0x1 LB: > { %s1194_s25 = sadd.s32 4294967295, %s1446_s24   ;;  %p1198_p0 = scmp.ge.s32.totalorder %s1446_s24, 1  ;;  %s1446_s24 = sphi %s1494_s24, %s17_s24  }
   0x2   : > { %p236_p1 = scmp.lt.s32.totalorder %s1446_s24, 3 }
   0x4   : > { %p237_p2 = pnand %p1198_p0, %p236_p1 }
   0x5   : > { %v1382_v0 = vld [vmem:[%s1722_s1 + $0x4] ss:$12 sps:$4 sm:$0xff] (!%p237_p2)   ;;  %v1384_v1 = vld [vmem:[%s1722_s1] ss:$12 sps:$4 sm:$0xff] (!%p237_p2)   ;;  %v1448_v2 = vmov (!%p237_p2), 0   ;;  %v1449_v4 = vmov (!%p237_p2), 0.0   ;;  %v311_v28 = vlaneseq (!%p237_p2) }
   0x6   : > { %240 = sbr.rel (%p237_p2) target bundleno = 2213 (0x8a5), region = 48  ;;  %486 = vmatprep.mubr.bf16.mxu0 (!%p237_p2), %v1448_v2  ;;  %454 = vmatprep.subr.bf16.mxu0 (!%p237_p2), %v1382_v0  ;;  %v1385_v3 = vld [vmem:[%s1722_s1 + $0x1c] ss:$12 sps:$4 sm:$0xff] (!%p237_p2)   ;;  %v1387_v5 = vld [vmem:[%s1722_s1 + $0x18] ss:$12 sps:$4 sm:$0xff] (!%p237_p2)   ;;  %p266_p3 = scmp.lt.s32.totalorder (!%p237_p2), %s1194_s25, 1 }
   0x7   : > { %1280 = vmatprep.subr.bf16.mxu1 (!%p237_p2), %v1449_v4  ;;  %455 = vmatpush1.bf16.msra.mxu0 (!%p237_p2), %v1384_v1  ;;  %v1388_v6 = vld [vmem:[%s1722_s1 + $0x34] ss:$12 sps:$4 sm:$0xff] (!%p237_p2)   ;;  %v1390_v7 = vld [vmem:[%s1722_s1 + $0x30] ss:$12 sps:$4 sm:$0xff] (!%p237_p2)   ;;  %v1391_v8 = vld [vmem:[%s1722_s1 + $0x4c] ss:$12 sps:$4 sm:$0xff] (!%p237_p2)  }
   0x8   : > { %456 = vmatprep.subr.bf16.mxu0 (!%p237_p2), %v1385_v3  ;;  %v1393_v9 = vld [vmem:[%s1722_s1 + $0x48] ss:$12 sps:$4 sm:$0xff] (!%p237_p2)   ;;  %v1394_v11 = vld [vmem:[%s1722_s1 + $0x64] ss:$12 sps:$4 sm:$0xff] (!%p237_p2)   ;;  %v1407_v12 = vld [vmem:[%s1722_s1 + $0x20] ss:$12 sps:$4 sm:$0xff] (!%p237_p2)  }
   0x9   : > { %v1406_v10 = vld [vmem:[%s1722_s1 + $0x8] ss:$12 sps:$4 sm:$0xff] (!%p237_p2)   ;;  %v1396_v13 = vld [vmem:[%s1722_s1 + $0x60] ss:$12 sps:$4 sm:$0xff] (!%p237_p2)   ;;  %v1399_v15 = vld [vmem:[%s1722_s1 + $0x78] ss:$12 sps:$4 sm:$0xff] (!%p237_p2)  }
   0xa   : > { %1281 = vmatpush3.bf16.msra.mxu1 (!%p237_p2), %v1406_v10  ;;  %v1397_v14 = vld [vmem:[%s1722_s1 + $0x7c] ss:$12 sps:$4 sm:$0xff] (!%p237_p2)   ;;  %v1408_v16 = vld [vmem:[%s1722_s1 + $0x38] ss:$12 sps:$4 sm:$0xff] (!%p237_p2)   ;;  %v1400_v17 = vld [vmem:[%s1722_s1 + $0x94] ss:$12 sps:$4 sm:$0xff] (!%p237_p2)  }
   0xb   : > { %457 = vmatpush1.bf16.msra.mxu0 (!%p237_p2), %v1387_v5  ;;  %1282 = vmatprep.subr.bf16.mxu1 (!%p237_p2), %v1449_v4  ;;  %v1409_v18 = vld [vmem:[%s1722_s1 + $0x50] ss:$12 sps:$4 sm:$0xff] (!%p237_p2)   ;;  %v1403_v20 = vld [vmem:[%s1722_s1 + $0xac] ss:$12 sps:$4 sm:$0xff] (!%p237_p2)   ;;  %v1410_v21 = vld [vmem:[%s1722_s1 + $0x68] ss:$12 sps:$4 sm:$0xff] (!%p237_p2)  }
   0xc   : > { %458 = vmatprep.subr.bf16.mxu0 (!%p237_p2), %v1388_v6  ;;  %v1402_v19 = vld [vmem:[%s1722_s1 + $0x90] ss:$12 sps:$4 sm:$0xff] (!%p237_p2)   ;;  %v1405_v22 = vld [vmem:[%s1722_s1 + $0xa8] ss:$12 sps:$4 sm:$0xff] (!%p237_p2)   ;;  %v1411_v24 = vld [vmem:[%s1722_s1 + $0x80] ss:$12 sps:$4 sm:$0xff] (!%p237_p2)  }
   0xd   : > { %s1730_s25 = smov (!%p266_p3, %s1194_s25), 1  ;;  %v1412_v26 = vld [vmem:[%s1722_s1 + $0x98] ss:$12 sps:$4 sm:$0xff]   ;;  %v1413_v27 = vld [vmem:[%s1722_s1 + $0xb0] ss:$12 sps:$4 sm:$0xff]   ;;  %vm1450_vm0 = vmmov 0  }
   0xe   : > { %s1199_s27 = sshll.u32 %s1730_s25, 3  ;;  %1283 = vmatpush3.bf16.msra.mxu1 %v1407_v12  ;;  %1296 = vmatprep.mubr.msk.bf16.mxu1 %vm1450_vm0, %v1449_v4  ;;  %v312_v29 = vshrl.u32 %v311_v28, 7  ;;  %v309_v31 = vld [vmem:[%s1723_s2] sm:$0x7]  ;;  %vm538_vm1 = vcmask 261120   ;;  %s1451_s16 = smov 96  }
   0xf   : > { %459 = vmatpush1.bf16.msra.mxu0 %v1390_v7  ;;  %1284 = vmatprep.subr.bf16.mxu1 %v1449_v4  ;;  %s269_s23 = scalar_lea.vmem %s1721_s0, %s1199_s27  ;;  %s1452_s17 = smov 64   ;;  %vm602_vm2 = vcmask 1043456   ;;  %vm586_vm3 = vcmask 64512   ;;  %vm995_vm4 = vcmask 523264   ;;  %vm997_vm5 = vcmask 785408  }
  0x10   : > { %460 = vmatprep.subr.bf16.mxu0 %v1391_v8  ;;  %v1578_v23 = vld [vmem:[%s269_s23] sm:$0xff]  ;;  %v317_v30 = vsub.s32 1, %v312_v29  ;;  %v313_v32 = vsub.s32 0, %v312_v29  ;;  %s1453_s18 = smov 32   ;;  %v321_v44 = vsub.s32 2, %v312_v29  ;;  %s273_s23 = scalar_lea.vmem %s1728_s7, %s1199_s27 }
  0x11   : > { %v276_v25 = vpack.c.bf16 %v1578_v23, %v1578_v23 }
  0x12   : > { %1285 = vmatpush3.bf16.msra.mxu1 %v1408_v16  ;;  %v318_v33 = vrot.slane %v309_v31, %v317_v30  ;;  %v314_v34 = vrot.slane %v309_v31, %v313_v32  ;;  %v322_v45 = vrot.slane %v309_v31, %v321_v44 }
  0x13   : > { %461 = vmatpush1.bf16.msra.mxu0 %v1393_v9  ;;  %1286 = vmatprep.subr.bf16.mxu1 %v1449_v4 }
  0x14   : > { %462 = vmatprep.subr.bf16.mxu0 %v1394_v11 }
  0x16   : > { %1287 = vmatpush3.bf16.msra.mxu1 %v1409_v18 }
  0x17   : > { %463 = vmatpush1.bf16.msra.mxu0 %v1396_v13  ;;  %1288 = vmatprep.subr.bf16.mxu1 %v1449_v4 }
  0x18   : > { %464 = vmatprep.subr.bf16.mxu0 %v1397_v14 }
  0x1a   : > { %1289 = vmatpush3.bf16.msra.mxu1 %v1410_v21 }
  0x1b   : > { %465 = vmatpush1.bf16.msra.mxu0 %v1399_v15  ;;  %1290 = vmatprep.subr.bf16.mxu1 %v1449_v4 }
  0x1c   : > { %466 = vmatprep.subr.bf16.mxu0 %v1400_v17 }
  0x1e   : > { %1291 = vmatpush3.bf16.msra.mxu1 %v1411_v24 }
  0x1f   : > { %467 = vmatpush1.bf16.msra.mxu0 %v1402_v19  ;;  %1292 = vmatprep.subr.bf16.mxu1 %v1449_v4 }
  0x20   : > { %468 = vmatprep.subr.bf16.mxu0 %v1403_v20 }
  0x22   : > { %1293 = vmatpush3.bf16.msra.mxu1 %v1412_v26 }
  0x23   : > { %469 = vmatpush1.bf16.msra.mxu0 %v1405_v22  ;;  %1294 = vmatprep.subr.bf16.mxu1 %v1449_v4 }
  0x24   : > { %1324 = vmatprep.subr.bf16.mxu0 %v1449_v4 }
  0x26   : > { %487 = vmatmul.mubr.bf16.vlgmr.msra.gmra.mrb[0].mxu0 %v276_v25  ;;  %1295 = vmatpush3.bf16.msra.mxu1 %v1413_v27 }
  0x27   : > { %1300 = vmatprep.subr.bf16.mxu1 %v1449_v4  ;;  %1326 = vmatprep.mubr.msk.bf16.mxu0 %vm1450_vm0, %v1449_v4 }
  0x29   : > { %1297 = vmatmul.mubr.bf16.vlgmr.msra.gmra.mrb[0].mxu1 %v276_v25 }
  0x2a   : > { %1302 = vmatprep.mubr.msk.bf16.mxu1 %vm1450_vm0, %v1449_v4 }
  0xf9   : > { %v488_v35 = vpop.f32.mrb[0].mxu0 }
  0xfa   : > { %v490_v36 = vpop.f32.mrb[1].mxu0  ;;  %v489_v40 = vadd.f32 %v488_v35, %v314_v34 }
  0xfb   : > { %v491_v37 = vadd.f32 %v490_v36, %v318_v33  ;;  %v492_v38 = vpop.f32.mrb[2].mxu0 }
  0xfc   : > { %v493_v39 = vpop.f32.mrb[3].mxu0  ;;  %v535_v43 = vpack.c.bf16 %v489_v40, %v489_v40  ;;  %v529_v46 = vpop.f32.mrb[0].mxu1 }
  0xfd   : > { %v536_v41 = vpack.c.bf16 %v491_v37, %v491_v37  ;;  %v530_v47 = vadd.f32 %v529_v46, %v322_v45  ;;  %v1298_v48 = vpop.f32.mrb[1].mxu1 }
  0xfe   : > { %v532_v49 = vpop.f32.mrb[2].mxu1 }
  0xff   : > { %650 = vrot.lane.b32.xlu1 %v536_v41, %s1451_s16  ;;  %v543_v42 = vsel %vm538_vm1, %v536_v41, 0  ;;  %v1615_v50 = vpack.c.bf16 %v530_v47, %v530_v47  ;;  %v1299_v51 = vpop.f32.mrb[3].mxu1 }
 0x100   : > { %1301 = vmatpush3.bf16.xpose.msra.mxu1 %v543_v42 }
 0x101   : > { %1306 = vmatprep.subr.bf16.mxu1 %v1449_v4  ;;  %v604_v52 = vsel %vm602_vm2, %v1615_v50, 0 }
 0x103   : > { %647 = vrot.lane.b32.xlu1 %v535_v43, %s1451_s16 }
 0x107   : > { %760 = vrot.lane.b32.xlu1 %v535_v43, %s1452_s17  ;;  %1303 = vmatmul.mubr.msk.bf16.vlgmr.msra.gmra.mrb[4].mxu1 %vm538_vm1, %v535_v43 }
 0x108   : > { %1308 = vmatprep.mubr.msk.bf16.mxu1 %vm1450_vm0, %v1449_v4  ;;  %1307 = vmatpush3.bf16.msra.mxu1 %v604_v52 }
 0x109   : > { %1312 = vmatprep.subr.bf16.mxu1 %v1449_v4 }
 0x10b   : > { %873 = vrot.lane.b32.xlu1 %v536_v41, %s1453_s18 }
 0x10f   : > { %871 = vrot.lane.b32.xlu1 %v535_v43, %s1453_s18 }
 0x171   : > { %v651_v0 = vpop.permute.xlu1 %650 }
 0x172   : > { %v656_v12 = vsel %vm538_vm1, %v651_v0, 0 }
 0x175   : > { %v648_v1 = vpop.permute.xlu1 %647 }
 0x179   : > { %v761_v3 = vpop.permute.xlu1 %760 }
 0x17d   : > { %v874_v7 = vpop.permute.xlu1 %873 }
 0x17e   : > { %v879_v10 = vsel %vm538_vm1, %v874_v7, 0  ;;  %v1414_v7 = vld [vmem:[%s1724_s3] sm:$0xff]  }
 0x181   : > { %v872_v13 = vpop.permute.xlu1 %871 }
 0x1da   : > { %v579_v53 = vpop.f32.mrb[4].mxu1 }
 0x1db   : > { %v585_v54 = vmul.f32 0.17677669, %v579_v53  ;;  %v1304_v55 = vpop.f32.mrb[5].mxu1 }
 0x1dc   : > { %v582_v56 = vpop.f32.mrb[6].mxu1 }
 0x1dd   : > { %v1305_v57 = vpop.f32.mrb[7].mxu1  ;;  %v587_v58 = vsel %vm586_vm3, %v585_v54, -inf }
 0x1de   : > { %588 = vmax.xlane.f32.xlu0 %v587_v58 }
 0x26b   : > { %v589_v59 = vpop.xlane.xlu0 %588 }
 0x26c   : > { %v590_v60 = vsub.f32 %v585_v54, %v589_v59 }
 0x26e   : > { %v591_v61 = vmul.f32 1.442695, %v590_v60 }
 0x270   : > { %1422 = vpow2.f32 %v591_v61 }
 0x27a   : > { %v1423_v62 = vpop.eup %1422 }
 0x27b   : > { %v593_v63 = vsel %vm586_vm3, %v1423_v62, 0.0 }
 0x27c   : > { %594 = vadd.xlane.f32.xlu0 %v593_v63 }
 0x292   : > { %762 = vrot.lane.b32.xlu0 %v536_v41, %s1452_s17 }
 0x309   : > { %v595_v2 = vpop.xlane.xlu0 %594 }
 0x30a   : > { %1424 = vrcp.f32 %v595_v2 }
 0x30d   : > { %v763_v5 = vpop.permute.xlu0 %762 }
 0x30e   : > { %v768_v6 = vsel %vm538_vm1, %v763_v5, 0 }
 0x30f   : > { %1325 = vmatpush3.bf16.xpose.msra.mxu0 %v768_v6 }
 0x310   : > { %1336 = vmatprep.subr.bf16.mxu0 %v1449_v4 }
 0x314   : > { %v1425_v8 = vpop.eup %1424 }
 0x315   : > { %v597_v9 = vmul.f32 %v1425_v8, %v1423_v62  ;;  %v1415_v8 = vld [vmem:[%s1724_s3 + $0x8] sm:$0xff]  }
 0x316   : > { %1327 = vmatmul.mubr.msk.bf16.vlgmr.msra.gmra.mrb[4].mxu0 %vm538_vm1, %v761_v3 }
 0x317   : > { %1337 = vmatpush3.bf16.xpose.msra.mxu0 %v879_v10  ;;  %v598_v11 = vpack.c.bf16 %v597_v9, %v597_v9  ;;  %1338 = vmatprep.mubr.msk.bf16.mxu0 %vm1450_vm0, %v1449_v4  ;;  %v1416_v9 = vld [vmem:[%s1724_s3 + $0x10] sm:$0xff]   ;;  %v1417_v10 = vld [vmem:[%s1724_s3 + $0x18] sm:$0xff]  }
 0x318   : > { %1348 = vmatprep.subr.bf16.mxu0 %v1449_v4 }
 0x319   : > { %1309 = vmatmul.mubr.msk.bf16.vlgmr.msra.gmra.mrb[8].mxu1 %vm586_vm3, %v598_v11  ;;  %v1418_v11 = vld [vmem:[%s1724_s3 + $0x20] sm:$0xff]  }
 0x31a   : > { %1313 = vmatpush3.bf16.xpose.msra.mxu1 %v656_v12  ;;  %1314 = vmatprep.mubr.msk.bf16.mxu1 %vm1450_vm0, %v1449_v4  ;;  %v1419_v12 = vld [vmem:[%s1724_s3 + $0x28] sm:$0xff]  }
 0x31b   : > { %1318 = vmatprep.subr.bf16.mxu1 %v1449_v4 }
 0x31e   : > { %1339 = vmatmul.mubr.msk.bf16.vlgmr.msra.gmra.mrb[8].mxu0 %vm538_vm1, %v872_v13  ;;  %v1420_v13 = vld [vmem:[%s1724_s3 + $0x30] sm:$0xff]  }
 0x31f   : > { %1364 = vmatprep.mubr.msk.bf16.mxu0 %vm1450_vm0, %v1449_v4  ;;  %1349 = vmatpush3.bf16.msra.mxu0 %v1414_v7 }
 0x320   : > { %1350 = vmatprep.subr.bf16.mxu0 %v1449_v4 }
 0x321   : > { %1315 = vmatmul.mubr.msk.bf16.vlgmr.msra.gmra.mrb[12].mxu1 %vm538_vm1, %v648_v1 }
 0x322   : > { %1320 = vmatprep.mubr.msk.bf16.mxu1 %vm1450_vm0, %v1449_v4 }
 0x323   : > { %1351 = vmatpush3.bf16.msra.mxu0 %v1415_v8 }
 0x324   : > { %1352 = vmatprep.subr.bf16.mxu0 %v1449_v4 }
 0x327   : > { %1353 = vmatpush3.bf16.msra.mxu0 %v1416_v9 }
 0x328   : > { %1354 = vmatprep.subr.bf16.mxu0 %v1449_v4 }
 0x32b   : > { %1355 = vmatpush3.bf16.msra.mxu0 %v1417_v10 }
 0x32c   : > { %1356 = vmatprep.subr.bf16.mxu0 %v1449_v4 }
 0x32f   : > { %1357 = vmatpush3.bf16.msra.mxu0 %v1418_v11 }
 0x330   : > { %1358 = vmatprep.subr.bf16.mxu0 %v1449_v4 }
 0x333   : > { %1359 = vmatpush3.bf16.msra.mxu0 %v1419_v12 }
 0x334   : > { %1360 = vmatprep.subr.bf16.mxu0 %v1449_v4 }
 0x337   : > { %1361 = vmatpush3.bf16.msra.mxu0 %v1420_v13 }
 0x338   : > { %1362 = vmatprep.subr.bf16.mxu0 %v1449_v4 }
 0x3e9   : > { %v804_v14 = vpop.f32.mrb[4].mxu0 }
 0x3ea   : > { %v810_v15 = vmul.f32 0.17677669, %v804_v14  ;;  %v1328_v16 = vpop.f32.mrb[5].mxu0 }
 0x3eb   : > { %v807_v17 = vpop.f32.mrb[6].mxu0 }
 0x3ec   : > { %v1641_v18 = vpop.f32.mrb[8].mxu1  ;;  %v1329_v19 = vpop.f32.mrb[7].mxu0  ;;  %v811_v20 = vsel %vm586_vm3, %v810_v15, -inf }
 0x3ed   : > { %812 = vmax.xlane.f32.xlu0 %v811_v20  ;;  %v1310_v21 = vpop.f32.mrb[9].mxu1  ;;  %v1421_v19 = vld [vmem:[%s1724_s3 + $0x38] sm:$0xff]  }
 0x3ee   : > { %v643_v22 = vpop.f32.mrb[10].mxu1  ;;  %1363 = vmatpush3.bf16.msra.mxu0 %v1421_v19 }
 0x3ef   : > { %v1311_v24 = vpop.f32.mrb[11].mxu1 }
 0x3f1   : > { %v915_v25 = vpop.f32.mrb[8].mxu0 }
 0x3f2   : > { %v1340_v26 = vpop.f32.mrb[9].mxu0  ;;  %v921_v33 = vmul.f32 0.17677669, %v915_v25 }
 0x3f3   : > { %v918_v27 = vpop.f32.mrb[10].mxu0 }
 0x3f4   : > { %v692_v28 = vpop.f32.mrb[12].mxu1  ;;  %v1341_v29 = vpop.f32.mrb[11].mxu0  ;;  %v922_v36 = vsel %vm586_vm3, %v921_v33, -inf }
 0x3f5   : > { %v698_v30 = vmul.f32 0.17677669, %v692_v28  ;;  %v1316_v31 = vpop.f32.mrb[13].mxu1 }
 0x3f6   : > { %v695_v32 = vpop.f32.mrb[14].mxu1 }
 0x3f7   : > { %v1317_v34 = vpop.f32.mrb[15].mxu1  ;;  %v699_v35 = vsel %vm586_vm3, %v698_v30, -inf }
 0x3f8   : > { %700 = vmax.xlane.f32.xlu1 %v699_v35  ;;  %v1233_v35 = vld [vmem:[%s1725_s4] ss:$0 sm:$0xff] }
 0x3fc   : > { %923 = vmax.xlane.f32.xlu1 %v922_v36 }
 0x47a   : > { %v813_v37 = vpop.xlane.xlu0 %812 }
 0x47b   : > { %v814_v38 = vsub.f32 %v810_v15, %v813_v37 }
 0x47d   : > { %v815_v39 = vmul.f32 1.442695, %v814_v38 }
 0x47f   : > { %1426 = vpow2.f32 %v815_v39 }
 0x485   : > { %v701_v40 = vpop.xlane.xlu1 %700 }
 0x486   : > { %v702_v41 = vsub.f32 %v698_v30, %v701_v40 }
 0x488   : > { %v703_v46 = vmul.f32 1.442695, %v702_v41 }
 0x489   : > { %v1427_v42 = vpop.eup %1426  ;;  %v924_v43 = vpop.xlane.xlu1 %923 }
 0x48a   : > { %v925_v44 = vsub.f32 %v921_v33, %v924_v43  ;;  %v817_v45 = vsel %vm586_vm3, %v1427_v42, 0.0 }
 0x48b   : > { %818 = vadd.xlane.f32.xlu0 %v817_v45 }
 0x48c   : > { %v926_v47 = vmul.f32 1.442695, %v925_v44 }
 0x48e   : > { %1428 = vpow2.f32 %v926_v47 }
 0x48f   : > { %1430 = vpow2.f32 %v703_v46 }
 0x498   : > { %v1429_v48 = vpop.eup %1428 }
 0x499   : > { %v928_v49 = vsel %vm586_vm3, %v1429_v48, 0.0  ;;  %v1431_v51 = vpop.eup %1430 }
 0x49a   : > { %929 = vadd.xlane.f32.xlu1 %v928_v49  ;;  %v705_v52 = vsel %vm586_vm3, %v1431_v51, 0.0  ;;  %v1242_v49 = vld [vmem:[%s1726_s5] ss:$0 sm:$0xff] }
 0x49e   : > { %706 = vadd.xlane.f32.xlu1 %v705_v52 }
 0x4a1   : > { %712 = vrot.lane.b32.xlu0 %v1615_v50, %s1451_s16 }
 0x4af   : > { %823 = vrot.lane.b32.xlu1 %v1615_v50, %s1452_s17 }
 0x4b3   : > { %934 = vrot.lane.b32.xlu1 %v1615_v50, %s1453_s18 }
 0x518   : > { %v819_v53 = vpop.xlane.xlu0 %818 }
 0x51c   : > { %v713_v54 = vpop.permute.xlu0 %712 }
 0x51d   : > { %v718_v55 = vsel %vm602_vm2, %v713_v54, 0 }
 0x51e   : > { %1319 = vmatpush3.bf16.msra.mxu1 %v718_v55 }
 0x51f   : > { %1330 = vmatprep.subr.bf16.mxu1 %v1449_v4 }
 0x527   : > { %v930_v56 = vpop.xlane.xlu1 %929 }
 0x52b   : > { %v707_v57 = vpop.xlane.xlu1 %706 }
 0x52c   : > { %1432 = vrcp.f32 %v707_v57 }
 0x52d   : > { %1434 = vrcp.f32 %v819_v53 }
 0x52e   : > { %1436 = vrcp.f32 %v930_v56 }
 0x52f   : > { %v824_v60 = vpop.permute.xlu1 %823 }
 0x530   : > { %v829_v63 = vsel %vm602_vm2, %v824_v60, 0 }
 0x533   : > { %v935_v0 = vpop.permute.xlu1 %934 }
 0x534   : > { %v940_v3 = vsel %vm602_vm2, %v935_v0, 0 }
 0x536   : > { %v1433_v58 = vpop.eup %1432 }
 0x537   : > { %v709_v59 = vmul.f32 %v1433_v58, %v1431_v51  ;;  %v1435_v62 = vpop.eup %1434 }
 0x538   : > { %v821_v50 = vmul.f32 %v1435_v62, %v1427_v42  ;;  %v1437_v2 = vpop.eup %1436 }
 0x539   : > { %v710_v61 = vpack.c.bf16 %v709_v59, %v709_v59  ;;  %v932_v5 = vmul.f32 %v1437_v2, %v1429_v48 }
 0x53a   : > { %v822_v1 = vpack.c.bf16 %v821_v50, %v821_v50 }
 0x53b   : > { %1321 = vmatmul.mubr.msk.bf16.vlgmr.msra.gmra.mrb[16].mxu1 %vm586_vm3, %v710_v61  ;;  %v933_v6 = vpack.c.bf16 %v932_v5, %v932_v5 }
 0x53c   : > { %1331 = vmatpush3.bf16.msra.mxu1 %v829_v63  ;;  %1332 = vmatprep.mubr.msk.bf16.mxu1 %vm1450_vm0, %v1449_v4 }
 0x53d   : > { %1342 = vmatprep.subr.bf16.mxu1 %v1449_v4 }
 0x543   : > { %1333 = vmatmul.mubr.msk.bf16.vlgmr.msra.gmra.mrb[20].mxu1 %vm586_vm3, %v822_v1 }
 0x544   : > { %1343 = vmatpush3.bf16.msra.mxu1 %v940_v3  ;;  %1344 = vmatprep.mubr.msk.bf16.mxu1 %vm1450_vm0, %v1449_v4 }
 0x54b   : > { %1345 = vmatmul.mubr.msk.bf16.vlgmr.msra.gmra.mrb[24].mxu1 %vm586_vm3, %v933_v6 }
 0x60e   : > { %v754_v14 = vpop.f32.mrb[16].mxu1 }
 0x60f   : > { %983 = vrot.lane.b32.xlu0 %v754_v14, %s1453_s18  ;;  %v1322_v15 = vpop.f32.mrb[17].mxu1 }
 0x610   : > { %v757_v16 = vpop.f32.mrb[18].mxu1 }
 0x611   : > { %v1323_v17 = vpop.f32.mrb[19].mxu1 }
 0x616   : > { %v865_v20 = vpop.f32.mrb[20].mxu1 }
 0x617   : > { %987 = vrot.lane.b32.xlu1 %v865_v20, %s1452_s17  ;;  %v1334_v21 = vpop.f32.mrb[21].mxu1 }
 0x618   : > { %v868_v22 = vpop.f32.mrb[22].mxu1 }
 0x619   : > { %v1335_v24 = vpop.f32.mrb[23].mxu1 }
 0x61e   : > { %v976_v25 = vpop.f32.mrb[24].mxu1 }
 0x61f   : > { %991 = vrot.lane.b32.xlu0 %v976_v25, %s1451_s16  ;;  %v1346_v26 = vpop.f32.mrb[25].mxu1 }
 0x620   : > { %v979_v27 = vpop.f32.mrb[26].mxu1 }
 0x621   : > { %v1347_v28 = vpop.f32.mrb[27].mxu1 }
 0x681   : > { %v984_v29 = vpop.permute.xlu0 %983 }
 0x682   : > { %v994_v30 = vsel %vm538_vm1, %v1641_v18, %v984_v29 }
 0x689   : > { %v988_v4 = vpop.permute.xlu1 %987 }
 0x68a   : > { %v996_v31 = vsel %vm995_vm4, %v994_v30, %v988_v4 }
 0x691   : > { %v992_v32 = vpop.permute.xlu0 %991 }
 0x692   : > { %v998_v33 = vsel %vm997_vm5, %v996_v31, %v992_v32 }
 0x693   : > { %v999_v34 = vpack.c.bf16 %v998_v33, %v998_v33 }
 0x695   : > { %1365 = vmatmul.mubr.bf16.vlgmr.msra.gmra.mrb[12].mxu0 %v999_v34 }
 0x768   : > { %v1105_v36 = vpop.f32.mrb[12].mxu0 }
 0x769   : > { %v1106_v37 = vadd.f32 %v1233_v35, %v1105_v36  ;;  %v1366_v38 = vpop.f32.mrb[13].mxu0 }
 0x76a   : > { %v1108_v39 = vpop.f32.mrb[14].mxu0 }
 0x76b   : > { %v1367_v40 = vpop.f32.mrb[15].mxu0  ;;  %v1111_v41 = vadd.f32 %v1106_v37, %v1578_v23  ;;  %v1243_v23 = vld [vmem:[%s1727_s6] ss:$0 sm:$0xff] }
 0x76d   : > { %1114 = vadd.xlane.f32.xlu1 %v1111_v41 }
 0x7fa   : > { %v1115_v42 = vpop.xlane.xlu1 %1114 }
 0x7fb   : > { %v1117_v18 = vmul.f32 0.0078125, %v1115_v42 }
 0x7fd   : > { %v1118_v43 = vsub.f32 %v1111_v41, %v1117_v18 }
 0x7ff   : > { %v1119_v44 = vmul.f32 %v1118_v43, %v1118_v43 }
 0x801   : > { %1120 = vadd.xlane.f32.xlu0 %v1119_v44 }
 0x88e   : > { %v1121_v45 = vpop.xlane.xlu0 %1120 }
 0x88f   : > { %v1122_v46 = vmul.f32 0.0078125, %v1121_v45 }
 0x891   : > { %v1123_v47 = vadd.f32 1e-05, %v1122_v46 }
 0x893   : > { %1438 = vrsqrt.f32 %v1123_v47 }
 0x89d   : > { %v1439_v48 = vpop.eup %1438 }
 0x89e   : > { %v1125_v51 = vmul.f32 %v1439_v48, %v1118_v43 }
 0x8a0   : > { %v1132_v52 = vmul.f32 %v1242_v49, %v1125_v51 }
 0x8a2   : > { %v1139_v53 = vadd.f32 %v1243_v23, %v1132_v52 }
 0x8a4   : > { %1140 = vst [vmem:[%s273_s23] sm:$0xff] %v1139_v53 }
 0x8a5 PF: > { %s17_s24 = sadd.s32 1, %s1446_s24  }
 0x8a6   : > { %p14_p4 = scmp.ge.s32.totalorder %s17_s24, 4  }
 0x8a8   :  { %16 = sbr.rel (!%p14_p4) target bundleno = 1 (0x1), region = 78 }

// kernel: _lambda_.11
= control target key start
LH: loop header
LB: loop body
LE: loop exit
PB: predicated region body
PF: predicated region fallthrough
CT: control target
= control target key end

     0   :  { %12 = vsyncpa [#allocation3], 0  ;;  %s1236_s0 = inlined_call_operand.vmem [shape: f32[2,8,128], index: 0, kind: input, shape index: {}]   ;;  %s1237_s1 = inlined_call_operand.vmem [shape: bf16[128,256], index: 1, kind: input, shape index: {}]   ;;  %s1238_s2 = inlined_call_operand.vmem [shape: f32[1,256], index: 2, kind: input, shape index: {}]   ;;  %s1239_s3 = inlined_call_operand.vmem [shape: bf16[256,128], index: 3, kind: input, shape index: {}]   ;;  %s1240_s4 = inlined_call_operand.vmem [shape: f32[1,128], index: 4, kind: input, shape index: {}]   ;;  %s1241_s5 = inlined_call_operand.vmem [shape: f32[1,128], index: 5, kind: input, shape index: {}]   ;;  %s1242_s6 = inlined_call_operand.vmem [shape: f32[1,128], index: 6, kind: input, shape index: {}]   ;;  %s1243_s7 = inlined_call_operand.hbm [shape: f32[2,8,128], index: 7, kind: output, shape index: {}]  }
   0x1   :  { %14 = vsyncpa [#allocation3 + $0x1], 0  ;;  %s1023_s24 = smov 0   ;;  %s1025_s25 = smov 0  }
   0x2   :  { %s1027_s26 = smov 0   ;;  %s1029_s27 = smov 0  }
   0x3 LB: > { %s1044_s28 = sadd.s32 4294967295, %s979_s27   ;;  %s760_s29 = sadd.s32 4294967294, %s979_s27   ;;  %s979_s27 = sphi %s1029_s27, %s1249_s27   ;;  %s975_s26 = sphi %s1027_s26, %s1248_s26   ;;  %s971_s25 = sphi %s1025_s25, %s1247_s25   ;;  %s967_s24 = sphi %s1023_s24, %s1246_s24  }
   0x4   : > { %s1048_s30 = sadd.s32 1, %s979_s27   ;;  %s179_s8 = sadd.s32 1, %s975_s26 }
   0x5   : > { %s176_s9 = ssub.s32 %s979_s27, %s1048_s30  ;;  %p189_p0 = scmp.ne.s32.totalorder %s975_s26, %s971_s25 }
   0x6   : > { %p177_p1 = scmp.eq.s32.totalorder %s176_s9, 0  ;;  %p190_p2 = scmp.eq.s32.totalorder %s1044_s28, 1 }
   0x7   : > { %p195_p3 = scmp.ne.s32.totalorder %s971_s25, %s967_s24  ;;  %p196_p4 = scmp.eq.s32.totalorder %s760_s29, 1 }
   0x8   : > { %s1059_s10 = scalar_select %p177_p1, %s975_s26, %s179_s8  }
   0x9   : > { %p1061_p5 = por %p190_p2, %p189_p0  ;;  %p1065_p6 = por %p196_p4, %p195_p3 }
   0xa   : > { %p763_p7 = scmp.ge.s32.totalorder %s979_s27, 1  ;;  %p239_p8 = scmp.lt.s32.totalorder %s979_s27, 3 }
   0xc   : > { %p240_p9 = pnand %p763_p7, %p239_p8 }
   0xd   : > { %v867_v0 = vld [vmem:[%s1237_s1 + $0x4] ss:$8 sps:$4 sm:$0xff] (!%p240_p9)   ;;  %v869_v1 = vld [vmem:[%s1237_s1] ss:$8 sps:$4 sm:$0xff] (!%p240_p9)   ;;  %v981_v2 = vmov (!%p240_p9), 0   ;;  %p270_p10 = scmp.lt.s32.totalorder (!%p240_p9), %s1044_s28, 1  ;;  %v295_v35 = vlaneseq (!%p240_p9) }
   0xe   : > { %243 = sbr.rel (%p240_p9) target bundleno = 856 (0x358), region = 48  ;;  %417 = vmatprep.mubr.bf16.mxu0 (!%p240_p9), %v981_v2  ;;  %385 = vmatprep.subr.bf16.mxu0 (!%p240_p9), %v867_v0  ;;  %v870_v3 = vld [vmem:[%s1237_s1 + $0x14] ss:$8 sps:$4 sm:$0xff] (!%p240_p9)   ;;  %v872_v4 = vld [vmem:[%s1237_s1 + $0x10] ss:$8 sps:$4 sm:$0xff] (!%p240_p9)   ;;  %v891_v19 = vld [vmem:[%s1239_s3 + $0x40] sm:$0xff] (!%p240_p9)  }
   0xf   : > { %386 = vmatpush1.bf16.msra.mxu0 (!%p240_p9), %v869_v1  ;;  %v873_v5 = vld [vmem:[%s1237_s1 + $0x24] ss:$8 sps:$4 sm:$0xff] (!%p240_p9)   ;;  %v875_v6 = vld [vmem:[%s1237_s1 + $0x20] ss:$8 sps:$4 sm:$0xff] (!%p240_p9)   ;;  %v876_v7 = vld [vmem:[%s1237_s1 + $0x34] ss:$8 sps:$4 sm:$0xff] (!%p240_p9)   ;;  %805 = vmatprep.subr.bf16.mxu1 (!%p240_p9), %v891_v19 }
  0x10   : > { %387 = vmatprep.subr.bf16.mxu0 (!%p240_p9), %v870_v3  ;;  %v878_v8 = vld [vmem:[%s1237_s1 + $0x30] ss:$8 sps:$4 sm:$0xff] (!%p240_p9)   ;;  %v879_v9 = vld [vmem:[%s1237_s1 + $0x44] ss:$8 sps:$4 sm:$0xff] (!%p240_p9)   ;;  %v881_v10 = vld [vmem:[%s1237_s1 + $0x40] ss:$8 sps:$4 sm:$0xff] (!%p240_p9)  }
  0x11   : > { %v882_v11 = vld [vmem:[%s1237_s1 + $0x54] ss:$8 sps:$4 sm:$0xff] (!%p240_p9)   ;;  %v884_v12 = vld [vmem:[%s1237_s1 + $0x50] ss:$8 sps:$4 sm:$0xff] (!%p240_p9)   ;;  %v885_v13 = vld [vmem:[%s1237_s1 + $0x64] ss:$8 sps:$4 sm:$0xff] (!%p240_p9)  }
  0x12   : > { %v887_v14 = vld [vmem:[%s1237_s1 + $0x60] ss:$8 sps:$4 sm:$0xff] (!%p240_p9)   ;;  %v888_v15 = vld [vmem:[%s1237_s1 + $0x74] ss:$8 sps:$4 sm:$0xff] (!%p240_p9)   ;;  %v890_v16 = vld [vmem:[%s1237_s1 + $0x70] ss:$8 sps:$4 sm:$0xff] (!%p240_p9)  }
  0x13   : > { %388 = vmatpush1.bf16.msra.mxu0 (!%p240_p9), %v872_v4  ;;  %v892_v20 = vld [vmem:[%s1239_s3] sm:$0xff] (!%p240_p9)   ;;  %v893_v21 = vld [vmem:[%s1239_s3 + $0x48] sm:$0xff] (!%p240_p9)   ;;  %v895_v23 = vld [vmem:[%s1239_s3 + $0x50] sm:$0xff] (!%p240_p9)   ;;  %v296_v36 = vshrl.u32 (!%p240_p9), %v295_v35, 7  ;;  %s267_s17 = sand.u32 (!%p240_p9), 1, %s971_s25   ;;  %s802_s29 = sshll.u32 (!%p240_p9), %s1044_s28, 7 }
  0x14   : > { %389 = vmatprep.subr.bf16.mxu0 (!%p240_p9), %v873_v5  ;;  %806 = vmatpush3.bf16.msra.mxu1 (!%p240_p9), %v892_v20  ;;  %v894_v22 = vld [vmem:[%s1239_s3 + $0x8] sm:$0xff] (!%p240_p9)   ;;  %v896_v24 = vld [vmem:[%s1239_s3 + $0x10] sm:$0xff] (!%p240_p9)   ;;  %v897_v25 = vld [vmem:[%s1239_s3 + $0x58] sm:$0xff] (!%p240_p9)   ;;  %s764_s18 = sshll.u32 (!%p240_p9), %s267_s17, 3  ;;  %s1194_s13 = scalar_lea.hbm (!%p240_p9), %s1243_s7, %s802_s29 }
  0x15   : > { %s271_s23 = scalar_select %p270_p10, %s1044_s28, 1  ;;  %807 = vmatprep.subr.bf16.mxu1 %v893_v21  ;;  %v898_v26 = vld [vmem:[%s1239_s3 + $0x18] sm:$0xff]   ;;  %v899_v27 = vld [vmem:[%s1239_s3 + $0x60] sm:$0xff]   ;;  %v901_v29 = vld [vmem:[%s1239_s3 + $0x68] sm:$0xff]   ;;  %v297_v37 = vsub.s32 0, %v296_v36  ;;  %v301_v39 = vsub.s32 1, %v296_v36 }
  0x16   : > { %v900_v28 = vld [vmem:[%s1239_s3 + $0x20] sm:$0xff]   ;;  %v902_v30 = vld [vmem:[%s1239_s3 + $0x28] sm:$0xff]   ;;  %v903_v31 = vld [vmem:[%s1239_s3 + $0x70] sm:$0xff]   ;;  %s269_s8 = scalar_lea.vmem [#allocation2], %s764_s18  ;;  %s688_s14 = scalar_lea.sflag [#allocation3], %s267_s17 }
  0x17   : > { %s765_s16 = sshll.u32 %s271_s23, 3  ;;  %390 = vmatpush1.bf16.msra.mxu0 %v875_v6  ;;  %v904_v32 = vld [vmem:[%s1239_s3 + $0x30] sm:$0xff]   ;;  %v905_v33 = vld [vmem:[%s1239_s3 + $0x78] sm:$0xff]   ;;  %v293_v38 = vld [vmem:[%s1238_s2] sm:$0x3]  ;;  %s701_s23 = sshll.u32 %s269_s8, 4  ;;  %s1196_s23 = int_to_ptr.vmem [resolvable:$true] %s701_s23 }
  0x18   : > { %391 = vmatprep.subr.bf16.mxu0 %v876_v7  ;;  %s273_s20 = scalar_lea.vmem %s1236_s0, %s765_s16  ;;  %808 = vmatpush3.bf16.msra.mxu1 %v894_v22  ;;  %v906_v34 = vld [vmem:[%s1239_s3 + $0x38] sm:$0xff]   ;;  %v298_v40 = vrot.slane %v293_v38, %v297_v37  ;;  %v302_v41 = vrot.slane %v293_v38, %v301_v39  ;;  %v782_v38 = vld [vmem:[%s1240_s4] ss:$0 sm:$0xff]  ;;  %s917_s15 = scalar_lea.vmem %s1196_s23, 128 }
  0x19   : > { %v1124_v17 = vld [vmem:[%s273_s20] sm:$0xff]  ;;  %809 = vmatprep.subr.bf16.mxu1 %v895_v23  ;;  %p918_p11 = scmp.ne.s32.totalorder %s1196_s23, %s917_s15  ;;  %s982_s28 = smov [#allocation2]  }
  0x1a   : > { %v276_v18 = vpack.c.bf16 %v1124_v17, %v1124_v17  ;;  %s921_s18 = sshll.u32 %s982_s28, 4  ;;  %s922_s18 = int_to_ptr.vmem [resolvable:$false] %s921_s18 }
  0x1b   : > { %392 = vmatpush1.bf16.msra.mxu0 %v878_v8  ;;  %p919_p12 = pnand %p918_p11, %p1061_p5  ;;  %s923_s19 = scalar_lea.vmem %s922_s18, 256 }
  0x1c   : > { %393 = vmatprep.subr.bf16.mxu0 %v879_v9  ;;  %810 = vmatpush3.bf16.msra.mxu1 %v896_v24  ;;  %p924_p0 = scmp.lt.s32.totalorder %s1196_s23, %s922_s18  ;;  %p925_p1 = scmp.lt.s32.totalorder %s923_s19, %s917_s15 }
  0x1d   : > { %811 = vmatprep.subr.bf16.mxu1 %v897_v25  ;;  %p920_p13 = pneg %p919_p12 }
  0x1e   : > { %p926_p2 = por %p925_p1, %p924_p0 }
  0x1f   : > { %394 = vmatpush1.bf16.msra.mxu0 %v881_v10 }
  0x20   : > { %395 = vmatprep.subr.bf16.mxu0 %v882_v11  ;;  %812 = vmatpush3.bf16.msra.mxu1 %v898_v26  ;;  %p927_p3 = pnand %p926_p2, %p920_p13 }
  0x21   : > { %813 = vmatprep.subr.bf16.mxu1 %v899_v27 }
  0x23   : > { %396 = vmatpush1.bf16.msra.mxu0 %v884_v12 }
  0x24   : > { %397 = vmatprep.subr.bf16.mxu0 %v885_v13  ;;  %814 = vmatpush3.bf16.msra.mxu1 %v900_v28 }
  0x25   : > { %815 = vmatprep.subr.bf16.mxu1 %v901_v29 }
  0x27   : > { %398 = vmatpush1.bf16.msra.mxu0 %v887_v14 }
  0x28   : > { %399 = vmatprep.subr.bf16.mxu0 %v888_v15  ;;  %816 = vmatpush3.bf16.msra.mxu1 %v902_v30 }
  0x29   : > { %817 = vmatprep.subr.bf16.mxu1 %v903_v31 }
  0x2b   : > { %400 = vmatpush1.bf16.msra.mxu0 %v890_v16 }
  0x2c   : > { %818 = vmatpush3.bf16.msra.mxu1 %v904_v32 }
  0x2d   : > { %819 = vmatprep.subr.bf16.mxu1 %v905_v33 }
  0x2e   : > { %418 = vmatmul.mubr.bf16.vlgmr.msra.gmra.mrb[0].mxu0 %v276_v18 }
  0x30   : > { %820 = vmatpush3.bf16.msra.mxu1 %v906_v34 }
 0x101   : > { %v419_v42 = vpop.f32.mrb[0].mxu0 }
 0x102   : > { %v420_v43 = vadd.f32 %v419_v42, %v298_v40  ;;  %v421_v44 = vpop.f32.mrb[1].mxu0 }
 0x103   : > { %v422_v45 = vadd.f32 %v421_v44, %v302_v41  ;;  %v423_v46 = vpop.f32.mrb[2].mxu0 }
 0x104   : > { %v426_v47 = vmul.f32 0.70710677, %v420_v43  ;;  %v424_v48 = vpop.f32.mrb[3].mxu0  ;;  %v474_v28 = vmul.f32 0.5, %v420_v43 }
 0x105   : > { %v427_v49 = vmul.f32 0.70710677, %v422_v45  ;;  %v475_v31 = vmul.f32 0.5, %v422_v45 }
 0x106   : > { %v428_v50 = vand.u32 2147483647, %v426_v47  ;;  %vm468_vm0 = vcmp.ge.f32.partialorder %v426_v47, 0.0 }
 0x107   : > { %v429_v51 = vand.u32 2147483647, %v427_v49  ;;  %vm469_vm1 = vcmp.ge.f32.partialorder %v427_v49, 0.0 }
 0x108   : > { %v430_v52 = vmul.f32 0.3275911, %v428_v50  ;;  %v456_v56 = vsub.f32 0.0, %v428_v50 }
 0x109   : > { %v431_v53 = vmul.f32 0.3275911, %v429_v51  ;;  %v457_v57 = vsub.f32 0.0, %v429_v51 }
 0x10a   : > { %v432_v54 = vadd.f32 1.0, %v430_v52  ;;  %v458_v59 = vmul.f32 %v456_v56, %v428_v50 }
 0x10b   : > { %v433_v55 = vadd.f32 1.0, %v431_v53  ;;  %v459_v61 = vmul.f32 %v457_v57, %v429_v51  ;;  %v799_v53 = vld [vmem:[%s1241_s5] ss:$0 sm:$0xff] }
 0x10c   : > { %907 = vrcp.f32 %v432_v54  ;;  %v460_v1 = vmul.f32 1.442695, %v458_v59  ;;  %v800_v54 = vld [vmem:[%s1242_s6] ss:$0 sm:$0xff] }
 0x10d   : > { %909 = vrcp.f32 %v433_v55  ;;  %v462_v3 = vmul.f32 1.442695, %v459_v61 }
 0x10e   : > { %911 = vpow2.f32 %v460_v1 }
 0x10f   : > { %913 = vpow2.f32 %v462_v3 }
 0x116   : > { %v908_v58 = vpop.eup %907 }
 0x117   : > { %v910_v60 = vpop.eup %909  ;;  %v438_v62 = vmul.f32 1.0614054, %v908_v58 }
 0x118   : > { %v439_v63 = vmul.f32 1.0614054, %v910_v60  ;;  %v912_v18 = vpop.eup %911 }
 0x119   : > { %v440_v0 = vadd.f32 -1.4531521, %v438_v62  ;;  %v914_v20 = vpop.eup %913 }
 0x11a   : > { %v441_v2 = vadd.f32 -1.4531521, %v439_v63 }
 0x11b   : > { %v442_v4 = vmul.f32 %v908_v58, %v440_v0 }
 0x11c   : > { %v443_v5 = vmul.f32 %v910_v60, %v441_v2 }
 0x11d   : > { %v444_v6 = vadd.f32 1.4214138, %v442_v4 }
 0x11e   : > { %v445_v7 = vadd.f32 1.4214138, %v443_v5 }
 0x11f   : > { %v446_v8 = vmul.f32 %v908_v58, %v444_v6 }
 0x120   : > { %v447_v9 = vmul.f32 %v910_v60, %v445_v7 }
 0x121   : > { %v448_v10 = vadd.f32 -0.28449672, %v446_v8 }
 0x122   : > { %v449_v11 = vadd.f32 -0.28449672, %v447_v9 }
 0x123   : > { %v450_v12 = vmul.f32 %v908_v58, %v448_v10 }
 0x124   : > { %v451_v13 = vmul.f32 %v910_v60, %v449_v11 }
 0x125   : > { %v452_v14 = vadd.f32 0.2548296, %v450_v12 }
 0x126   : > { %v453_v15 = vadd.f32 0.2548296, %v451_v13 }
 0x127   : > { %v454_v16 = vmul.f32 %v908_v58, %v452_v14 }
 0x128   : > { %v455_v19 = vmul.f32 %v910_v60, %v453_v15 }
 0x129   : > { %v464_v21 = vmul.f32 %v912_v18, %v454_v16 }
 0x12a   : > { %v465_v22 = vmul.f32 %v914_v20, %v455_v19 }
 0x12b   : > { %v466_v23 = vsub.f32 1.0, %v464_v21 }
 0x12c   : > { %v467_v24 = vsub.f32 1.0, %v465_v22 }
 0x12d   : > { %v470_v25 = vsub.f32 0.0, %v466_v23 }
 0x12e   : > { %v471_v26 = vsub.f32 0.0, %v467_v24 }
 0x12f   : > { %v472_v27 = vsel %vm468_vm0, %v466_v23, %v470_v25 }
 0x130   : > { %v473_v29 = vsel %vm469_vm1, %v467_v24, %v471_v26  ;;  %v476_v30 = vadd.f32 1.0, %v472_v27 }
 0x131   : > { %v477_v32 = vadd.f32 1.0, %v473_v29 }
 0x132   : > { %v478_v33 = vmul.f32 %v476_v30, %v474_v28 }
 0x133   : > { %v479_v34 = vmul.f32 %v477_v32, %v475_v31 }
 0x134   : > { %v480_v36 = vpack.c.bf16 %v478_v33, %v478_v33 }
 0x135   : > { %v481_v35 = vpack.c.bf16 %v479_v34, %v479_v34 }
 0x137   : > { %649 = vmatprep.mubr.bf16.mxu1 %v481_v35 }
 0x138   : > { %650 = vmatmul.mubr.bf16.vlgmr.msra.gmra.mrb[0].mxu1 %v480_v36 }
 0x20b   : > { %v821_v37 = vpop.f32.mrb[0].mxu1 }
 0x20c   : > { %v822_v39 = vpop.f32.mrb[1].mxu1 }
 0x20d   : > { %v823_v40 = vadd.f32 %v822_v39, %v821_v37  ;;  %v824_v41 = vpop.f32.mrb[2].mxu1 }
 0x20e   : > { %v825_v42 = vpop.f32.mrb[3].mxu1 }
 0x20f   : > { %v652_v43 = vadd.f32 %v823_v40, %v782_v38 }
 0x211   : > { %v657_v44 = vadd.f32 %v652_v43, %v1124_v17 }
 0x213   : > { %660 = vadd.xlane.f32.xlu0 %v657_v44 }
 0x2a0   : > { %v661_v45 = vpop.xlane.xlu0 %660 }
 0x2a1   : > { %v663_v46 = vmul.f32 0.0078125, %v661_v45 }
 0x2a3   : > { %v664_v47 = vsub.f32 %v657_v44, %v663_v46 }
 0x2a5   : > { %v665_v48 = vmul.f32 %v664_v47, %v664_v47 }
 0x2a7   : > { %666 = vadd.xlane.f32.xlu0 %v665_v48 }
 0x334   : > { %v667_v49 = vpop.xlane.xlu0 %666 }
 0x335   : > { %v668_v50 = vmul.f32 0.0078125, %v667_v49 }
 0x337   : > { %v669_v51 = vadd.f32 1e-05, %v668_v50 }
 0x339   : > { %915 = vrsqrt.f32 %v669_v51 }
 0x343   : > { %v916_v52 = vpop.eup %915 }
 0x344   : > { %v671_v17 = vmul.f32 %v916_v52, %v664_v47 }
 0x346   : > { %v678_v55 = vmul.f32 %v799_v53, %v671_v17 }
 0x348   : > { %v685_v56 = vadd.f32 %v800_v54, %v678_v55 }
 0x34a   : > { %686 = vst [vmem:[%s269_s8] sm:$0xff] %v685_v56 }
 0x34b   : > { %930 = shalt.err (!%p927_p3)
}
 0x34c   : > { %s931_s17 = scalar_lea.hbm %s1194_s13, 128  ;;  %s935_s22 = scalar_lea.hbm %s1243_s7, 256 }
 0x34d   : > { %p932_p4 = scmp.ne.s32.totalorder %s1194_s13, %s931_s17  ;;  %p936_p9 = scmp.lt.u32.totalorder %s1194_s13, %s1243_s7 }
 0x34e   : > { %p937_p10 = scmp.lt.u32.totalorder %s935_s22, %s931_s17  ;;  %p939_p12 = scmp.lt.u32.totalorder %s931_s17, %s1194_s13 }
 0x34f   : > { %p933_p7 = pnand %p932_p4, %p1061_p5 }
 0x350   : > { %p938_p11 = por %p937_p10, %p936_p9 }
 0x351   : > { %p934_p8 = pneg %p933_p7 }
 0x352   : > { %p940_p13 = por %p939_p12, %p938_p11 }
 0x354   : > { %p941_p0 = pnand %p940_p13, %p934_p8 }
 0x356   : > { %944 = shalt.err (!%p941_p0)
}
 0x357   : > { %827 = dma.vmem_to_hbm [thread:$0]  (%p1061_p5), %s1196_s23, 128, %s1194_s13, %s688_s14  }
 0x358 PF: > { %p833_p1 = scmp.ge.s32.totalorder %s979_s27, 2  ;;  %s713_s9 = sand.u32 1, %s967_s24  }
 0x359   : > { %s714_s16 = scalar_lea.sflag [#allocation3], %s713_s9 }
 0x35a   : > { %p830_p2 = pnand %p833_p1, %p1065_p6 }
 0x35c   : > { %962 = dma.done.wait (!%p830_p2), %s714_s16, 128  }
 0x35d   : > { %964 = vsyncadd (!%p830_p2), %s714_s16, 4294967168  ;;  %p17_p3 = scmp.ge.s32.totalorder %s1048_s30, 4   ;;  %s1246_s24 = smov %s971_s25 }
 0x35e   : > { %s1247_s25 = smov %s975_s26  ;;  %s1248_s26 = smov %s1059_s10 }
 0x35f   : > { %s1249_s27 = smov %s1048_s30  ;;  %19 = sbr.rel (!%p17_p3) target bundleno = 3 (0x3), region = 83 }
 0x366   :  { %719 = vsyncpa [#allocation3], 1 }
 0x367   :  { %721 = vsyncpa [#allocation3 + $0x1], 1 }

</bundles_post_ra>
